<compile_context>
chip_gen: v5e
topology: v5e:2x2
jax: 0.10.0
libtpu: 0.0.40
codegen_flags: <defaults>
</compile_context>

<pallas_src>
import jax
import jax.numpy as jnp
from jax.experimental import pallas as pl
from jax.experimental.pallas import tpu as pltpu


def mlp_kernel(x_ref, w1_ref, b1_ref, w2_ref, b2_ref, o_ref):
    # Fused: (x @ W1 + b1) -> ReLU -> (@ W2 + b2), all in VMEM, MXU matmuls,
    # f32 accumulation throughout.
    h = jnp.dot(x_ref[...], w1_ref[...], preferred_element_type=jnp.float32)
    h = h + b1_ref[...]                      # (tm, H) + (1, H) broadcast, f32
    h = jnp.maximum(h, 0.0)                  # ReLU on VPU, f32
    if h.dtype != w2_ref.dtype:              # single cast only for bf16 weights
        h = h.astype(w2_ref.dtype)
    out = jnp.dot(h, w2_ref[...], preferred_element_type=jnp.float32)
    out = out + b2_ref[...]
    o_ref[...] = out.astype(o_ref.dtype)


def mlp_forward(x, w1, b1, w2, b2, *, tm=256, compute_dtype=None):
    """Fused MLP forward.

    tm: row tile (multiple of 8; 128 is MXU-native on v5e, 256+ on v6e/v7x).
    compute_dtype: if set (e.g. jnp.bfloat16), x/W1/W2 are cast on the wire;
        accumulation and bias/ReLU stay in f32; output keeps x's original dtype.
    """
    M, D_in = x.shape
    H = w1.shape[1]
    D_out = w2.shape[1]
    out_dtype = x.dtype

    if compute_dtype is not None:
        x = x.astype(compute_dtype)
        w1 = w1.astype(compute_dtype)
        w2 = w2.astype(compute_dtype)
    # Biases always f32: they are added to the f32 accumulator in-kernel.
    b1 = b1.reshape(1, H).astype(jnp.float32)
    b2 = b2.reshape(1, D_out).astype(jnp.float32)

    # cdiv grid + zero padding so any batch works with a large tile.
    grid_m = pl.cdiv(M, tm)
    m_pad = grid_m * tm
    if m_pad != M:
        x = jnp.pad(x, ((0, m_pad - M), (0, 0)))

    out = pl.pallas_call(
        mlp_kernel,
        out_shape=jax.ShapeDtypeStruct((m_pad, D_out), out_dtype),
        grid_spec=pltpu.PrefetchScalarGridSpec(
            num_scalar_prefetch=0,
            grid=(grid_m,),
            in_specs=[
                pl.BlockSpec((tm, D_in), lambda i: (i, 0)),   # x tile
                pl.BlockSpec((D_in, H), lambda i: (0, 0)),    # W1 (resident)
                pl.BlockSpec((1, H), lambda i: (0, 0)),       # b1 (resident)
                pl.BlockSpec((H, D_out), lambda i: (0, 0)),   # W2 (resident)
                pl.BlockSpec((1, D_out), lambda i: (0, 0)),   # b2 (resident)
            ],
            out_specs=pl.BlockSpec((tm, D_out), lambda i: (i, 0)),
        ),
        compiler_params=pltpu.CompilerParams(
            dimension_semantics=("parallel",)),
    )(x, w1, b1, w2, b2)

    if m_pad != M:
        out = out[:M]
    return out


def init_linear(key, fan_in, fan_out):
    # Deterministic init mimicking PyTorch nn.Linear (uniform +/- 1/sqrt(fan_in)).
    kw, kb = jax.random.split(key)
    bound = 1.0 / jnp.sqrt(fan_in)
    w = jax.random.uniform(kw, (fan_in, fan_out), jnp.float32, -bound, bound)
    b = jax.random.uniform(kb, (1, fan_out), jnp.float32, -bound, bound)
    return w, b


if __name__ == "__main__":
    # Module defaults: input_dim=768, hidden=128, output_dim=1000.
    # batch=384 with tm=256 -> padded to 512, grid of 2 parallel steps
    # (exercises the cdiv+padding path and keeps both v7x TCs busy).
    batch, input_dim, hidden, output_dim = 384, 768, 128, 1000

    key = jax.random.PRNGKey(0)
    kx, k1, k2 = jax.random.split(key, 3)
    x = jax.random.normal(kx, (batch, input_dim), jnp.float32)
    w1, b1 = init_linear(k1, input_dim, hidden)
    w2, b2 = init_linear(k2, hidden, output_dim)

    # --- f32 path: bit-faithful to the PyTorch float32 forward (up to accum order)
    out = jax.block_until_ready(mlp_forward(x, w1, b1, w2, b2, tm=256))
    ref = jnp.maximum(x @ w1 + b1, 0.0) @ w2 + b2
    assert out.shape == (batch, output_dim)
    assert jnp.allclose(out, ref, atol=1e-4, rtol=1e-4)

    # --- bf16-on-the-wire path: ~4x MXU throughput / half HBM traffic on v6e+,
    # still f32 accumulation. Compare against a reference that quantizes the same
    # tensors to bf16, so only accumulation-order noise remains.
    out_bf16 = jax.block_until_ready(
        mlp_forward(x, w1, b1, w2, b2, tm=256, compute_dtype=jnp.bfloat16))
    xb = x.astype(jnp.bfloat16).astype(jnp.float32)
    w1b = w1.astype(jnp.bfloat16).astype(jnp.float32)
    w2b = w2.astype(jnp.bfloat16).astype(jnp.float32)
    h_ref = jnp.maximum(
        jnp.dot(xb, w1b, preferred_element_type=jnp.float32) + b1, 0.0)
    ref_bf16 = jnp.dot(h_ref.astype(jnp.bfloat16).astype(jnp.float32), w2b,
                       preferred_element_type=jnp.float32) + b2
    assert out_bf16.shape == (batch, output_dim)
    assert jnp.allclose(out_bf16, ref_bf16, atol=2e-2, rtol=2e-2)

    print("KERNEL_OK")
</pallas_src>

<mosaic_0001>
module attributes {stable_mosaic.version = 11 : i64} {
  func.func @mlp_kernel(%arg0: i32, %arg1: memref<256x768xf32, #tpu.memory_space<vmem>>, %arg2: memref<768x128xf32, #tpu.memory_space<vmem>>, %arg3: memref<1x128xf32, #tpu.memory_space<vmem>>, %arg4: memref<128x1000xf32, #tpu.memory_space<vmem>>, %arg5: memref<1x1000xf32, #tpu.memory_space<vmem>>, %arg6: memref<256x1000xf32, #tpu.memory_space<vmem>>) attributes {dimension_semantics = [#tpu.dimension_semantics<parallel>], iteration_bounds = array<i64: 2>, scalar_prefetch = 0 : i64, scratch_operands = 0 : i64, tpu.core_type = #tpu.core_type<tc>, window_params = [{transform_indices = @transform_0, window_bounds = array<i64: 256, 768>}, {pipeline_mode = #tpu.pipeline_mode<synchronous>, transform_indices = @transform_1, window_bounds = array<i64: 768, 128>}, {pipeline_mode = #tpu.pipeline_mode<synchronous>, transform_indices = @transform_2, window_bounds = array<i64: 1, 128>}, {pipeline_mode = #tpu.pipeline_mode<synchronous>, transform_indices = @transform_3, window_bounds = array<i64: 128, 1000>}, {pipeline_mode = #tpu.pipeline_mode<synchronous>, transform_indices = @transform_4, window_bounds = array<i64: 1, 1000>}, {transform_indices = @transform_5, window_bounds = array<i64: 256, 1000>}]} {
    %c0 = arith.constant 0 : index
    %c0_0 = arith.constant 0 : index
    %0 = vector.load %arg1[%c0, %c0_0] : memref<256x768xf32, #tpu.memory_space<vmem>>, vector<256x768xf32>
    %c0_1 = arith.constant 0 : index
    %c0_2 = arith.constant 0 : index
    %1 = vector.load %arg2[%c0_1, %c0_2] : memref<768x128xf32, #tpu.memory_space<vmem>>, vector<768x128xf32>
    %cst = arith.constant dense<0.000000e+00> : vector<256x128xf32>
    %2 = tpu.matmul %0, %1, %cst {dimension_numbers = #tpu.dot_dimension_numbers<[1], [0], [0], [1], [0, 0, 1, 1], [], []>} : vector<256x768xf32>, vector<768x128xf32>, vector<256x128xf32> -> vector<256x128xf32>
    %c0_3 = arith.constant 0 : index
    %c0_4 = arith.constant 0 : index
    %3 = vector.load %arg3[%c0_3, %c0_4] : memref<1x128xf32, #tpu.memory_space<vmem>>, vector<1x128xf32>
    %4 = vector.broadcast %3 : vector<1x128xf32> to vector<256x128xf32>
    %5 = arith.addf %2, %4 : vector<256x128xf32>
    %cst_5 = arith.constant 0.000000e+00 : f32
    %6 = vector.broadcast %cst_5 : f32 to vector<256x128xf32>
    %7 = arith.maximumf %5, %6 : vector<256x128xf32>
    %c0_6 = arith.constant 0 : index
    %c0_7 = arith.constant 0 : index
    %8 = vector.load %arg4[%c0_6, %c0_7] : memref<128x1000xf32, #tpu.memory_space<vmem>>, vector<128x1000xf32>
    %cst_8 = arith.constant dense<0.000000e+00> : vector<256x1000xf32>
    %9 = tpu.matmul %7, %8, %cst_8 {dimension_numbers = #tpu.dot_dimension_numbers<[1], [0], [0], [1], [0, 0, 1, 1], [], []>} : vector<256x128xf32>, vector<128x1000xf32>, vector<256x1000xf32> -> vector<256x1000xf32>
    %c0_9 = arith.constant 0 : index
    %c0_10 = arith.constant 0 : index
    %10 = vector.load %arg5[%c0_9, %c0_10] : memref<1x1000xf32, #tpu.memory_space<vmem>>, vector<1x1000xf32>
    %11 = vector.broadcast %10 : vector<1x1000xf32> to vector<256x1000xf32>
    %12 = arith.addf %9, %11 : vector<256x1000xf32>
    %c0_11 = arith.constant 0 : index
    %c0_12 = arith.constant 0 : index
    %13 = vector.load %arg6[%c0_11, %c0_12] : memref<256x1000xf32, #tpu.memory_space<vmem>>, vector<256x1000xf32>
    tpu.vector_store %arg6[%c0_11, %c0_12], %12 {strides = array<i32>} : memref<256x1000xf32, #tpu.memory_space<vmem>>, vector<256x1000xf32>,
    return
  }
  func.func @transform_0(%arg0: i32) -> (i32, i32) {
    %c0_i32 = arith.constant 0 : i32
    %c0_i32_0 = arith.constant 0 : i32
    return %arg0, %c0_i32 : i32, i32
  }
  func.func @transform_1(%arg0: i32) -> (i32, i32) {
    %c0_i32 = arith.constant 0 : i32
    %c0_i32_0 = arith.constant 0 : i32
    %c0_i32_1 = arith.constant 0 : i32
    return %c0_i32, %c0_i32_0 : i32, i32
  }
  func.func @transform_2(%arg0: i32) -> (i32, i32) {
    %c0_i32 = arith.constant 0 : i32
    %c0_i32_0 = arith.constant 0 : i32
    %c0_i32_1 = arith.constant 0 : i32
    return %c0_i32, %c0_i32_0 : i32, i32
  }
  func.func @transform_3(%arg0: i32) -> (i32, i32) {
    %c0_i32 = arith.constant 0 : i32
    %c0_i32_0 = arith.constant 0 : i32
    %c0_i32_1 = arith.constant 0 : i32
    return %c0_i32, %c0_i32_0 : i32, i32
  }
  func.func @transform_4(%arg0: i32) -> (i32, i32) {
    %c0_i32 = arith.constant 0 : i32
    %c0_i32_0 = arith.constant 0 : i32
    %c0_i32_1 = arith.constant 0 : i32
    return %c0_i32, %c0_i32_0 : i32, i32
  }
  func.func @transform_5(%arg0: i32) -> (i32, i32) {
    %c0_i32 = arith.constant 0 : i32
    %c0_i32_0 = arith.constant 0 : i32
    return %arg0, %c0_i32 : i32, i32
  }
}

</mosaic_0001>

<bundles_post_ra>
// kernel: tpu_custom_call.1
= control target key start
LH: loop header
LB: loop body
LE: loop exit
PB: predicated region body
PF: predicated region fallthrough
CT: control target
= control target key end

     0   :  { %10 = vsyncpa [#allocation3], 0  ;;  %s4900_s0 = inlined_call_operand.hbm [shape: f32[512,768], index: 0, kind: input, shape index: {}]   ;;  %s4901_s1 = inlined_call_operand.hbm [shape: f32[768,128], index: 1, kind: input, shape index: {}]   ;;  %s4902_s2 = inlined_call_operand.hbm [shape: f32[1,128], index: 2, kind: input, shape index: {}]   ;;  %s4903_s3 = inlined_call_operand.vmem [shape: f32[128,1000], index: 3, kind: input, shape index: {}]   ;;  %s4904_s4 = inlined_call_operand.hbm [shape: f32[1,1000], index: 4, kind: input, shape index: {}]   ;;  %s4905_s5 = inlined_call_operand.vmem [shape: f32[512,1000], index: 5, kind: output, shape index: {}]  }
   0x1   :  { %12 = vsyncpa [#allocation3 + $0x1], 0 }
   0x2   :  { %13 = vsyncpa [#allocation5], 0 }
   0x3   :  { %14 = vsyncpa [#allocation8], 0  ;;  %s3038_s18 = smov 0   ;;  %s3040_s19 = smov 0  }
   0x4   :  { %s3042_s20 = smov 0   ;;  %s3044_s21 = smov 0  }
   0x5 LB: > { %s2705_s22 = sadd.s32 4294967295, %s2999_s21   ;;  %p40_p0 = scmp.ne.s32.totalorder %s2991_s19, %s2987_s18  ;;  %s2999_s21 = sphi %s3044_s21, %s4914_s21   ;;  %s2995_s20 = sphi %s3042_s20, %s4913_s20   ;;  %s2991_s19 = sphi %s3040_s19, %s4912_s19   ;;  %s2987_s18 = sphi %s3038_s18, %s4911_s18  }
   0x6   : > { %p3060_p1 = scmp.eq.s32.totalorder %s2705_s22, 0  ;;  %p2707_p2 = scmp.ge.s32.totalorder %s2999_s21, 1 }
   0x7   : > { %p161_p3 = scmp.lt.s32.totalorder %s2999_s21, 3  ;;  %s172_s27 = sshll.u32 %s4901_s1, 4  ;;  %s173_s27 = int_to_ptr.hbm [resolvable:$true] %s172_s27 }
   0x8   : > { %p3068_p4 = por %p3060_p1, %p40_p0  ;;  %s3001_s29 = smov [#allocation4]  }
   0x9   : > { %p3075_p5 = pnand %p2707_p2, %p161_p3  ;;  %s174_s30 = sshll.u32 %s3001_s29, 4  ;;  %s175_s30 = int_to_ptr.vmem [resolvable:$true] %s174_s30 }
   0xa   : > { %s187_s9 = sshll.u32 %s4902_s2, 4  ;;  %s3002_s10 = smov 128   ;;  %s188_s9 = int_to_ptr.hbm [resolvable:$true] %s187_s9 }
   0xb   : > { %p2774_p6 = pneg %p3075_p5  ;;  %s3003_s11 = smov 8  }
   0xc   : > { %s3004_s12 = smov [#allocation6]   ;;  %s202_s16 = sshll.u32 %s4904_s4, 4  ;;  %s203_s16 = int_to_ptr.hbm [resolvable:$true] %s202_s16 }
   0xd   : > { %p3083_p7 = pnand %p2774_p6, %p3060_p1  ;;  %s189_s13 = sshll.u32 %s3004_s12, 4  ;;  %s190_s13 = int_to_ptr.vmem [resolvable:$true] %s189_s13 }
   0xe   : > { %s3005_s17 = smov [#allocation7]   ;;  %s3098_s25 = sadd.s32 1, %s2999_s21  }
   0xf   : > { %2777 = dma.hbm_to_vmem [thread:$0]  (!%p3083_p7), %s173_s27, 12288, %s175_s30, [#allocation5], %s3002_s10, %s3002_s10, %s3003_s11  }
  0x10   : > { %2780 = dma.hbm_to_vmem [thread:$0]  (!%p3083_p7), %s188_s9, 16, %s190_s13, [#allocation5]  }
  0x11   : > { %s204_s18 = sshll.u32 %s3005_s17, 4  ;;  %s24_s26 = ssub.s32 %s2999_s21, %s3098_s25  ;;  %s205_s18 = int_to_ptr.vmem [resolvable:$true] %s204_s18 }
  0x12   : > { %2783 = dma.hbm_to_vmem [thread:$0]  (!%p3083_p7), %s203_s16, 128, %s205_s18, [#allocation8]  }
  0x13   : > { %s27_s27 = sadd.s32 1, %s2995_s20  ;;  %p25_p8 = scmp.eq.s32.totalorder %s24_s26, 0 }
  0x14   : > { %p34_p9 = scmp.ne.s32.totalorder %s2995_s20, %s2991_s19  ;;  %p35_p10 = scmp.eq.s32.totalorder %s2999_s21, 0 }
  0x15   : > { %p2791_p11 = scmp.lt.s32.totalorder %s2999_s21, 2  ;;  %s215_s30 = sand.u32 1, %s2995_s20  }
  0x16   : > { %s3110_s29 = scalar_select %p25_p8, %s2995_s20, %s27_s27  }
  0x17   : > { %p36_p12 = por %p35_p10, %p34_p9  ;;  %s2757_s7 = smul.u32 1536, %s215_s30 }
  0x18   : > { %s2758_s8 = smul.u32 1536, %s2999_s21  ;;  %s216_s15 = scalar_lea.sflag [#allocation3], %s215_s30 }
  0x19   : > { %p3114_p13 = pnand %p2791_p11, %p36_p12  ;;  %s219_s12 = scalar_lea.vmem [#allocation2], %s2757_s7 }
  0x1a   : > { %s225_s11 = scalar_lea.hbm %s4900_s0, %s2758_s8  ;;  %s228_s13 = sshll.u32 %s219_s12, 4  ;;  %s229_s13 = int_to_ptr.vmem [resolvable:$true] %s228_s13 }
  0x1b   : > { %s226_s14 = sshll.u32 %s225_s11, 4  ;;  %p2931_p2 = pneg %p3114_p13  ;;  %s227_s14 = int_to_ptr.hbm [resolvable:$true] %s226_s14 }
  0x1c   : > { %s2927_s16 = sshra.s32 %s227_s14, 4  ;;  %s2934_s27 = scalar_lea.hbm %s4900_s0, 3072  ;;  %s2928_s16 = int_to_ptr.hbm [resolvable:$true] %s2927_s16 }
  0x1d   : > { %s2929_s17 = scalar_lea.hbm %s2928_s16, 1536  ;;  %p2935_p7 = scmp.lt.s32.totalorder %s2928_s16, %s4900_s0 }
  0x1e   : > { %p2930_p0 = scmp.ne.s32.totalorder %s2928_s16, %s2929_s17  ;;  %p2936_p8 = scmp.lt.s32.totalorder %s2934_s27, %s2929_s17 }
  0x20   : > { %p2932_p3 = pnand %p2931_p2, %p2930_p0  ;;  %p2937_p9 = por %p2936_p8, %p2935_p7 }
  0x22   : > { %p2933_p6 = pneg %p2932_p3 }
  0x24   : > { %p2938_p10 = pnand %p2937_p9, %p2933_p6 }
  0x26   : > { %2941 = shalt.err (!%p2938_p10)
}
  0x27   : > { %s3006_s30 = smov 768   ;;  %s3007_s7 = smov 48  }
  0x28   : > { %2787 = dma.hbm_to_vmem [thread:$0]  (!%p3114_p13), %s227_s14, 24576, %s229_s13, %s216_s15, %s3006_s30, %s3006_s30, %s3007_s7  }
  0x29   : > { %240 = sbr.rel (%p3075_p5) target bundleno = 1108 (0x454), region = 40  ;;  %s242_s6 = sand.u32 (!%p3075_p5), 1, %s2991_s19  }
  0x2a   : > { %s2759_s11 = smul.u32 (!%p3075_p5), 1536, %s242_s6  ;;  %s243_s12 = scalar_lea.sflag (!%p3075_p5), [#allocation3], %s242_s6 }
  0x2c   : > { %s3134_s18 = scalar_lea.vmem (!%p3075_p5), [#allocation2], %s2759_s11 }
  0x2e   : > { %2974 = dma.done.wait (%p3068_p4), %s243_s12, 24576  }
  0x2f   : > { %2976 = vsyncadd (%p3068_p4), %s243_s12, 4294942720 }
  0x30   : > { %2978 = dma.done.wait (%p3060_p1), [#allocation5], 12304  }
  0x31   : > { %2980 = vsyncadd (%p3060_p1), [#allocation5], 4294954992 }
  0x32   : > { %2982 = dma.done.wait (%p3060_p1), [#allocation8], 128  }
  0x33   : > { %2984 = vsyncadd (%p3060_p1), [#allocation8], 4294967168  ;;  %v505_v0 = vld [vmem:[#allocation4 + $0x78] sm:$0xff]  ;;  %v504_v2 = vld [vmem:[#allocation4 + $0x70] sm:$0xff]  ;;  %s2719_s12 = sshll.u32 %s2705_s22, 5  ;;  %vm2357_vm0 = vcmask 850944  }
  0x34   : > { %v521_v1 = vld [vmem:[#allocation4 + $0xf8] sm:$0xff]  ;;  %590 = vmatpush.msra.mxu0 %v505_v0  ;;  %2725 = vmatpush.msra.mxu2 %v505_v0  ;;  %v520_v3 = vld [vmem:[#allocation4 + $0xf0] sm:$0xff]  ;;  %v503_v4 = vld [vmem:[#allocation4 + $0x68] sm:$0xff]  ;;  %p292_p1 = scmp.lt.s32.totalorder %s2719_s12, 63 }
  0x35   : > { %703 = vmatpush.msra.mxu1 %v521_v1  ;;  %2741 = vmatpush.msra.mxu3 %v521_v1  ;;  %v519_v5 = vld [vmem:[#allocation4 + $0xe8] sm:$0xff]  ;;  %v502_v6 = vld [vmem:[#allocation4 + $0x60] sm:$0xff]  ;;  %v501_v8 = vld [vmem:[#allocation4 + $0x58] sm:$0xff] }
  0x36   : > { %591 = vmatpush.msra.mxu0 %v504_v2  ;;  %2726 = vmatpush.msra.mxu2 %v504_v2  ;;  %v518_v7 = vld [vmem:[#allocation4 + $0xe0] sm:$0xff]  ;;  %v517_v9 = vld [vmem:[#allocation4 + $0xd8] sm:$0xff]  ;;  %v500_v10 = vld [vmem:[#allocation4 + $0x50] sm:$0xff]  ;;  %s4916_s12 = smov (!%p292_p1, %s2719_s12), 63 }
  0x37   : > { %704 = vmatpush.msra.mxu1 %v520_v3  ;;  %2742 = vmatpush.msra.mxu3 %v520_v3  ;;  %v516_v11 = vld [vmem:[#allocation4 + $0xd0] sm:$0xff]  ;;  %v499_v12 = vld [vmem:[#allocation4 + $0x48] sm:$0xff]  ;;  %v498_v14 = vld [vmem:[#allocation4 + $0x40] sm:$0xff]  ;;  %s2724_s14 = sshll.u32 %s4916_s12, 6 }
  0x38   : > { %592 = vmatpush.msra.mxu0 %v503_v4  ;;  %2727 = vmatpush.msra.mxu2 %v503_v4  ;;  %v515_v13 = vld [vmem:[#allocation4 + $0xc8] sm:$0xff]  ;;  %v514_v15 = vld [vmem:[#allocation4 + $0xc0] sm:$0xff]  ;;  %v497_v16 = vld [vmem:[#allocation4 + $0x38] sm:$0xff]  ;;  %s4015_s17 = scalar_lea.vmem %s4905_s5, %s2724_s14 }
  0x39   : > { %705 = vmatpush.msra.mxu1 %v519_v5  ;;  %2743 = vmatpush.msra.mxu3 %v519_v5  ;;  %v513_v17 = vld [vmem:[#allocation4 + $0xb8] sm:$0xff]  ;;  %v496_v18 = vld [vmem:[#allocation4 + $0x30] sm:$0xff]  ;;  %v495_v20 = vld [vmem:[#allocation4 + $0x28] sm:$0xff] }
  0x3a   : > { %593 = vmatpush.msra.mxu0 %v502_v6  ;;  %2728 = vmatpush.msra.mxu2 %v502_v6  ;;  %v512_v19 = vld [vmem:[#allocation4 + $0xb0] sm:$0xff]  ;;  %v511_v21 = vld [vmem:[#allocation4 + $0xa8] sm:$0xff]  ;;  %v494_v22 = vld [vmem:[#allocation4 + $0x20] sm:$0xff] }
  0x3b   : > { %706 = vmatpush.msra.mxu1 %v518_v7  ;;  %2744 = vmatpush.msra.mxu3 %v518_v7  ;;  %v510_v23 = vld [vmem:[#allocation4 + $0xa0] sm:$0xff]  ;;  %v493_v24 = vld [vmem:[#allocation4 + $0x18] sm:$0xff]  ;;  %v492_v26 = vld [vmem:[#allocation4 + $0x10] sm:$0xff] }
  0x3c   : > { %594 = vmatpush.msra.mxu0 %v501_v8  ;;  %2729 = vmatpush.msra.mxu2 %v501_v8  ;;  %v509_v25 = vld [vmem:[#allocation4 + $0x98] sm:$0xff]  ;;  %v508_v27 = vld [vmem:[#allocation4 + $0x90] sm:$0xff]  ;;  %v491_v28 = vld [vmem:[#allocation4 + $0x8] sm:$0xff] }
  0x3d   : > { %707 = vmatpush.msra.mxu1 %v517_v9  ;;  %2745 = vmatpush.msra.mxu3 %v517_v9  ;;  %v507_v29 = vld [vmem:[#allocation4 + $0x88] sm:$0xff]  ;;  %v490_v30 = vld [vmem:[#allocation4] sm:$0xff]  ;;  %v537_v36 = vld [vmem:[#allocation4 + $0x178] sm:$0xff] }
  0x3e   : > { %595 = vmatpush.msra.mxu0 %v500_v10  ;;  %2730 = vmatpush.msra.mxu2 %v500_v10  ;;  %v506_v31 = vld [vmem:[#allocation4 + $0x80] sm:$0xff]  ;;  %v299_v34 = vld [vmem:[%s3134_s18 + $0x8] sm:$0xff]  ;;  %v553_v37 = vld [vmem:[#allocation4 + $0x1f8] sm:$0xff] }
  0x3f   : > { %708 = vmatpush.msra.mxu1 %v516_v11  ;;  %2746 = vmatpush.msra.mxu3 %v516_v11  ;;  %v298_v32 = vld [vmem:[%s3134_s18] sm:$0xff]  ;;  %v395_v35 = vld [vmem:[%s3134_s18 + $0x308] sm:$0xff]  ;;  %v569_v38 = vld [vmem:[#allocation4 + $0x278] sm:$0xff] }
  0x40   : > { %596 = vmatpush.msra.mxu0 %v499_v12  ;;  %2731 = vmatpush.msra.mxu2 %v499_v12  ;;  %v394_v33 = vld [vmem:[%s3134_s18 + $0x300] sm:$0xff]  ;;  %v585_v39 = vld [vmem:[#allocation4 + $0x2f8] sm:$0xff]  ;;  %v536_v40 = vld [vmem:[#allocation4 + $0x170] sm:$0xff] }
  0x41   : > { %709 = vmatpush.msra.mxu1 %v515_v13  ;;  %2747 = vmatpush.msra.mxu3 %v515_v13  ;;  %v552_v41 = vld [vmem:[#allocation4 + $0x1f0] sm:$0xff]  ;;  %v535_v44 = vld [vmem:[#allocation4 + $0x168] sm:$0xff]  ;;  %v305_v50 = vld [vmem:[%s3134_s18 + $0x38] sm:$0xff] }
  0x42   : > { %597 = vmatpush.msra.mxu0 %v498_v14  ;;  %2732 = vmatpush.msra.mxu2 %v498_v14  ;;  %v568_v42 = vld [vmem:[#allocation4 + $0x270] sm:$0xff]  ;;  %v551_v45 = vld [vmem:[#allocation4 + $0x1e8] sm:$0xff]  ;;  %v401_v51 = vld [vmem:[%s3134_s18 + $0x338] sm:$0xff] }
  0x43   : > { %710 = vmatpush.msra.mxu1 %v514_v15  ;;  %2748 = vmatpush.msra.mxu3 %v514_v15  ;;  %v584_v43 = vld [vmem:[#allocation4 + $0x2f0] sm:$0xff]  ;;  %v567_v46 = vld [vmem:[#allocation4 + $0x268] sm:$0xff]  ;;  %v534_v52 = vld [vmem:[#allocation4 + $0x160] sm:$0xff] }
  0x44   : > { %598 = vmatpush.msra.mxu0 %v497_v16  ;;  %2733 = vmatpush.msra.mxu2 %v497_v16  ;;  %v583_v47 = vld [vmem:[#allocation4 + $0x2e8] sm:$0xff]  ;;  %v304_v48 = vld [vmem:[%s3134_s18 + $0x30] sm:$0xff]  ;;  %v550_v53 = vld [vmem:[#allocation4 + $0x1e0] sm:$0xff] }
  0x45   : > { %711 = vmatpush.msra.mxu1 %v513_v17  ;;  %2749 = vmatpush.msra.mxu3 %v513_v17  ;;  %v400_v49 = vld [vmem:[%s3134_s18 + $0x330] sm:$0xff]  ;;  %v566_v54 = vld [vmem:[#allocation4 + $0x260] sm:$0xff]  ;;  %v533_v56 = vld [vmem:[#allocation4 + $0x158] sm:$0xff] }
  0x46   : > { %599 = vmatpush.msra.mxu0 %v496_v18  ;;  %2734 = vmatpush.msra.mxu2 %v496_v18  ;;  %v582_v55 = vld [vmem:[#allocation4 + $0x2e0] sm:$0xff]  ;;  %v549_v57 = vld [vmem:[#allocation4 + $0x1d8] sm:$0xff]  ;;  %v532_v60 = vld [vmem:[#allocation4 + $0x150] sm:$0xff] }
  0x47   : > { %712 = vmatpush.msra.mxu1 %v512_v19  ;;  %2750 = vmatpush.msra.mxu3 %v512_v19  ;;  %v565_v58 = vld [vmem:[#allocation4 + $0x258] sm:$0xff]  ;;  %v548_v61 = vld [vmem:[#allocation4 + $0x1d0] sm:$0xff]  ;;  %v310_v0 = vld [vmem:[%s3134_s18 + $0x60] sm:$0xff] }
  0x48   : > { %600 = vmatpush.msra.mxu0 %v495_v20  ;;  %2735 = vmatpush.msra.mxu2 %v495_v20  ;;  %v581_v59 = vld [vmem:[#allocation4 + $0x2d8] sm:$0xff]  ;;  %v564_v62 = vld [vmem:[#allocation4 + $0x250] sm:$0xff]  ;;  %v406_v1 = vld [vmem:[%s3134_s18 + $0x360] sm:$0xff] }
  0x49   : > { %713 = vmatpush.msra.mxu1 %v511_v21  ;;  %2751 = vmatpush.msra.mxu3 %v511_v21  ;;  %v580_v63 = vld [vmem:[#allocation4 + $0x2d0] sm:$0xff]  ;;  %v311_v2 = vld [vmem:[%s3134_s18 + $0x68] sm:$0xff]  ;;  %v317_v10 = vld [vmem:[%s3134_s18 + $0x98] sm:$0xff] }
  0x4a   : > { %601 = vmatpush.msra.mxu0 %v494_v22  ;;  %2736 = vmatpush.msra.mxu2 %v494_v22  ;;  %v407_v3 = vld [vmem:[%s3134_s18 + $0x368] sm:$0xff]  ;;  %v316_v8 = vld [vmem:[%s3134_s18 + $0x90] sm:$0xff]  ;;  %v413_v11 = vld [vmem:[%s3134_s18 + $0x398] sm:$0xff] }
  0x4b   : > { %714 = vmatpush.msra.mxu1 %v510_v23  ;;  %2752 = vmatpush.msra.mxu3 %v510_v23  ;;  %v531_v4 = vld [vmem:[#allocation4 + $0x148] sm:$0xff]  ;;  %v412_v9 = vld [vmem:[%s3134_s18 + $0x390] sm:$0xff]  ;;  %v530_v12 = vld [vmem:[#allocation4 + $0x140] sm:$0xff] }
  0x4c   : > { %602 = vmatpush.msra.mxu0 %v493_v24  ;;  %2737 = vmatpush.msra.mxu2 %v493_v24  ;;  %v547_v5 = vld [vmem:[#allocation4 + $0x1c8] sm:$0xff]  ;;  %v546_v13 = vld [vmem:[#allocation4 + $0x1c0] sm:$0xff]  ;;  %v529_v20 = vld [vmem:[#allocation4 + $0x138] sm:$0xff] }
  0x4d   : > { %715 = vmatpush.msra.mxu1 %v509_v25  ;;  %2753 = vmatpush.msra.mxu3 %v509_v25  ;;  %v563_v6 = vld [vmem:[#allocation4 + $0x248] sm:$0xff]  ;;  %v562_v14 = vld [vmem:[#allocation4 + $0x240] sm:$0xff]  ;;  %v545_v21 = vld [vmem:[#allocation4 + $0x1b8] sm:$0xff] }
  0x4e   : > { %603 = vmatpush.msra.mxu0 %v492_v26  ;;  %2738 = vmatpush.msra.mxu2 %v492_v26  ;;  %v579_v7 = vld [vmem:[#allocation4 + $0x2c8] sm:$0xff]  ;;  %v578_v15 = vld [vmem:[#allocation4 + $0x2c0] sm:$0xff]  ;;  %v561_v22 = vld [vmem:[#allocation4 + $0x238] sm:$0xff] }
  0x4f   : > { %716 = vmatpush.msra.mxu1 %v508_v27  ;;  %2754 = vmatpush.msra.mxu3 %v508_v27  ;;  %v322_v16 = vld [vmem:[%s3134_s18 + $0xc0] sm:$0xff]  ;;  %v323_v18 = vld [vmem:[%s3134_s18 + $0xc8] sm:$0xff]  ;;  %v577_v23 = vld [vmem:[#allocation4 + $0x2b8] sm:$0xff] }
  0x50   : > { %604 = vmatpush.msra.mxu0 %v491_v28  ;;  %2739 = vmatpush.msra.mxu2 %v491_v28  ;;  %v418_v17 = vld [vmem:[%s3134_s18 + $0x3c0] sm:$0xff]  ;;  %v419_v19 = vld [vmem:[%s3134_s18 + $0x3c8] sm:$0xff]  ;;  %v328_v24 = vld [vmem:[%s3134_s18 + $0xf0] sm:$0xff] }
  0x51   : > { %717 = vmatpush.msra.mxu1 %v507_v29  ;;  %2755 = vmatpush.msra.mxu3 %v507_v29  ;;  %v424_v25 = vld [vmem:[%s3134_s18 + $0x3f0] sm:$0xff]  ;;  %v329_v26 = vld [vmem:[%s3134_s18 + $0xf8] sm:$0xff] }
  0x52   : > { %605 = vmatpush.msra.mxu0 %v490_v30  ;;  %2740 = vmatpush.msra.mxu2 %v490_v30  ;;  %v425_v27 = vld [vmem:[%s3134_s18 + $0x3f8] sm:$0xff]  ;;  %v528_v28 = vld [vmem:[#allocation4 + $0x130] sm:$0xff] }
  0x53   : > { %718 = vmatpush.msra.mxu1 %v506_v31  ;;  %2756 = vmatpush.msra.mxu3 %v506_v31  ;;  %v544_v29 = vld [vmem:[#allocation4 + $0x1b0] sm:$0xff] }
  0x54   : > { %606 = vmatmul.f32.vlgmr.msra.gmra.mxu0 %v298_v32  ;;  %654 = vmatmul.f32.vlgmr.msra.gmra.mxu2 %v394_v33  ;;  %v560_v30 = vld [vmem:[#allocation4 + $0x230] sm:$0xff]  ;;  %v334_v32 = vld [vmem:[%s3134_s18 + $0x120] sm:$0xff] }
  0x55   : > { %719 = vmatmul.f32.vlgmr.msra.gmra.mxu1 %v299_v34  ;;  %767 = vmatmul.f32.vlgmr.msra.gmra.mxu3 %v395_v35  ;;  %v576_v31 = vld [vmem:[#allocation4 + $0x2b0] sm:$0xff]  ;;  %v430_v33 = vld [vmem:[%s3134_s18 + $0x420] sm:$0xff]  ;;  %v335_v34 = vld [vmem:[%s3134_s18 + $0x128] sm:$0xff] }
  0x56   : > { %816 = vmatpush.msrb.mxu2 %v537_v36  ;;  %929 = vmatpush.msrb.mxu3 %v553_v37  ;;  %v431_v35 = vld [vmem:[%s3134_s18 + $0x428] sm:$0xff] }
  0x57   : > { %1042 = vmatpush.msrb.mxu0 %v569_v38  ;;  %1155 = vmatpush.msrb.mxu1 %v585_v39  ;;  %v527_v36 = vld [vmem:[#allocation4 + $0x128] sm:$0xff] }
  0x58   : > { %817 = vmatpush.msrb.mxu2 %v536_v40  ;;  %930 = vmatpush.msrb.mxu3 %v552_v41  ;;  %v543_v37 = vld [vmem:[#allocation4 + $0x1a8] sm:$0xff]  ;;  %v340_v40 = vld [vmem:[%s3134_s18 + $0x150] sm:$0xff] }
  0x59   : > { %1043 = vmatpush.msrb.mxu0 %v568_v42  ;;  %1156 = vmatpush.msrb.mxu1 %v584_v43  ;;  %v559_v38 = vld [vmem:[#allocation4 + $0x228] sm:$0xff]  ;;  %v436_v41 = vld [vmem:[%s3134_s18 + $0x450] sm:$0xff]  ;;  %v341_v42 = vld [vmem:[%s3134_s18 + $0x158] sm:$0xff] }
  0x5a   : > { %818 = vmatpush.msrb.mxu2 %v535_v44  ;;  %931 = vmatpush.msrb.mxu3 %v551_v45  ;;  %v575_v39 = vld [vmem:[#allocation4 + $0x2a8] sm:$0xff]  ;;  %v437_v43 = vld [vmem:[%s3134_s18 + $0x458] sm:$0xff]  ;;  %v526_v44 = vld [vmem:[#allocation4 + $0x120] sm:$0xff] }
  0x5b   : > { %1044 = vmatpush.msrb.mxu0 %v567_v46  ;;  %1157 = vmatpush.msrb.mxu1 %v583_v47  ;;  %v542_v45 = vld [vmem:[#allocation4 + $0x1a0] sm:$0xff] }
  0x5c   : > { %609 = vmatmul.f32.gmra.mxu0 %v304_v48  ;;  %657 = vmatmul.f32.gmra.mxu2 %v400_v49  ;;  %v558_v46 = vld [vmem:[#allocation4 + $0x220] sm:$0xff] }
  0x5d   : > { %722 = vmatmul.f32.gmra.mxu1 %v305_v50  ;;  %770 = vmatmul.f32.gmra.mxu3 %v401_v51  ;;  %v574_v47 = vld [vmem:[#allocation4 + $0x2a0] sm:$0xff]  ;;  %v347_v50 = vld [vmem:[%s3134_s18 + $0x188] sm:$0xff] }
  0x5e   : > { %819 = vmatpush.msrb.mxu2 %v534_v52  ;;  %932 = vmatpush.msrb.mxu3 %v550_v53  ;;  %v346_v48 = vld [vmem:[%s3134_s18 + $0x180] sm:$0xff]  ;;  %v443_v51 = vld [vmem:[%s3134_s18 + $0x488] sm:$0xff]  ;;  %v525_v52 = vld [vmem:[#allocation4 + $0x118] sm:$0xff] }
  0x5f   : > { %1045 = vmatpush.msrb.mxu0 %v566_v54  ;;  %1158 = vmatpush.msrb.mxu1 %v582_v55  ;;  %v442_v49 = vld [vmem:[%s3134_s18 + $0x480] sm:$0xff]  ;;  %v541_v53 = vld [vmem:[#allocation4 + $0x198] sm:$0xff] }
  0x60   : > { %820 = vmatpush.msrb.mxu2 %v533_v56  ;;  %933 = vmatpush.msrb.mxu3 %v549_v57  ;;  %v557_v54 = vld [vmem:[#allocation4 + $0x218] sm:$0xff]  ;;  %v352_v56 = vld [vmem:[%s3134_s18 + $0x1b0] sm:$0xff] }
  0x61   : > { %1046 = vmatpush.msrb.mxu0 %v565_v58  ;;  %1159 = vmatpush.msrb.mxu1 %v581_v59  ;;  %v573_v55 = vld [vmem:[#allocation4 + $0x298] sm:$0xff]  ;;  %v448_v57 = vld [vmem:[%s3134_s18 + $0x4b0] sm:$0xff] }
  0x62   : > { %821 = vmatpush.msrb.mxu2 %v532_v60  ;;  %934 = vmatpush.msrb.mxu3 %v548_v61  ;;  %v353_v58 = vld [vmem:[%s3134_s18 + $0x1b8] sm:$0xff]  ;;  %v524_v60 = vld [vmem:[#allocation4 + $0x110] sm:$0xff] }
  0x63   : > { %1047 = vmatpush.msrb.mxu0 %v564_v62  ;;  %1160 = vmatpush.msrb.mxu1 %v580_v63  ;;  %v449_v59 = vld [vmem:[%s3134_s18 + $0x4b8] sm:$0xff]  ;;  %v540_v61 = vld [vmem:[#allocation4 + $0x190] sm:$0xff] }
  0x64   : > { %612 = vmatmul.f32.gmra.mxu0 %v310_v0  ;;  %660 = vmatmul.f32.gmra.mxu2 %v406_v1  ;;  %v556_v62 = vld [vmem:[#allocation4 + $0x210] sm:$0xff]  ;;  %v358_v0 = vld [vmem:[%s3134_s18 + $0x1e0] sm:$0xff] }
  0x65   : > { %725 = vmatmul.f32.gmra.mxu1 %v311_v2  ;;  %773 = vmatmul.f32.gmra.mxu3 %v407_v3  ;;  %v572_v63 = vld [vmem:[#allocation4 + $0x290] sm:$0xff]  ;;  %v454_v1 = vld [vmem:[%s3134_s18 + $0x4e0] sm:$0xff]  ;;  %v359_v2 = vld [vmem:[%s3134_s18 + $0x1e8] sm:$0xff] }
  0x66   : > { %822 = vmatpush.msrb.mxu2 %v531_v4  ;;  %935 = vmatpush.msrb.mxu3 %v547_v5  ;;  %v455_v3 = vld [vmem:[%s3134_s18 + $0x4e8] sm:$0xff] }
  0x67   : > { %1048 = vmatpush.msrb.mxu0 %v563_v6  ;;  %1161 = vmatpush.msrb.mxu1 %v579_v7  ;;  %v523_v4 = vld [vmem:[#allocation4 + $0x108] sm:$0xff] }
  0x68   : > { %823 = vmatpush.msrb.mxu2 %v530_v12  ;;  %936 = vmatpush.msrb.mxu3 %v546_v13  ;;  %v539_v5 = vld [vmem:[#allocation4 + $0x188] sm:$0xff]  ;;  %v522_v12 = vld [vmem:[#allocation4 + $0x100] sm:$0xff] }
  0x69   : > { %1049 = vmatpush.msrb.mxu0 %v562_v14  ;;  %1162 = vmatpush.msrb.mxu1 %v578_v15  ;;  %v555_v6 = vld [vmem:[#allocation4 + $0x208] sm:$0xff]  ;;  %v538_v13 = vld [vmem:[#allocation4 + $0x180] sm:$0xff] }
  0x6a   : > { %824 = vmatpush.msrb.mxu2 %v529_v20  ;;  %937 = vmatpush.msrb.mxu3 %v545_v21  ;;  %v571_v7 = vld [vmem:[#allocation4 + $0x288] sm:$0xff]  ;;  %v370_v14 = vld [vmem:[%s3134_s18 + $0x240] sm:$0xff] }
  0x6b   : > { %1050 = vmatpush.msrb.mxu0 %v561_v22  ;;  %1163 = vmatpush.msrb.mxu1 %v577_v23  ;;  %v466_v15 = vld [vmem:[%s3134_s18 + $0x540] sm:$0xff]  ;;  %v1421_v21 = vld [vmem:[%s4903_s3 + $0x3c8] sm:$0xff]  ;;  %v376_v22 = vld [vmem:[%s3134_s18 + $0x270] sm:$0xff] }
  0x6c   : > { %615 = vmatmul.f32.gmra.mxu0 %v316_v8  ;;  %663 = vmatmul.f32.gmra.mxu2 %v412_v9  ;;  %v364_v8 = vld [vmem:[%s3134_s18 + $0x210] sm:$0xff]  ;;  %v1420_v20 = vld [vmem:[%s4903_s3 + $0x3c0] sm:$0xff] }
  0x6d   : > { %728 = vmatmul.f32.gmra.mxu1 %v317_v10  ;;  %776 = vmatmul.f32.gmra.mxu3 %v413_v11  ;;  %v460_v9 = vld [vmem:[%s3134_s18 + $0x510] sm:$0xff]  ;;  %v365_v10 = vld [vmem:[%s3134_s18 + $0x218] sm:$0xff] }
  0x6e   : > { %825 = vmatpush.msrb.mxu2 %v528_v28  ;;  %938 = vmatpush.msrb.mxu3 %v544_v29  ;;  %v461_v11 = vld [vmem:[%s3134_s18 + $0x518] sm:$0xff]  ;;  %v472_v23 = vld [vmem:[%s3134_s18 + $0x570] sm:$0xff]  ;;  %v382_v28 = vld [vmem:[%s3134_s18 + $0x2a0] sm:$0xff] }
  0x6f   : > { %1051 = vmatpush.msrb.mxu0 %v560_v30  ;;  %1164 = vmatpush.msrb.mxu1 %v576_v31  ;;  %v478_v29 = vld [vmem:[%s3134_s18 + $0x5a0] sm:$0xff]  ;;  %v383_v30 = vld [vmem:[%s3134_s18 + $0x2a8] sm:$0xff] }
  0x70   : > { %826 = vmatpush.msrb.mxu2 %v527_v36  ;;  %939 = vmatpush.msrb.mxu3 %v543_v37  ;;  %v479_v31 = vld [vmem:[%s3134_s18 + $0x5a8] sm:$0xff]  ;;  %v389_v36 = vld [vmem:[%s3134_s18 + $0x2d8] sm:$0xff] }
  0x71   : > { %1052 = vmatpush.msrb.mxu0 %v559_v38  ;;  %1165 = vmatpush.msrb.mxu1 %v575_v39  ;;  %v485_v37 = vld [vmem:[%s3134_s18 + $0x5d8] sm:$0xff]  ;;  %v1414_v38 = vld [vmem:[%s4903_s3 + $0x390] sm:$0xff] }
  0x72   : > { %827 = vmatpush.msrb.mxu2 %v526_v44  ;;  %940 = vmatpush.msrb.mxu3 %v542_v45  ;;  %v1415_v39 = vld [vmem:[%s4903_s3 + $0x398] sm:$0xff]  ;;  %v303_v45 = vld [vmem:[%s3134_s18 + $0x28] sm:$0xff] }
  0x73   : > { %1053 = vmatpush.msrb.mxu0 %v558_v46  ;;  %1166 = vmatpush.msrb.mxu1 %v574_v47  ;;  %v301_v44 = vld [vmem:[%s3134_s18 + $0x18] sm:$0xff]  ;;  %v1404_v46 = vld [vmem:[%s4903_s3 + $0x340] sm:$0xff]  ;;  %v1405_v47 = vld [vmem:[%s4903_s3 + $0x348] sm:$0xff] }
  0x74   : > { %618 = vmatmul.f32.gmra.mxu0 %v322_v16  ;;  %666 = vmatmul.f32.gmra.mxu2 %v418_v17  ;;  %v371_v16 = vld [vmem:[%s3134_s18 + $0x248] sm:$0xff] }
  0x75   : > { %731 = vmatmul.f32.gmra.mxu1 %v323_v18  ;;  %779 = vmatmul.f32.gmra.mxu3 %v419_v19  ;;  %v467_v17 = vld [vmem:[%s3134_s18 + $0x548] sm:$0xff]  ;;  %v554_v18 = vld [vmem:[#allocation4 + $0x200] sm:$0xff] }
  0x76   : > { %828 = vmatpush.msrb.mxu2 %v525_v52  ;;  %941 = vmatpush.msrb.mxu3 %v541_v53  ;;  %v570_v19 = vld [vmem:[#allocation4 + $0x280] sm:$0xff] }
  0x77   : > { %1054 = vmatpush.msrb.mxu0 %v557_v54  ;;  %1167 = vmatpush.msrb.mxu1 %v573_v55  ;;  %v306_v53 = vld [vmem:[%s3134_s18 + $0x40] sm:$0xff]  ;;  %v308_v54 = vld [vmem:[%s3134_s18 + $0x50] sm:$0xff] }
  0x78   : > { %829 = vmatpush.msrb.mxu2 %v524_v60  ;;  %942 = vmatpush.msrb.mxu3 %v540_v61  ;;  %v1407_v60 = vld [vmem:[%s4903_s3 + $0x358] sm:$0xff] }
  0x79   : > { %1055 = vmatpush.msrb.mxu0 %v556_v62  ;;  %1168 = vmatpush.msrb.mxu1 %v572_v63 }
  0x7a   : > { %830 = vmatpush.msrb.mxu2 %v523_v4  ;;  %943 = vmatpush.msrb.mxu3 %v539_v5  ;;  %v313_v5 = vld [vmem:[%s3134_s18 + $0x78] sm:$0xff] }
  0x7b   : > { %1056 = vmatpush.msrb.mxu0 %v555_v6  ;;  %1169 = vmatpush.msrb.mxu1 %v571_v7  ;;  %v315_v6 = vld [vmem:[%s3134_s18 + $0x88] sm:$0xff]  ;;  %v1396_v7 = vld [vmem:[%s4903_s3 + $0x300] sm:$0xff] }
  0x7c   : > { %621 = vmatmul.f32.gmra.mxu0 %v328_v24  ;;  %669 = vmatmul.f32.gmra.mxu2 %v424_v25  ;;  %v377_v24 = vld [vmem:[%s3134_s18 + $0x278] sm:$0xff] }
  0x7d   : > { %734 = vmatmul.f32.gmra.mxu1 %v329_v26  ;;  %782 = vmatmul.f32.gmra.mxu3 %v425_v27  ;;  %v473_v25 = vld [vmem:[%s3134_s18 + $0x578] sm:$0xff]  ;;  %v1422_v26 = vld [vmem:[%s4903_s3 + $0x3d0] sm:$0xff] }
  0x7e   : > { %831 = vmatpush.msrb.mxu2 %v522_v12  ;;  %944 = vmatpush.msrb.mxu3 %v538_v13  ;;  %v1423_v27 = vld [vmem:[%s4903_s3 + $0x3d8] sm:$0xff]  ;;  %v318_v13 = vld [vmem:[%s3134_s18 + $0xa0] sm:$0xff] }
  0x7f   : > { %1057 = vmatpush.msrb.mxu0 %v554_v18  ;;  %1170 = vmatpush.msrb.mxu1 %v570_v19  ;;  %v321_v18 = vld [vmem:[%s3134_s18 + $0xb8] sm:$0xff]  ;;  %v1398_v19 = vld [vmem:[%s4903_s3 + $0x310] sm:$0xff] }
  0x80   : > { %1446 = vmatpush.msra.mxu2 %v1420_v20  ;;  %1559 = vmatpush.msra.mxu3 %v1421_v21  ;;  %v1399_v20 = vld [vmem:[%s4903_s3 + $0x318] sm:$0xff] }
  0x81   : > { %1672 = vmatpush.msra.mxu0 %v1422_v26  ;;  %1785 = vmatpush.msra.mxu1 %v1423_v27  ;;  %v326_v26 = vld [vmem:[%s3134_s18 + $0xe0] sm:$0xff] }
  0x83   : > { %1673 = vmatpush.msra.mxu0 %v1414_v38  ;;  %1786 = vmatpush.msra.mxu1 %v1415_v39  ;;  %v332_v38 = vld [vmem:[%s3134_s18 + $0x110] sm:$0xff] }
  0x84   : > { %624 = vmatmul.f32.gmra.mxu0 %v334_v32  ;;  %672 = vmatmul.f32.gmra.mxu2 %v430_v33  ;;  %v1412_v32 = vld [vmem:[%s4903_s3 + $0x380] sm:$0xff]  ;;  %v1413_v33 = vld [vmem:[%s4903_s3 + $0x388] sm:$0xff] }
  0x85   : > { %737 = vmatmul.f32.gmra.mxu1 %v335_v34  ;;  %785 = vmatmul.f32.gmra.mxu3 %v431_v35  ;;  %v388_v34 = vld [vmem:[%s3134_s18 + $0x2d0] sm:$0xff] }
  0x86   : > { %1447 = vmatpush.msra.mxu2 %v1412_v32  ;;  %1560 = vmatpush.msra.mxu3 %v1413_v33  ;;  %v484_v35 = vld [vmem:[%s3134_s18 + $0x5d0] sm:$0xff]  ;;  %v1389_v32 = vld [vmem:[%s4903_s3 + $0x2c8] sm:$0xff] }
  0x87   : > { %1787 = vmatpush.msra.mxu1 %v1407_v60  ;;  %v339_v60 = vld [vmem:[%s3134_s18 + $0x148] sm:$0xff] }
  0x88   : > { %1448 = vmatpush.msra.mxu2 %v1404_v46  ;;  %1561 = vmatpush.msra.mxu3 %v1405_v47  ;;  %v1391_v46 = vld [vmem:[%s4903_s3 + $0x2d8] sm:$0xff] }
  0x89   : > { %1788 = vmatpush.msra.mxu1 %v1399_v20 }
  0x8a   : > { %1449 = vmatpush.msra.mxu2 %v1396_v7  ;;  %v344_v7 = vld [vmem:[%s3134_s18 + $0x170] sm:$0xff] }
  0x8b   : > { %1789 = vmatpush.msra.mxu1 %v1391_v46  ;;  %v357_v46 = vld [vmem:[%s3134_s18 + $0x1d8] sm:$0xff] }
  0x8c   : > { %627 = vmatmul.f32.gmra.mxu0 %v340_v40  ;;  %675 = vmatmul.f32.gmra.mxu2 %v436_v41  ;;  %v300_v41 = vld [vmem:[%s3134_s18 + $0x10] sm:$0xff] }
  0x8d   : > { %740 = vmatmul.f32.gmra.mxu1 %v341_v42  ;;  %788 = vmatmul.f32.gmra.mxu3 %v437_v43  ;;  %v302_v42 = vld [vmem:[%s3134_s18 + $0x20] sm:$0xff] }
  0x94   : > { %630 = vmatmul.f32.gmra.mxu0 %v346_v48  ;;  %678 = vmatmul.f32.gmra.mxu2 %v442_v49  ;;  %v3250_v48 = vld [vmem:[#allocation6] ss:$0 sm:$0xff] }
  0x95   : > { %743 = vmatmul.f32.gmra.mxu1 %v347_v50  ;;  %791 = vmatmul.f32.gmra.mxu3 %v443_v51 }
  0x9c   : > { %633 = vmatmul.f32.gmra.mxu0 %v352_v56  ;;  %681 = vmatmul.f32.gmra.mxu2 %v448_v57  ;;  %v307_v57 = vld [vmem:[%s3134_s18 + $0x48] sm:$0xff] }
  0x9d   : > { %746 = vmatmul.f32.gmra.mxu1 %v353_v58  ;;  %794 = vmatmul.f32.gmra.mxu3 %v449_v59  ;;  %v309_v58 = vld [vmem:[%s3134_s18 + $0x58] sm:$0xff]  ;;  %v1406_v59 = vld [vmem:[%s4903_s3 + $0x350] sm:$0xff] }
  0x9e   : > { %1674 = vmatpush.msra.mxu0 %v1406_v59  ;;  %v337_v59 = vld [vmem:[%s3134_s18 + $0x138] sm:$0xff] }
  0xa0   : > { %1675 = vmatpush.msra.mxu0 %v1398_v19 }
  0xa4   : > { %636 = vmatmul.f32.gmra.mxu0 %v358_v0  ;;  %684 = vmatmul.f32.gmra.mxu2 %v454_v1  ;;  %v312_v1 = vld [vmem:[%s3134_s18 + $0x70] sm:$0xff] }
  0xa5   : > { %749 = vmatmul.f32.gmra.mxu1 %v359_v2  ;;  %797 = vmatmul.f32.gmra.mxu3 %v455_v3  ;;  %v314_v2 = vld [vmem:[%s3134_s18 + $0x80] sm:$0xff] }
  0xac   : > { %639 = vmatmul.f32.gmra.mxu0 %v364_v8  ;;  %687 = vmatmul.f32.gmra.mxu2 %v460_v9  ;;  %v1397_v8 = vld [vmem:[%s4903_s3 + $0x308] sm:$0xff] }
  0xad   : > { %752 = vmatmul.f32.gmra.mxu1 %v365_v10  ;;  %800 = vmatmul.f32.gmra.mxu3 %v461_v11 }
  0xae   : > { %1562 = vmatpush.msra.mxu3 %v1397_v8 }
  0xb0   : > { %1563 = vmatpush.msra.mxu3 %v1389_v32 }
  0xb4   : > { %642 = vmatmul.f32.gmra.mxu0 %v370_v14  ;;  %690 = vmatmul.f32.gmra.mxu2 %v466_v15  ;;  %v320_v14 = vld [vmem:[%s3134_s18 + $0xb0] sm:$0xff] }
  0xb5   : > { %755 = vmatmul.f32.gmra.mxu1 %v371_v16  ;;  %803 = vmatmul.f32.gmra.mxu3 %v467_v17  ;;  %v319_v17 = vld [vmem:[%s3134_s18 + $0xa8] sm:$0xff] }
  0xbc   : > { %645 = vmatmul.f32.gmra.mxu0 %v376_v22  ;;  %693 = vmatmul.f32.gmra.mxu2 %v472_v23 }
  0xbd   : > { %758 = vmatmul.f32.gmra.mxu1 %v377_v24  ;;  %806 = vmatmul.f32.gmra.mxu3 %v473_v25  ;;  %v324_v25 = vld [vmem:[%s3134_s18 + $0xd0] sm:$0xff] }
  0xc4   : > { %648 = vmatmul.f32.gmra.mxu0 %v382_v28  ;;  %696 = vmatmul.f32.gmra.mxu2 %v478_v29  ;;  %v325_v29 = vld [vmem:[%s3134_s18 + $0xd8] sm:$0xff] }
  0xc5   : > { %761 = vmatmul.f32.gmra.mxu1 %v383_v30  ;;  %809 = vmatmul.f32.gmra.mxu3 %v479_v31  ;;  %v327_v30 = vld [vmem:[%s3134_s18 + $0xe8] sm:$0xff]  ;;  %v1388_v31 = vld [vmem:[%s4903_s3 + $0x2c0] sm:$0xff] }
  0xc6   : > { %1450 = vmatpush.msra.mxu2 %v1388_v31  ;;  %v1373_v31 = vld [vmem:[%s4903_s3 + $0x248] sm:$0xff] }
  0xcc   : > { %651 = vmatmul.f32.gmra.mxu0 %v388_v34  ;;  %699 = vmatmul.f32.gmra.mxu2 %v484_v35 }
  0xcd   : > { %764 = vmatmul.f32.gmra.mxu1 %v389_v36  ;;  %812 = vmatmul.f32.gmra.mxu3 %v485_v37  ;;  %v330_v37 = vld [vmem:[%s3134_s18 + $0x100] sm:$0xff] }
  0xd1   : > { %v3236_v40 = vpop.f32.mrf.mxu0 }
  0xd2   : > { %v3240_v43 = vpop.f32.mrf.mxu1 }
  0xd4   : > { %832 = vmatmul.f32.vlgmr.msrb.gmra.mxu2 %v300_v41  ;;  %1058 = vmatmul.f32.vlgmr.msrb.gmra.mxu0 %v302_v42  ;;  %v331_v42 = vld [vmem:[%s3134_s18 + $0x108] sm:$0xff] }
  0xd5   : > { %945 = vmatmul.f32.vlgmr.msrb.gmra.mxu3 %v301_v44  ;;  %1171 = vmatmul.f32.vlgmr.msrb.gmra.mxu1 %v303_v45  ;;  %v333_v44 = vld [vmem:[%s3134_s18 + $0x118] sm:$0xff]  ;;  %v1390_v45 = vld [vmem:[%s4903_s3 + $0x2d0] sm:$0xff] }
  0xd6   : > { %1676 = vmatpush.msra.mxu0 %v1390_v45  ;;  %v355_v45 = vld [vmem:[%s3134_s18 + $0x1c8] sm:$0xff] }
  0xd7   : > { %v655_v49 = vpop.f32.mrf.mxu2 }
  0xd8   : > { %v656_v50 = vadd.f32 %v3250_v48, %v655_v49  ;;  %v768_v51 = vpop.f32.mrf.mxu3 }
  0xd9   : > { %v3253_v52 = vpop.f32.mrf.mxu0 }
  0xda   : > { %v3257_v55 = vadd.f32 %v768_v51, %v656_v50  ;;  %v3259_v56 = vpop.f32.mrf.mxu1 }
  0xdc   : > { %835 = vmatmul.f32.gmra.mxu2 %v306_v53  ;;  %1061 = vmatmul.f32.gmra.mxu0 %v308_v54  ;;  %v336_v53 = vld [vmem:[%s3134_s18 + $0x130] sm:$0xff]  ;;  %v338_v54 = vld [vmem:[%s3134_s18 + $0x140] sm:$0xff] }
  0xdd   : > { %948 = vmatmul.f32.gmra.mxu3 %v307_v57  ;;  %1174 = vmatmul.f32.gmra.mxu1 %v309_v58 }
  0xdf   : > { %v658_v61 = vpop.f32.mrf.mxu2 }
  0xe0   : > { %v659_v62 = vadd.f32 %v3250_v48, %v658_v61  ;;  %v771_v63 = vpop.f32.mrf.mxu3  ;;  %v1380_v61 = vld [vmem:[%s4903_s3 + $0x280] sm:$0xff] }
  0xe1   : > { %v3270_v0 = vpop.f32.mrf.mxu0  ;;  %1451 = vmatpush.msra.mxu2 %v1380_v61  ;;  %v362_v61 = vld [vmem:[%s3134_s18 + $0x200] sm:$0xff] }
  0xe2   : > { %v3274_v3 = vadd.f32 %v771_v63, %v659_v62  ;;  %v3276_v4 = vpop.f32.mrf.mxu1  ;;  %v1381_v62 = vld [vmem:[%s4903_s3 + $0x288] sm:$0xff] }
  0xe3   : > { %1564 = vmatpush.msra.mxu3 %v1381_v62 }
  0xe4   : > { %838 = vmatmul.f32.gmra.mxu2 %v312_v1  ;;  %1064 = vmatmul.f32.gmra.mxu0 %v314_v2 }
  0xe5   : > { %951 = vmatmul.f32.gmra.mxu3 %v313_v5  ;;  %1177 = vmatmul.f32.gmra.mxu1 %v315_v6  ;;  %v342_v6 = vld [vmem:[%s3134_s18 + $0x160] sm:$0xff] }
  0xe6   : > { %1565 = vmatpush.msra.mxu3 %v1373_v31 }
  0xe7   : > { %v661_v9 = vpop.f32.mrf.mxu2 }
  0xe8   : > { %v662_v10 = vadd.f32 %v3250_v48, %v661_v9  ;;  %v774_v11 = vpop.f32.mrf.mxu3 }
  0xe9   : > { %v3287_v12 = vpop.f32.mrf.mxu0 }
  0xea   : > { %v3291_v15 = vadd.f32 %v774_v11, %v662_v10  ;;  %v3293_v16 = vpop.f32.mrf.mxu1  ;;  %v343_v10 = vld [vmem:[%s3134_s18 + $0x168] sm:$0xff]  ;;  %v345_v11 = vld [vmem:[%s3134_s18 + $0x178] sm:$0xff] }
  0xec   : > { %841 = vmatmul.f32.gmra.mxu2 %v318_v13  ;;  %1067 = vmatmul.f32.gmra.mxu0 %v320_v14  ;;  %v1382_v13 = vld [vmem:[%s4903_s3 + $0x290] sm:$0xff]  ;;  %v1383_v14 = vld [vmem:[%s4903_s3 + $0x298] sm:$0xff] }
  0xed   : > { %954 = vmatmul.f32.gmra.mxu3 %v319_v17  ;;  %1180 = vmatmul.f32.gmra.mxu1 %v321_v18 }
  0xee   : > { %1677 = vmatpush.msra.mxu0 %v1382_v13  ;;  %1790 = vmatpush.msra.mxu1 %v1383_v14 }
  0xef   : > { %v664_v21 = vpop.f32.mrf.mxu2 }
  0xf0   : > { %v665_v22 = vadd.f32 %v3250_v48, %v664_v21  ;;  %v777_v23 = vpop.f32.mrf.mxu3  ;;  %v348_v21 = vld [vmem:[%s3134_s18 + $0x190] sm:$0xff] }
  0xf1   : > { %v3304_v24 = vpop.f32.mrf.mxu0 }
  0xf2   : > { %v3308_v27 = vadd.f32 %v777_v23, %v665_v22  ;;  %v3310_v28 = vpop.f32.mrf.mxu1  ;;  %v350_v22 = vld [vmem:[%s3134_s18 + $0x1a0] sm:$0xff] }
  0xf4   : > { %844 = vmatmul.f32.gmra.mxu2 %v324_v25  ;;  %1070 = vmatmul.f32.gmra.mxu0 %v326_v26  ;;  %v349_v26 = vld [vmem:[%s3134_s18 + $0x198] sm:$0xff] }
  0xf5   : > { %957 = vmatmul.f32.gmra.mxu3 %v325_v29  ;;  %1183 = vmatmul.f32.gmra.mxu1 %v327_v30  ;;  %v351_v29 = vld [vmem:[%s3134_s18 + $0x1a8] sm:$0xff]  ;;  %v1372_v30 = vld [vmem:[%s4903_s3 + $0x240] sm:$0xff] }
  0xf6   : > { %1452 = vmatpush.msra.mxu2 %v1372_v30  ;;  %v1367_v30 = vld [vmem:[%s4903_s3 + $0x218] sm:$0xff] }
  0xf7   : > { %v667_v33 = vpop.f32.mrf.mxu2 }
  0xf8   : > { %v668_v34 = vadd.f32 %v3250_v48, %v667_v33  ;;  %v780_v35 = vpop.f32.mrf.mxu3 }
  0xf9   : > { %v3321_v36 = vpop.f32.mrf.mxu0 }
  0xfa   : > { %v3325_v39 = vadd.f32 %v780_v35, %v668_v34  ;;  %v3327_v41 = vpop.f32.mrf.mxu1 }
  0xfc   : > { %847 = vmatmul.f32.gmra.mxu2 %v330_v37  ;;  %1073 = vmatmul.f32.gmra.mxu0 %v332_v38  ;;  %v354_v37 = vld [vmem:[%s3134_s18 + $0x1c0] sm:$0xff]  ;;  %v356_v38 = vld [vmem:[%s3134_s18 + $0x1d0] sm:$0xff] }
  0xfd   : > { %960 = vmatmul.f32.gmra.mxu3 %v331_v42  ;;  %1186 = vmatmul.f32.gmra.mxu1 %v333_v44 }
  0xff   : > { %v670_v47 = vpop.f32.mrf.mxu2 }
 0x100   : > { %v671_v49 = vadd.f32 %v3250_v48, %v670_v47  ;;  %v783_v50 = vpop.f32.mrf.mxu3  ;;  %v1374_v47 = vld [vmem:[%s4903_s3 + $0x250] sm:$0xff] }
 0x101   : > { %v3338_v51 = vpop.f32.mrf.mxu0  ;;  %1678 = vmatpush.msra.mxu0 %v1374_v47  ;;  %v373_v47 = vld [vmem:[%s3134_s18 + $0x258] sm:$0xff] }
 0x102   : > { %v3342_v57 = vadd.f32 %v783_v50, %v671_v49  ;;  %v3344_v58 = vpop.f32.mrf.mxu1  ;;  %v1375_v49 = vld [vmem:[%s4903_s3 + $0x258] sm:$0xff] }
 0x103   : > { %1791 = vmatpush.msra.mxu1 %v1375_v49  ;;  %v375_v49 = vld [vmem:[%s3134_s18 + $0x268] sm:$0xff] }
 0x104   : > { %850 = vmatmul.f32.gmra.mxu2 %v336_v53  ;;  %1076 = vmatmul.f32.gmra.mxu0 %v338_v54 }
 0x105   : > { %963 = vmatmul.f32.gmra.mxu3 %v337_v59  ;;  %1189 = vmatmul.f32.gmra.mxu1 %v339_v60  ;;  %v360_v60 = vld [vmem:[%s3134_s18 + $0x1f0] sm:$0xff] }
 0x106   : > { %1792 = vmatpush.msra.mxu1 %v1367_v30 }
 0x107   : > { %v673_v63 = vpop.f32.mrf.mxu2 }
 0x108   : > { %v674_v1 = vadd.f32 %v3250_v48, %v673_v63  ;;  %v786_v2 = vpop.f32.mrf.mxu3 }
 0x109   : > { %v3355_v5 = vpop.f32.mrf.mxu0 }
 0x10a   : > { %v3359_v8 = vadd.f32 %v786_v2, %v674_v1  ;;  %v3361_v9 = vpop.f32.mrf.mxu1  ;;  %v361_v1 = vld [vmem:[%s3134_s18 + $0x1f8] sm:$0xff]  ;;  %v363_v2 = vld [vmem:[%s3134_s18 + $0x208] sm:$0xff] }
 0x10c   : > { %853 = vmatmul.f32.gmra.mxu2 %v342_v6  ;;  %1079 = vmatmul.f32.gmra.mxu0 %v344_v7  ;;  %v1364_v6 = vld [vmem:[%s4903_s3 + $0x200] sm:$0xff]  ;;  %v1365_v7 = vld [vmem:[%s4903_s3 + $0x208] sm:$0xff] }
 0x10d   : > { %966 = vmatmul.f32.gmra.mxu3 %v343_v10  ;;  %1192 = vmatmul.f32.gmra.mxu1 %v345_v11 }
 0x10e   : > { %1453 = vmatpush.msra.mxu2 %v1364_v6  ;;  %1566 = vmatpush.msra.mxu3 %v1365_v7  ;;  %v380_v6 = vld [vmem:[%s3134_s18 + $0x290] sm:$0xff] }
 0x10f   : > { %v676_v17 = vpop.f32.mrf.mxu2 }
 0x110   : > { %v677_v18 = vadd.f32 %v3250_v48, %v676_v17  ;;  %v789_v19 = vpop.f32.mrf.mxu3  ;;  %v366_v17 = vld [vmem:[%s3134_s18 + $0x220] sm:$0xff] }
 0x111   : > { %v3372_v20 = vpop.f32.mrf.mxu0 }
 0x112   : > { %v3376_v23 = vadd.f32 %v789_v19, %v677_v18  ;;  %v3378_v25 = vpop.f32.mrf.mxu1  ;;  %v368_v18 = vld [vmem:[%s3134_s18 + $0x230] sm:$0xff] }
 0x114   : > { %856 = vmatmul.f32.gmra.mxu2 %v348_v21  ;;  %1082 = vmatmul.f32.gmra.mxu0 %v350_v22  ;;  %v367_v22 = vld [vmem:[%s3134_s18 + $0x228] sm:$0xff] }
 0x115   : > { %969 = vmatmul.f32.gmra.mxu3 %v349_v26  ;;  %1195 = vmatmul.f32.gmra.mxu1 %v351_v29  ;;  %v369_v26 = vld [vmem:[%s3134_s18 + $0x238] sm:$0xff]  ;;  %v1366_v29 = vld [vmem:[%s4903_s3 + $0x210] sm:$0xff] }
 0x116   : > { %1679 = vmatpush.msra.mxu0 %v1366_v29  ;;  %v1359_v29 = vld [vmem:[%s4903_s3 + $0x1d8] sm:$0xff] }
 0x117   : > { %v679_v32 = vpop.f32.mrf.mxu2  ;;  %1793 = vmatpush.msra.mxu1 %v1359_v29 }
 0x118   : > { %v680_v33 = vadd.f32 %v3250_v48, %v679_v32  ;;  %v792_v34 = vpop.f32.mrf.mxu3 }
 0x119   : > { %v3389_v35 = vpop.f32.mrf.mxu0 }
 0x11a   : > { %v3393_v42 = vadd.f32 %v792_v34, %v680_v33  ;;  %v3395_v44 = vpop.f32.mrf.mxu1 }
 0x11c   : > { %859 = vmatmul.f32.gmra.mxu2 %v354_v37  ;;  %1085 = vmatmul.f32.gmra.mxu0 %v356_v38  ;;  %v372_v37 = vld [vmem:[%s3134_s18 + $0x250] sm:$0xff]  ;;  %v374_v38 = vld [vmem:[%s3134_s18 + $0x260] sm:$0xff] }
 0x11d   : > { %972 = vmatmul.f32.gmra.mxu3 %v355_v45  ;;  %1198 = vmatmul.f32.gmra.mxu1 %v357_v46 }
 0x11f   : > { %v682_v50 = vpop.f32.mrf.mxu2 }
 0x120   : > { %v683_v53 = vadd.f32 %v3250_v48, %v682_v50  ;;  %v795_v54 = vpop.f32.mrf.mxu3  ;;  %v1356_v50 = vld [vmem:[%s4903_s3 + $0x1c0] sm:$0xff] }
 0x121   : > { %v3406_v59 = vpop.f32.mrf.mxu0  ;;  %1454 = vmatpush.msra.mxu2 %v1356_v50 }
 0x122   : > { %v3410_v62 = vadd.f32 %v795_v54, %v683_v53  ;;  %v3412_v63 = vpop.f32.mrf.mxu1  ;;  %v1357_v53 = vld [vmem:[%s4903_s3 + $0x1c8] sm:$0xff] }
 0x123   : > { %1567 = vmatpush.msra.mxu3 %v1357_v53 }
 0x124   : > { %862 = vmatmul.f32.gmra.mxu2 %v360_v60  ;;  %1088 = vmatmul.f32.gmra.mxu0 %v362_v61 }
 0x125   : > { %975 = vmatmul.f32.gmra.mxu3 %v361_v1  ;;  %1201 = vmatmul.f32.gmra.mxu1 %v363_v2  ;;  %v378_v2 = vld [vmem:[%s3134_s18 + $0x280] sm:$0xff] }
 0x127   : > { %v685_v10 = vpop.f32.mrf.mxu2 }
 0x128   : > { %v686_v11 = vadd.f32 %v3250_v48, %v685_v10  ;;  %v798_v13 = vpop.f32.mrf.mxu3 }
 0x129   : > { %v3423_v14 = vpop.f32.mrf.mxu0 }
 0x12a   : > { %v3427_v19 = vadd.f32 %v798_v13, %v686_v11  ;;  %v3429_v21 = vpop.f32.mrf.mxu1  ;;  %v379_v11 = vld [vmem:[%s3134_s18 + $0x288] sm:$0xff]  ;;  %v381_v13 = vld [vmem:[%s3134_s18 + $0x298] sm:$0xff] }
 0x12c   : > { %865 = vmatmul.f32.gmra.mxu2 %v366_v17  ;;  %1091 = vmatmul.f32.gmra.mxu0 %v368_v18 }
 0x12d   : > { %978 = vmatmul.f32.gmra.mxu3 %v367_v22  ;;  %1204 = vmatmul.f32.gmra.mxu1 %v369_v26  ;;  %v1358_v26 = vld [vmem:[%s4903_s3 + $0x1d0] sm:$0xff] }
 0x12e   : > { %1680 = vmatpush.msra.mxu0 %v1358_v26 }
 0x12f   : > { %v688_v31 = vpop.f32.mrf.mxu2 }
 0x130   : > { %v689_v32 = vadd.f32 %v3250_v48, %v688_v31  ;;  %v801_v33 = vpop.f32.mrf.mxu3  ;;  %v384_v31 = vld [vmem:[%s3134_s18 + $0x2b0] sm:$0xff] }
 0x131   : > { %v3440_v34 = vpop.f32.mrf.mxu0 }
 0x132   : > { %v3444_v45 = vadd.f32 %v801_v33, %v689_v32  ;;  %v3446_v46 = vpop.f32.mrf.mxu1  ;;  %v386_v32 = vld [vmem:[%s3134_s18 + $0x2c0] sm:$0xff] }
 0x134   : > { %868 = vmatmul.f32.gmra.mxu2 %v372_v37  ;;  %1094 = vmatmul.f32.gmra.mxu0 %v374_v38  ;;  %v385_v38 = vld [vmem:[%s3134_s18 + $0x2b8] sm:$0xff] }
 0x135   : > { %981 = vmatmul.f32.gmra.mxu3 %v373_v47  ;;  %1207 = vmatmul.f32.gmra.mxu1 %v375_v49  ;;  %v387_v47 = vld [vmem:[%s3134_s18 + $0x2c8] sm:$0xff] }
 0x137   : > { %v691_v54 = vpop.f32.mrf.mxu2 }
 0x138   : > { %v692_v60 = vadd.f32 %v3250_v48, %v691_v54  ;;  %v804_v61 = vpop.f32.mrf.mxu3  ;;  %v1348_v54 = vld [vmem:[%s4903_s3 + $0x180] sm:$0xff] }
 0x139   : > { %v3457_v1 = vpop.f32.mrf.mxu0  ;;  %1455 = vmatpush.msra.mxu2 %v1348_v54 }
 0x13a   : > { %v3461_v7 = vadd.f32 %v804_v61, %v692_v60  ;;  %v3463_v10 = vpop.f32.mrf.mxu1  ;;  %v1349_v60 = vld [vmem:[%s4903_s3 + $0x188] sm:$0xff] }
 0x13b   : > { %1568 = vmatpush.msra.mxu3 %v1349_v60  ;;  %v397_v60 = vld [vmem:[%s3134_s18 + $0x318] sm:$0xff] }
 0x13c   : > { %871 = vmatmul.f32.gmra.mxu2 %v378_v2  ;;  %1097 = vmatmul.f32.gmra.mxu0 %v380_v6  ;;  %v390_v2 = vld [vmem:[%s3134_s18 + $0x2e0] sm:$0xff]  ;;  %v392_v6 = vld [vmem:[%s3134_s18 + $0x2f0] sm:$0xff] }
 0x13d   : > { %984 = vmatmul.f32.gmra.mxu3 %v379_v11  ;;  %1210 = vmatmul.f32.gmra.mxu1 %v381_v13 }
 0x13f   : > { %v694_v17 = vpop.f32.mrf.mxu2 }
 0x140   : > { %v695_v18 = vadd.f32 %v3250_v48, %v694_v17  ;;  %v807_v22 = vpop.f32.mrf.mxu3  ;;  %v391_v17 = vld [vmem:[%s3134_s18 + $0x2e8] sm:$0xff] }
 0x141   : > { %v3474_v30 = vpop.f32.mrf.mxu0 }
 0x142   : > { %v3478_v33 = vadd.f32 %v807_v22, %v695_v18  ;;  %v3480_v37 = vpop.f32.mrf.mxu1  ;;  %v393_v18 = vld [vmem:[%s3134_s18 + $0x2f8] sm:$0xff] }
 0x144   : > { %874 = vmatmul.f32.gmra.mxu2 %v384_v31  ;;  %1100 = vmatmul.f32.gmra.mxu0 %v386_v32  ;;  %v1350_v31 = vld [vmem:[%s4903_s3 + $0x190] sm:$0xff]  ;;  %v1351_v32 = vld [vmem:[%s4903_s3 + $0x198] sm:$0xff] }
 0x145   : > { %987 = vmatmul.f32.gmra.mxu3 %v385_v38  ;;  %1213 = vmatmul.f32.gmra.mxu1 %v387_v47  ;;  %v396_v47 = vld [vmem:[%s3134_s18 + $0x310] sm:$0xff] }
 0x146   : > { %1681 = vmatpush.msra.mxu0 %v1350_v31  ;;  %1794 = vmatpush.msra.mxu1 %v1351_v32  ;;  %v402_v31 = vld [vmem:[%s3134_s18 + $0x340] sm:$0xff]  ;;  %v404_v32 = vld [vmem:[%s3134_s18 + $0x350] sm:$0xff] }
 0x147   : > { %v697_v49 = vpop.f32.mrf.mxu2 }
 0x148   : > { %v698_v50 = vadd.f32 %v3250_v48, %v697_v49  ;;  %v810_v53 = vpop.f32.mrf.mxu3  ;;  %v398_v49 = vld [vmem:[%s3134_s18 + $0x320] sm:$0xff] }
 0x149   : > { %v3491_v61 = vpop.f32.mrf.mxu0 }
 0x14a   : > { %v3495_v11 = vadd.f32 %v810_v53, %v698_v50  ;;  %v3497_v13 = vpop.f32.mrf.mxu1  ;;  %v608_v50 = vadd.f32 %v3250_v48, %v3236_v40  ;;  %v1340_v40 = vld [vmem:[%s4903_s3 + $0x140] sm:$0xff] }
 0x14b   : > { %1456 = vmatpush.msra.mxu2 %v1340_v40 }
 0x14c   : > { %877 = vmatmul.f32.gmra.mxu2 %v390_v2  ;;  %1103 = vmatmul.f32.gmra.mxu0 %v392_v6  ;;  %v399_v2 = vld [vmem:[%s3134_s18 + $0x328] sm:$0xff]  ;;  %v721_v6 = vadd.f32 %v3240_v43, %v608_v50 }
 0x14d   : > { %990 = vmatmul.f32.gmra.mxu3 %v391_v17  ;;  %1216 = vmatmul.f32.gmra.mxu1 %v393_v18  ;;  %v403_v50 = vld [vmem:[%s3134_s18 + $0x348] sm:$0xff] }
 0x14f   : > { %v700_v22 = vpop.f32.mrf.mxu2 }
 0x150   : > { %v701_v26 = vadd.f32 %v3250_v48, %v700_v22  ;;  %v813_v29 = vpop.f32.mrf.mxu3 }
 0x151   : > { %v1059_v38 = vpop.f32.mrf.mxu0 }
 0x152   : > { %v3512_v53 = vadd.f32 %v813_v29, %v701_v26  ;;  %v1172_v54 = vpop.f32.mrf.mxu1  ;;  %v1341_v26 = vld [vmem:[%s4903_s3 + $0x148] sm:$0xff] }
 0x153   : > { %1569 = vmatpush.msra.mxu3 %v1341_v26 }
 0x154   : > { %880 = vmatmul.f32.gmra.mxu2 %v396_v47  ;;  %1106 = vmatmul.f32.gmra.mxu0 %v398_v49  ;;  %v611_v47 = vadd.f32 %v3250_v48, %v3253_v52 }
 0x155   : > { %993 = vmatmul.f32.gmra.mxu3 %v397_v60  ;;  %1219 = vmatmul.f32.gmra.mxu1 %v399_v2  ;;  %v405_v60 = vld [vmem:[%s3134_s18 + $0x358] sm:$0xff] }
 0x157   : > { %v833_v17 = vpop.f32.mrf.mxu2 }
 0x158   : > { %v834_v18 = vadd.f32 %v833_v17, %v721_v6  ;;  %v946_v22 = vpop.f32.mrf.mxu3  ;;  %v724_v6 = vadd.f32 %v3259_v56, %v611_v47  ;;  %v614_v56 = vadd.f32 %v3250_v48, %v3270_v0 }
 0x159   : > { %v1062_v29 = vpop.f32.mrf.mxu0 }
 0x15a   : > { %v947_v43 = vadd.f32 %v946_v22, %v834_v18  ;;  %v1175_v49 = vpop.f32.mrf.mxu1  ;;  %v1342_v18 = vld [vmem:[%s4903_s3 + $0x150] sm:$0xff] }
 0x15b   : > { %1682 = vmatpush.msra.mxu0 %v1342_v18 }
 0x15c   : > { %v1060_v2 = vadd.f32 %v1059_v38, %v947_v43  ;;  %883 = vmatmul.f32.gmra.mxu2 %v402_v31  ;;  %1109 = vmatmul.f32.gmra.mxu0 %v404_v32  ;;  %v1343_v38 = vld [vmem:[%s4903_s3 + $0x158] sm:$0xff]  ;;  %v408_v31 = vld [vmem:[%s3134_s18 + $0x370] sm:$0xff]  ;;  %v410_v32 = vld [vmem:[%s3134_s18 + $0x380] sm:$0xff] }
 0x15d   : > { %996 = vmatmul.f32.gmra.mxu3 %v403_v50  ;;  %1222 = vmatmul.f32.gmra.mxu1 %v405_v60  ;;  %v409_v43 = vld [vmem:[%s3134_s18 + $0x378] sm:$0xff]  ;;  %v411_v50 = vld [vmem:[%s3134_s18 + $0x388] sm:$0xff] }
 0x15e   : > { %v3530_v17 = vadd.f32 %v1172_v54, %v1060_v2  ;;  %1795 = vmatpush.msra.mxu1 %v1343_v38  ;;  %v727_v2 = vadd.f32 %v3276_v4, %v614_v56  ;;  %v414_v38 = vld [vmem:[%s3134_s18 + $0x3a0] sm:$0xff]  ;;  %v617_v4 = vadd.f32 %v3250_v48, %v3287_v12  ;;  %v415_v56 = vld [vmem:[%s3134_s18 + $0x3a8] sm:$0xff] }
 0x15f   : > { %v836_v40 = vpop.f32.mrf.mxu2 }
 0x160   : > { %v837_v26 = vadd.f32 %v836_v40, %v724_v6  ;;  %v949_v52 = vpop.f32.mrf.mxu3 }
 0x161   : > { %v1065_v22 = vpop.f32.mrf.mxu0 }
 0x162   : > { %v950_v54 = vadd.f32 %v949_v52, %v837_v26  ;;  %v1178_v47 = vpop.f32.mrf.mxu1  ;;  %v1332_v26 = vld [vmem:[%s4903_s3 + $0x100] sm:$0xff] }
 0x163   : > { %1457 = vmatpush.msra.mxu2 %v1332_v26  ;;  %v420_v26 = vld [vmem:[%s3134_s18 + $0x3d0] sm:$0xff] }
 0x164   : > { %v1063_v60 = vadd.f32 %v1062_v29, %v950_v54  ;;  %886 = vmatmul.f32.gmra.mxu2 %v408_v31  ;;  %1112 = vmatmul.f32.gmra.mxu0 %v410_v32  ;;  %v1333_v29 = vld [vmem:[%s4903_s3 + $0x108] sm:$0xff]  ;;  %v416_v31 = vld [vmem:[%s3134_s18 + $0x3b0] sm:$0xff]  ;;  %v417_v54 = vld [vmem:[%s3134_s18 + $0x3b8] sm:$0xff] }
 0x165   : > { %999 = vmatmul.f32.gmra.mxu3 %v409_v43  ;;  %1225 = vmatmul.f32.gmra.mxu1 %v411_v50  ;;  %v730_v50 = vadd.f32 %v3293_v16, %v617_v4  ;;  %v620_v16 = vadd.f32 %v3250_v48, %v3304_v24  ;;  %v423_v4 = vld [vmem:[%s3134_s18 + $0x3e8] sm:$0xff] }
 0x166   : > { %v3545_v6 = vadd.f32 %v1175_v49, %v1063_v60  ;;  %1570 = vmatpush.msra.mxu3 %v1333_v29  ;;  %v422_v29 = vld [vmem:[%s3134_s18 + $0x3e0] sm:$0xff] }
 0x167   : > { %v839_v40 = vpop.f32.mrf.mxu2 }
 0x168   : > { %v840_v18 = vadd.f32 %v839_v40, %v727_v2  ;;  %v952_v0 = vpop.f32.mrf.mxu3 }
 0x169   : > { %v1068_v52 = vpop.f32.mrf.mxu0 }
 0x16a   : > { %v953_v49 = vadd.f32 %v952_v0, %v840_v18  ;;  %v1181_v32 = vpop.f32.mrf.mxu1  ;;  %v1334_v18 = vld [vmem:[%s4903_s3 + $0x110] sm:$0xff] }
 0x16b   : > { %1683 = vmatpush.msra.mxu0 %v1334_v18  ;;  %v428_v18 = vld [vmem:[%s3134_s18 + $0x410] sm:$0xff] }
 0x16c   : > { %v1066_v43 = vadd.f32 %v1065_v22, %v953_v49  ;;  %889 = vmatmul.f32.gmra.mxu2 %v414_v38  ;;  %1115 = vmatmul.f32.gmra.mxu0 %v416_v31  ;;  %v1335_v22 = vld [vmem:[%s4903_s3 + $0x118] sm:$0xff] }
 0x16d   : > { %1002 = vmatmul.f32.gmra.mxu3 %v415_v56  ;;  %1228 = vmatmul.f32.gmra.mxu1 %v417_v54  ;;  %v421_v31 = vld [vmem:[%s3134_s18 + $0x3d8] sm:$0xff]  ;;  %v733_v56 = vadd.f32 %v3310_v28, %v620_v16  ;;  %v623_v28 = vadd.f32 %v3250_v48, %v3321_v36 }
 0x16e   : > { %v3560_v60 = vadd.f32 %v1178_v47, %v1066_v43  ;;  %1796 = vmatpush.msra.mxu1 %v1335_v22 }
 0x16f   : > { %v842_v2 = vpop.f32.mrf.mxu2 }
 0x170   : > { %v843_v40 = vadd.f32 %v842_v2, %v730_v50  ;;  %v955_v12 = vpop.f32.mrf.mxu3  ;;  %v1324_v2 = vld [vmem:[%s4903_s3 + $0xc0] sm:$0xff] }
 0x171   : > { %v1071_v0 = vpop.f32.mrf.mxu0  ;;  %1458 = vmatpush.msra.mxu2 %v1324_v2 }
 0x172   : > { %v956_v47 = vadd.f32 %v955_v12, %v843_v40  ;;  %v1184_v38 = vpop.f32.mrf.mxu1  ;;  %v426_v12 = vld [vmem:[%s3134_s18 + $0x400] sm:$0xff] }
 0x174   : > { %v1069_v49 = vadd.f32 %v1068_v52, %v956_v47  ;;  %892 = vmatmul.f32.gmra.mxu2 %v420_v26  ;;  %1118 = vmatmul.f32.gmra.mxu0 %v422_v29  ;;  %v1325_v52 = vld [vmem:[%s4903_s3 + $0xc8] sm:$0xff]  ;;  %v429_v29 = vld [vmem:[%s3134_s18 + $0x418] sm:$0xff]  ;;  %v736_v47 = vadd.f32 %v3327_v41, %v623_v28  ;;  %v626_v41 = vadd.f32 %v3250_v48, %v3338_v51 }
 0x175   : > { %1005 = vmatmul.f32.gmra.mxu3 %v421_v31  ;;  %1231 = vmatmul.f32.gmra.mxu1 %v423_v4  ;;  %v427_v26 = vld [vmem:[%s3134_s18 + $0x408] sm:$0xff] }
 0x176   : > { %v3575_v54 = vadd.f32 %v1181_v32, %v1069_v49  ;;  %1571 = vmatpush.msra.mxu3 %v1325_v52  ;;  %v433_v52 = vld [vmem:[%s3134_s18 + $0x438] sm:$0xff]  ;;  %v739_v28 = vadd.f32 %v3344_v58, %v626_v41  ;;  %v629_v58 = vadd.f32 %v3250_v48, %v3355_v5 }
 0x177   : > { %v845_v43 = vpop.f32.mrf.mxu2 }
 0x178   : > { %v846_v50 = vadd.f32 %v845_v43, %v733_v56  ;;  %v958_v24 = vpop.f32.mrf.mxu3  ;;  %v1326_v56 = vld [vmem:[%s4903_s3 + $0xd0] sm:$0xff] }
 0x179   : > { %v1074_v40 = vpop.f32.mrf.mxu0  ;;  %1684 = vmatpush.msra.mxu0 %v1326_v56  ;;  %v439_v56 = vld [vmem:[%s3134_s18 + $0x468] sm:$0xff] }
 0x17a   : > { %v959_v32 = vadd.f32 %v958_v24, %v846_v50  ;;  %v1187_v22 = vpop.f32.mrf.mxu1  ;;  %v432_v50 = vld [vmem:[%s3134_s18 + $0x430] sm:$0xff]  ;;  %v434_v24 = vld [vmem:[%s3134_s18 + $0x440] sm:$0xff] }
 0x17c   : > { %v1072_v16 = vadd.f32 %v1071_v0, %v959_v32  ;;  %895 = vmatmul.f32.gmra.mxu2 %v426_v12  ;;  %1121 = vmatmul.f32.gmra.mxu0 %v428_v18  ;;  %v1327_v0 = vld [vmem:[%s4903_s3 + $0xd8] sm:$0xff]  ;;  %v435_v12 = vld [vmem:[%s3134_s18 + $0x448] sm:$0xff] }
 0x17d   : > { %1008 = vmatmul.f32.gmra.mxu3 %v427_v26  ;;  %1234 = vmatmul.f32.gmra.mxu1 %v429_v29 }
 0x17e   : > { %v3590_v31 = vadd.f32 %v1184_v38, %v1072_v16  ;;  %1797 = vmatpush.msra.mxu1 %v1327_v0  ;;  %v1316_v16 = vld [vmem:[%s4903_s3 + $0x80] sm:$0xff]  ;;  %v441_v0 = vld [vmem:[%s3134_s18 + $0x478] sm:$0xff] }
 0x17f   : > { %v848_v4 = vpop.f32.mrf.mxu2  ;;  %1459 = vmatpush.msra.mxu2 %v1316_v16  ;;  %v447_v16 = vld [vmem:[%s3134_s18 + $0x4a8] sm:$0xff] }
 0x180   : > { %v849_v49 = vadd.f32 %v848_v4, %v736_v47  ;;  %v961_v36 = vpop.f32.mrf.mxu3  ;;  %v438_v4 = vld [vmem:[%s3134_s18 + $0x460] sm:$0xff] }
 0x181   : > { %v1077_v43 = vpop.f32.mrf.mxu0 }
 0x182   : > { %v962_v38 = vadd.f32 %v961_v36, %v849_v49  ;;  %v1190_v2 = vpop.f32.mrf.mxu1  ;;  %v440_v49 = vld [vmem:[%s3134_s18 + $0x470] sm:$0xff] }
 0x184   : > { %v1075_v18 = vadd.f32 %v1074_v40, %v962_v38  ;;  %898 = vmatmul.f32.gmra.mxu2 %v432_v50  ;;  %1124 = vmatmul.f32.gmra.mxu0 %v434_v24  ;;  %v1317_v40 = vld [vmem:[%s4903_s3 + $0x88] sm:$0xff]  ;;  %v742_v24 = vadd.f32 %v3361_v9, %v629_v58  ;;  %v632_v9 = vadd.f32 %v3250_v48, %v3372_v20 }
 0x185   : > { %1011 = vmatmul.f32.gmra.mxu3 %v433_v52  ;;  %1237 = vmatmul.f32.gmra.mxu1 %v435_v12  ;;  %v1318_v12 = vld [vmem:[%s4903_s3 + $0x90] sm:$0xff] }
 0x186   : > { %v3605_v32 = vadd.f32 %v1187_v22, %v1075_v18  ;;  %1572 = vmatpush.msra.mxu3 %v1317_v40  ;;  %1685 = vmatpush.msra.mxu0 %v1318_v12 }
 0x187   : > { %v851_v26 = vpop.f32.mrf.mxu2 }
 0x188   : > { %v852_v29 = vadd.f32 %v851_v26, %v739_v28  ;;  %v964_v51 = vpop.f32.mrf.mxu3  ;;  %v444_v28 = vld [vmem:[%s3134_s18 + $0x490] sm:$0xff]  ;;  %v446_v26 = vld [vmem:[%s3134_s18 + $0x4a0] sm:$0xff] }
 0x189   : > { %v1080_v47 = vpop.f32.mrf.mxu0 }
 0x18a   : > { %v965_v22 = vadd.f32 %v964_v51, %v852_v29  ;;  %v1193_v36 = vpop.f32.mrf.mxu1  ;;  %v445_v51 = vld [vmem:[%s3134_s18 + $0x498] sm:$0xff] }
 0x18c   : > { %v1078_v50 = vadd.f32 %v1077_v43, %v965_v22  ;;  %901 = vmatmul.f32.gmra.mxu2 %v438_v4  ;;  %1127 = vmatmul.f32.gmra.mxu0 %v440_v49  ;;  %v1319_v43 = vld [vmem:[%s4903_s3 + $0x98] sm:$0xff]  ;;  %v745_v4 = vadd.f32 %v3378_v25, %v632_v9  ;;  %v635_v25 = vadd.f32 %v3250_v48, %v3389_v35 }
 0x18d   : > { %1014 = vmatmul.f32.gmra.mxu3 %v439_v56  ;;  %1240 = vmatmul.f32.gmra.mxu1 %v441_v0  ;;  %v1308_v56 = vld [vmem:[%s4903_s3 + $0x40] sm:$0xff] }
 0x18e   : > { %v3620_v41 = vadd.f32 %v1190_v2, %v1078_v50  ;;  %1798 = vmatpush.msra.mxu1 %v1319_v43  ;;  %v450_v50 = vld [vmem:[%s3134_s18 + $0x4c0] sm:$0xff]  ;;  %1460 = vmatpush.msra.mxu2 %v1308_v56  ;;  %v748_v43 = vadd.f32 %v3395_v44, %v635_v25  ;;  %v638_v44 = vadd.f32 %v3250_v48, %v3406_v59 }
 0x18f   : > { %v854_v38 = vpop.f32.mrf.mxu2  ;;  %v1300_v59 = vld [vmem:[%s4903_s3] sm:$0xff] }
 0x190   : > { %v855_v52 = vadd.f32 %v854_v38, %v742_v24  ;;  %v967_v5 = vpop.f32.mrf.mxu3  ;;  %v452_v24 = vld [vmem:[%s3134_s18 + $0x4d0] sm:$0xff]  ;;  %v751_v56 = vadd.f32 %v3412_v63, %v638_v44  ;;  %1461 = vmatpush.msra.mxu2 %v1300_v59  ;;  %v3675_v63 = vld [vmem:[#allocation6] ss:$0 sm:$0xff] }
 0x191   : > { %v1083_v18 = vpop.f32.mrf.mxu0 }
 0x192   : > { %v968_v2 = vadd.f32 %v967_v5, %v855_v52  ;;  %v1196_v29 = vpop.f32.mrf.mxu1  ;;  %v451_v52 = vld [vmem:[%s3134_s18 + $0x4c8] sm:$0xff]  ;;  %v453_v5 = vld [vmem:[%s3134_s18 + $0x4d8] sm:$0xff] }
 0x194   : > { %v1081_v40 = vadd.f32 %v1080_v47, %v968_v2  ;;  %904 = vmatmul.f32.gmra.mxu2 %v444_v28  ;;  %1130 = vmatmul.f32.gmra.mxu0 %v446_v26  ;;  %v1309_v47 = vld [vmem:[%s4903_s3 + $0x48] sm:$0xff]  ;;  %v1310_v2 = vld [vmem:[%s4903_s3 + $0x50] sm:$0xff] }
 0x195   : > { %1017 = vmatmul.f32.gmra.mxu3 %v445_v51  ;;  %1243 = vmatmul.f32.gmra.mxu1 %v447_v16  ;;  %v456_v16 = vld [vmem:[%s3134_s18 + $0x4f0] sm:$0xff] }
 0x196   : > { %v3635_v49 = vadd.f32 %v1193_v36, %v1081_v40  ;;  %1573 = vmatpush.msra.mxu3 %v1309_v47  ;;  %v458_v40 = vld [vmem:[%s3134_s18 + $0x500] sm:$0xff]  ;;  %1686 = vmatpush.msra.mxu0 %v1310_v2 }
 0x197   : > { %v857_v58 = vpop.f32.mrf.mxu2 }
 0x198   : > { %v858_v22 = vadd.f32 %v857_v58, %v745_v4  ;;  %v970_v20 = vpop.f32.mrf.mxu3  ;;  %v457_v58 = vld [vmem:[%s3134_s18 + $0x4f8] sm:$0xff] }
 0x199   : > { %v1086_v0 = vpop.f32.mrf.mxu0 }
 0x19a   : > { %v971_v36 = vadd.f32 %v970_v20, %v858_v22  ;;  %v1199_v38 = vpop.f32.mrf.mxu1  ;;  %v459_v22 = vld [vmem:[%s3134_s18 + $0x508] sm:$0xff] }
 0x19c   : > { %v1084_v12 = vadd.f32 %v1083_v18, %v971_v36  ;;  %907 = vmatmul.f32.gmra.mxu2 %v450_v50  ;;  %1133 = vmatmul.f32.gmra.mxu0 %v452_v24  ;;  %v1311_v18 = vld [vmem:[%s4903_s3 + $0x58] sm:$0xff]  ;;  %v462_v36 = vld [vmem:[%s3134_s18 + $0x520] sm:$0xff] }
 0x19d   : > { %1020 = vmatmul.f32.gmra.mxu3 %v451_v52  ;;  %1246 = vmatmul.f32.gmra.mxu1 %v453_v5  ;;  %v464_v52 = vld [vmem:[%s3134_s18 + $0x530] sm:$0xff] }
 0x19e   : > { %v3650_v28 = vadd.f32 %v1196_v29, %v1084_v12  ;;  %1799 = vmatpush.msra.mxu1 %v1311_v18 }
 0x19f   : > { %v860_v26 = vpop.f32.mrf.mxu2 }
 0x1a0   : > { %v861_v9 = vadd.f32 %v860_v26, %v748_v43  ;;  %v973_v35 = vpop.f32.mrf.mxu3  ;;  %v463_v43 = vld [vmem:[%s3134_s18 + $0x528] sm:$0xff]  ;;  %v465_v26 = vld [vmem:[%s3134_s18 + $0x538] sm:$0xff] }
 0x1a1   : > { %v1089_v51 = vpop.f32.mrf.mxu0 }
 0x1a2   : > { %v974_v29 = vadd.f32 %v973_v35, %v861_v9  ;;  %v1202_v4 = vpop.f32.mrf.mxu1 }
 0x1a4   : > { %v1087_v20 = vadd.f32 %v1086_v0, %v974_v29  ;;  %910 = vmatmul.f32.gmra.mxu2 %v456_v16  ;;  %1136 = vmatmul.f32.gmra.mxu0 %v458_v40  ;;  %v1301_v0 = vld [vmem:[%s4903_s3 + $0x8] sm:$0xff]  ;;  %v1302_v40 = vld [vmem:[%s4903_s3 + $0x10] sm:$0xff] }
 0x1a5   : > { %1023 = vmatmul.f32.gmra.mxu3 %v457_v58  ;;  %1249 = vmatmul.f32.gmra.mxu1 %v459_v22  ;;  %v468_v29 = vld [vmem:[%s3134_s18 + $0x550] sm:$0xff]  ;;  %v470_v58 = vld [vmem:[%s3134_s18 + $0x560] sm:$0xff] }
 0x1a6   : > { %v3665_v47 = vadd.f32 %v1199_v38, %v1087_v20  ;;  %1574 = vmatpush.msra.mxu3 %v1301_v0  ;;  %v641_v38 = vadd.f32 %v3675_v63, %v3423_v14  ;;  %1687 = vmatpush.msra.mxu0 %v1302_v40  ;;  %v469_v20 = vld [vmem:[%s3134_s18 + $0x558] sm:$0xff] }
 0x1a7   : > { %v863_v50 = vpop.f32.mrf.mxu2 }
 0x1a8   : > { %v864_v24 = vadd.f32 %v863_v50, %v751_v56  ;;  %v976_v48 = vpop.f32.mrf.mxu3  ;;  %v754_v35 = vadd.f32 %v3429_v21, %v641_v38  ;;  %v644_v21 = vadd.f32 %v3675_v63, %v3440_v34  ;;  %v471_v56 = vld [vmem:[%s3134_s18 + $0x568] sm:$0xff]  ;;  %v474_v38 = vld [vmem:[%s3134_s18 + $0x580] sm:$0xff] }
 0x1a9   : > { %v1092_v25 = vpop.f32.mrf.mxu0 }
 0x1aa   : > { %v977_v5 = vadd.f32 %v976_v48, %v864_v24  ;;  %v1205_v12 = vpop.f32.mrf.mxu1  ;;  %v757_v24 = vadd.f32 %v3446_v46, %v644_v21  ;;  %v647_v46 = vadd.f32 %v3675_v63, %v3457_v1  ;;  %v482_v21 = vld [vmem:[%s3134_s18 + $0x5c0] sm:$0xff] }
 0x1ac   : > { %v1090_v9 = vadd.f32 %v1089_v51, %v977_v5  ;;  %913 = vmatmul.f32.gmra.mxu2 %v462_v36  ;;  %1139 = vmatmul.f32.gmra.mxu0 %v464_v52  ;;  %v1303_v51 = vld [vmem:[%s4903_s3 + $0x18] sm:$0xff]  ;;  %v1424_v36 = vld [vmem:[%s4903_s3 + $0x3e0] sm:$0xff]  ;;  %v476_v5 = vld [vmem:[%s3134_s18 + $0x590] sm:$0xff] }
 0x1ad   : > { %1026 = vmatmul.f32.gmra.mxu3 %v463_v43  ;;  %1252 = vmatmul.f32.gmra.mxu1 %v465_v26  ;;  %v475_v26 = vld [vmem:[%s3134_s18 + $0x588] sm:$0xff] }
 0x1ae   : > { %v3682_v2 = vadd.f32 %v1202_v4, %v1090_v9  ;;  %1800 = vmatpush.msra.mxu1 %v1303_v51  ;;  %1898 = vmatpush.msrb.mxu2 %v1424_v36  ;;  %v477_v9 = vld [vmem:[%s3134_s18 + $0x598] sm:$0xff]  ;;  %v1426_v51 = vld [vmem:[%s4903_s3 + $0x3f0] sm:$0xff]  ;;  %v1416_v36 = vld [vmem:[%s4903_s3 + $0x3a0] sm:$0xff] }
 0x1af   : > { %v866_v18 = vpop.f32.mrf.mxu2  ;;  %2124 = vmatpush.msrb.mxu0 %v1426_v51 }
 0x1b0   : > { %v867_v16 = vadd.f32 %v866_v18, %v754_v35  ;;  %v979_v14 = vpop.f32.mrf.mxu3  ;;  %v760_v18 = vadd.f32 %v3463_v10, %v647_v46  ;;  %v650_v10 = vadd.f32 %v3675_v63, %v3474_v30  ;;  %1899 = vmatpush.msrb.mxu2 %v1416_v36 }
 0x1b1   : > { %v1095_v44 = vpop.f32.mrf.mxu0 }
 0x1b2   : > { %v980_v4 = vadd.f32 %v979_v14, %v867_v16  ;;  %v1208_v22 = vpop.f32.mrf.mxu1 }
 0x1b4   : > { %v1093_v50 = vadd.f32 %v1092_v25, %v980_v4  ;;  %916 = vmatmul.f32.gmra.mxu2 %v468_v29  ;;  %1142 = vmatmul.f32.gmra.mxu0 %v470_v58  ;;  %v1425_v25 = vld [vmem:[%s4903_s3 + $0x3e8] sm:$0xff]  ;;  %v480_v58 = vld [vmem:[%s3134_s18 + $0x5b0] sm:$0xff] }
 0x1b5   : > { %1029 = vmatmul.f32.gmra.mxu3 %v469_v20  ;;  %1255 = vmatmul.f32.gmra.mxu1 %v471_v56  ;;  %v481_v20 = vld [vmem:[%s3134_s18 + $0x5b8] sm:$0xff]  ;;  %v483_v56 = vld [vmem:[%s3134_s18 + $0x5c8] sm:$0xff] }
 0x1b6   : > { %v3697_v48 = vadd.f32 %v1205_v12, %v1093_v50  ;;  %2011 = vmatpush.msrb.mxu3 %v1425_v25  ;;  %v1417_v25 = vld [vmem:[%s4903_s3 + $0x3a8] sm:$0xff] }
 0x1b7   : > { %v869_v59 = vpop.f32.mrf.mxu2 }
 0x1b8   : > { %v870_v0 = vadd.f32 %v869_v59, %v757_v24  ;;  %v982_v34 = vpop.f32.mrf.mxu3  ;;  %v763_v24 = vadd.f32 %v3480_v37, %v650_v10  ;;  %2012 = vmatpush.msrb.mxu3 %v1417_v25  ;;  %v653_v37 = vadd.f32 %v3675_v63, %v3491_v61  ;;  %v1418_v61 = vld [vmem:[%s4903_s3 + $0x3b0] sm:$0xff]  ;;  %v1419_v63 = vld [vmem:[%s4903_s3 + $0x3b8] sm:$0xff] }
 0x1b9   : > { %v1098_v52 = vpop.f32.mrf.mxu0  ;;  %2125 = vmatpush.msrb.mxu0 %v1418_v61 }
 0x1ba   : > { %v983_v12 = vadd.f32 %v982_v34, %v870_v0  ;;  %v1211_v43 = vpop.f32.mrf.mxu1 }
 0x1bc   : > { %v1096_v35 = vadd.f32 %v1095_v44, %v983_v12  ;;  %919 = vmatmul.f32.gmra.mxu2 %v474_v38  ;;  %1145 = vmatmul.f32.gmra.mxu0 %v476_v5  ;;  %v1427_v44 = vld [vmem:[%s4903_s3 + $0x3f8] sm:$0xff]  ;;  %v486_v38 = vld [vmem:[%s3134_s18 + $0x5e0] sm:$0xff]  ;;  %v488_v5 = vld [vmem:[%s3134_s18 + $0x5f0] sm:$0xff] }
 0x1bd   : > { %1032 = vmatmul.f32.gmra.mxu3 %v475_v26  ;;  %1258 = vmatmul.f32.gmra.mxu1 %v477_v9  ;;  %v489_v26 = vld [vmem:[%s3134_s18 + $0x5f8] sm:$0xff] }
 0x1be   : > { %v3712_v16 = vadd.f32 %v1208_v22, %v1096_v35  ;;  %2237 = vmatpush.msrb.mxu1 %v1427_v44  ;;  %v766_v35 = vadd.f32 %v3497_v13, %v653_v37  ;;  %v3751_v44 = vmax.f32 %v3530_v17, 0.0  ;;  %v1408_v17 = vld [vmem:[%s4903_s3 + $0x360] sm:$0xff] }
 0x1bf   : > { %v872_v14 = vpop.f32.mrf.mxu2  ;;  %1900 = vmatpush.msrb.mxu2 %v1408_v17 }
 0x1c0   : > { %v873_v40 = vadd.f32 %v872_v14, %v760_v18  ;;  %v985_v1 = vpop.f32.mrf.mxu3  ;;  %2238 = vmatpush.msrb.mxu1 %v1419_v63 }
 0x1c1   : > { %v1101_v29 = vpop.f32.mrf.mxu0 }
 0x1c2   : > { %v986_v4 = vadd.f32 %v985_v1, %v873_v40  ;;  %v1214_v22 = vpop.f32.mrf.mxu1 }
 0x1c4   : > { %v1099_v50 = vadd.f32 %v1098_v52, %v986_v4  ;;  %922 = vmatmul.f32.gmra.mxu2 %v480_v58  ;;  %1148 = vmatmul.f32.gmra.mxu0 %v482_v21 }
 0x1c5   : > { %1035 = vmatmul.f32.gmra.mxu3 %v481_v20  ;;  %1261 = vmatmul.f32.gmra.mxu1 %v483_v56  ;;  %v1409_v20 = vld [vmem:[%s4903_s3 + $0x368] sm:$0xff] }
 0x1c6   : > { %v3727_v59 = vadd.f32 %v1211_v43, %v1099_v50  ;;  %v487_v43 = vld [vmem:[%s3134_s18 + $0x5e8] sm:$0xff]  ;;  %2013 = vmatpush.msrb.mxu3 %v1409_v20  ;;  %v3767_v50 = vmax.f32 %v3545_v6, 0.0  ;;  %v1410_v6 = vld [vmem:[%s4903_s3 + $0x370] sm:$0xff] }
 0x1c7   : > { %v875_v0 = vpop.f32.mrf.mxu2  ;;  %2126 = vmatpush.msrb.mxu0 %v1410_v6 }
 0x1c8   : > { %v876_v34 = vadd.f32 %v875_v0, %v763_v24  ;;  %v988_v30 = vpop.f32.mrf.mxu3 }
 0x1c9   : > { %v1104_v52 = vpop.f32.mrf.mxu0 }
 0x1ca   : > { %v989_v46 = vadd.f32 %v988_v30, %v876_v34  ;;  %v1217_v12 = vpop.f32.mrf.mxu1 }
 0x1cc   : > { %v1102_v9 = vadd.f32 %v1101_v29, %v989_v46  ;;  %925 = vmatmul.f32.gmra.mxu2 %v486_v38  ;;  %1151 = vmatmul.f32.gmra.mxu0 %v488_v5  ;;  %v3783_v5 = vmax.f32 %v3560_v60, 0.0  ;;  %v1400_v60 = vld [vmem:[%s4903_s3 + $0x320] sm:$0xff] }
 0x1cd   : > { %1038 = vmatmul.f32.gmra.mxu3 %v487_v43  ;;  %1264 = vmatmul.f32.gmra.mxu1 %v489_v26 }
 0x1ce   : > { %v3742_v18 = vadd.f32 %v1214_v22, %v1102_v9  ;;  %1901 = vmatpush.msrb.mxu2 %v1400_v60 }
 0x1cf   : > { %v878_v14 = vpop.f32.mrf.mxu2 }
 0x1d0   : > { %v879_v40 = vadd.f32 %v878_v14, %v766_v35  ;;  %v991_v1 = vpop.f32.mrf.mxu3  ;;  %v1401_v35 = vld [vmem:[%s4903_s3 + $0x328] sm:$0xff] }
 0x1d1   : > { %v1107_v51 = vpop.f32.mrf.mxu0  ;;  %2014 = vmatpush.msrb.mxu3 %v1401_v35 }
 0x1d2   : > { %v992_v13 = vadd.f32 %v991_v1, %v879_v40  ;;  %v1220_v29 = vpop.f32.mrf.mxu1  ;;  %v3799_v40 = vmax.f32 %v3575_v54, 0.0  ;;  %v1402_v54 = vld [vmem:[%s4903_s3 + $0x330] sm:$0xff] }
 0x1d3   : > { %2127 = vmatpush.msrb.mxu0 %v1402_v54 }
 0x1d4   : > { %v1105_v58 = vadd.f32 %v1104_v52, %v992_v13  ;;  %1462 = vmatmul.f32.vlgmr.msra.gmra.mxu2 %v3751_v44  ;;  %1688 = vmatmul.f32.vlgmr.msra.gmra.mxu0 %v3751_v44  ;;  %v1411_v52 = vld [vmem:[%s4903_s3 + $0x378] sm:$0xff] }
 0x1d5   : > { %1575 = vmatmul.f32.vlgmr.msra.gmra.mxu3 %v3751_v44  ;;  %1801 = vmatmul.f32.vlgmr.msra.gmra.mxu1 %v3751_v44 }
 0x1d6   : > { %v3757_v21 = vadd.f32 %v1217_v12, %v1105_v58  ;;  %2239 = vmatpush.msrb.mxu1 %v1411_v52  ;;  %v1403_v58 = vld [vmem:[%s4903_s3 + $0x338] sm:$0xff] }
 0x1d7   : > { %v881_v10 = vpop.f32.mrf.mxu2 }
 0x1d8   : > { %v882_v4 = vadd.f32 %v881_v10, %v3257_v55  ;;  %v994_v22 = vpop.f32.mrf.mxu3  ;;  %2240 = vmatpush.msrb.mxu1 %v1403_v58 }
 0x1d9   : > { %v1110_v56 = vpop.f32.mrf.mxu0 }
 0x1da   : > { %v995_v24 = vadd.f32 %v994_v22, %v882_v4  ;;  %v1223_v0 = vpop.f32.mrf.mxu1  ;;  %v3815_v4 = vmax.f32 %v3590_v31, 0.0  ;;  %v1392_v31 = vld [vmem:[%s4903_s3 + $0x2e0] sm:$0xff] }
 0x1db   : > { %1902 = vmatpush.msrb.mxu2 %v1392_v31 }
 0x1dc   : > { %v1108_v34 = vadd.f32 %v1107_v51, %v995_v24  ;;  %1465 = vmatmul.f32.gmra.mxu2 %v3767_v50  ;;  %1691 = vmatmul.f32.gmra.mxu0 %v3767_v50 }
 0x1dd   : > { %1578 = vmatmul.f32.gmra.mxu3 %v3767_v50  ;;  %1804 = vmatmul.f32.gmra.mxu1 %v3767_v50 }
 0x1de   : > { %v3773_v55 = vadd.f32 %v1220_v29, %v1108_v34  ;;  %v1393_v34 = vld [vmem:[%s4903_s3 + $0x2e8] sm:$0xff] }
 0x1df   : > { %v884_v30 = vpop.f32.mrf.mxu2  ;;  %2015 = vmatpush.msrb.mxu3 %v1393_v34 }
 0x1e0   : > { %v885_v36 = vadd.f32 %v884_v30, %v3274_v3  ;;  %v997_v25 = vpop.f32.mrf.mxu3 }
 0x1e1   : > { %v1113_v38 = vpop.f32.mrf.mxu0 }
 0x1e2   : > { %v998_v37 = vadd.f32 %v997_v25, %v885_v36  ;;  %v1226_v46 = vpop.f32.mrf.mxu1  ;;  %v3831_v36 = vmax.f32 %v3605_v32, 0.0  ;;  %v1394_v32 = vld [vmem:[%s4903_s3 + $0x2f0] sm:$0xff] }
 0x1e3   : > { %2128 = vmatpush.msrb.mxu0 %v1394_v32 }
 0x1e4   : > { %v1111_v12 = vadd.f32 %v1110_v56, %v998_v37  ;;  %1468 = vmatmul.f32.gmra.mxu2 %v3783_v5  ;;  %1694 = vmatmul.f32.gmra.mxu0 %v3783_v5 }
 0x1e5   : > { %1581 = vmatmul.f32.gmra.mxu3 %v3783_v5  ;;  %1807 = vmatmul.f32.gmra.mxu1 %v3783_v5 }
 0x1e6   : > { %v3789_v3 = vadd.f32 %v1223_v0, %v1111_v12  ;;  %v1395_v12 = vld [vmem:[%s4903_s3 + $0x2f8] sm:$0xff] }
 0x1e7   : > { %v887_v43 = vpop.f32.mrf.mxu2  ;;  %2241 = vmatpush.msrb.mxu1 %v1395_v12 }
 0x1e8   : > { %v888_v26 = vadd.f32 %v887_v43, %v3291_v15  ;;  %v1000_v9 = vpop.f32.mrf.mxu3 }
 0x1e9   : > { %v1116_v14 = vpop.f32.mrf.mxu0 }
 0x1ea   : > { %v1001_v1 = vadd.f32 %v1000_v9, %v888_v26  ;;  %v1229_v61 = vpop.f32.mrf.mxu1  ;;  %v3847_v26 = vmax.f32 %v3620_v41, 0.0  ;;  %v1384_v41 = vld [vmem:[%s4903_s3 + $0x2a0] sm:$0xff] }
 0x1eb   : > { %1903 = vmatpush.msrb.mxu2 %v1384_v41 }
 0x1ec   : > { %v1114_v63 = vadd.f32 %v1113_v38, %v1001_v1  ;;  %1471 = vmatmul.f32.gmra.mxu2 %v3799_v40  ;;  %1697 = vmatmul.f32.gmra.mxu0 %v3799_v40 }
 0x1ed   : > { %1584 = vmatmul.f32.gmra.mxu3 %v3799_v40  ;;  %1810 = vmatmul.f32.gmra.mxu1 %v3799_v40 }
 0x1ee   : > { %v3805_v15 = vadd.f32 %v1226_v46, %v1114_v63  ;;  %v1385_v63 = vld [vmem:[%s4903_s3 + $0x2a8] sm:$0xff] }
 0x1ef   : > { %v890_v51 = vpop.f32.mrf.mxu2  ;;  %2016 = vmatpush.msrb.mxu3 %v1385_v63 }
 0x1f0   : > { %v891_v13 = vadd.f32 %v890_v51, %v3308_v27  ;;  %v1003_v29 = vpop.f32.mrf.mxu3 }
 0x1f1   : > { %v1119_v10 = vpop.f32.mrf.mxu0 }
 0x1f2   : > { %v1004_v22 = vadd.f32 %v1003_v29, %v891_v13  ;;  %v1232_v17 = vpop.f32.mrf.mxu1  ;;  %v3863_v13 = vmax.f32 %v3635_v49, 0.0  ;;  %v1386_v49 = vld [vmem:[%s4903_s3 + $0x2b0] sm:$0xff] }
 0x1f3   : > { %2129 = vmatpush.msrb.mxu0 %v1386_v49 }
 0x1f4   : > { %v1117_v20 = vadd.f32 %v1116_v14, %v1004_v22  ;;  %1474 = vmatmul.f32.gmra.mxu2 %v3815_v4  ;;  %1700 = vmatmul.f32.gmra.mxu0 %v3815_v4 }
 0x1f5   : > { %1587 = vmatmul.f32.gmra.mxu3 %v3815_v4  ;;  %1813 = vmatmul.f32.gmra.mxu1 %v3815_v4 }
 0x1f6   : > { %v3821_v27 = vadd.f32 %v1229_v61, %v1117_v20  ;;  %v1387_v20 = vld [vmem:[%s4903_s3 + $0x2b8] sm:$0xff] }
 0x1f7   : > { %v893_v56 = vpop.f32.mrf.mxu2  ;;  %2242 = vmatpush.msrb.mxu1 %v1387_v20 }
 0x1f8   : > { %v894_v24 = vadd.f32 %v893_v56, %v3325_v39  ;;  %v1006_v0 = vpop.f32.mrf.mxu3 }
 0x1f9   : > { %v1122_v30 = vpop.f32.mrf.mxu0 }
 0x1fa   : > { %v1007_v25 = vadd.f32 %v1006_v0, %v894_v24  ;;  %v1235_v6 = vpop.f32.mrf.mxu1  ;;  %v3879_v24 = vmax.f32 %v3650_v28, 0.0  ;;  %v1376_v28 = vld [vmem:[%s4903_s3 + $0x260] sm:$0xff] }
 0x1fb   : > { %1904 = vmatpush.msrb.mxu2 %v1376_v28 }
 0x1fc   : > { %v1120_v52 = vadd.f32 %v1119_v10, %v1007_v25  ;;  %1477 = vmatmul.f32.gmra.mxu2 %v3831_v36  ;;  %1703 = vmatmul.f32.gmra.mxu0 %v3831_v36 }
 0x1fd   : > { %1590 = vmatmul.f32.gmra.mxu3 %v3831_v36  ;;  %1816 = vmatmul.f32.gmra.mxu1 %v3831_v36 }
 0x1fe   : > { %v3837_v39 = vadd.f32 %v1232_v17, %v1120_v52  ;;  %v1377_v52 = vld [vmem:[%s4903_s3 + $0x268] sm:$0xff] }
 0x1ff   : > { %v896_v38 = vpop.f32.mrf.mxu2  ;;  %2017 = vmatpush.msrb.mxu3 %v1377_v52 }
 0x200   : > { %v897_v37 = vadd.f32 %v896_v38, %v3342_v57  ;;  %v1009_v46 = vpop.f32.mrf.mxu3 }
 0x201   : > { %v1125_v43 = vpop.f32.mrf.mxu0 }
 0x202   : > { %v1010_v9 = vadd.f32 %v1009_v46, %v897_v37  ;;  %v1238_v60 = vpop.f32.mrf.mxu1  ;;  %v3895_v37 = vmax.f32 %v3665_v47, 0.0  ;;  %v1378_v47 = vld [vmem:[%s4903_s3 + $0x270] sm:$0xff] }
 0x203   : > { %2130 = vmatpush.msrb.mxu0 %v1378_v47 }
 0x204   : > { %v1123_v35 = vadd.f32 %v1122_v30, %v1010_v9  ;;  %1480 = vmatmul.f32.gmra.mxu2 %v3847_v26  ;;  %1706 = vmatmul.f32.gmra.mxu0 %v3847_v26 }
 0x205   : > { %1593 = vmatmul.f32.gmra.mxu3 %v3847_v26  ;;  %1819 = vmatmul.f32.gmra.mxu1 %v3847_v26 }
 0x206   : > { %v3853_v57 = vadd.f32 %v1235_v6, %v1123_v35  ;;  %v1379_v35 = vld [vmem:[%s4903_s3 + $0x278] sm:$0xff] }
 0x207   : > { %v899_v14 = vpop.f32.mrf.mxu2  ;;  %2243 = vmatpush.msrb.mxu1 %v1379_v35 }
 0x208   : > { %v900_v1 = vadd.f32 %v899_v14, %v3359_v8  ;;  %v1012_v61 = vpop.f32.mrf.mxu3 }
 0x209   : > { %v1128_v51 = vpop.f32.mrf.mxu0 }
 0x20a   : > { %v1013_v29 = vadd.f32 %v1012_v61, %v900_v1  ;;  %v1241_v54 = vpop.f32.mrf.mxu1  ;;  %v3911_v1 = vmax.f32 %v3682_v2, 0.0  ;;  %v1368_v2 = vld [vmem:[%s4903_s3 + $0x220] sm:$0xff] }
 0x20b   : > { %1905 = vmatpush.msrb.mxu2 %v1368_v2 }
 0x20c   : > { %v1126_v58 = vadd.f32 %v1125_v43, %v1013_v29  ;;  %1483 = vmatmul.f32.gmra.mxu2 %v3863_v13  ;;  %1709 = vmatmul.f32.gmra.mxu0 %v3863_v13 }
 0x20d   : > { %1596 = vmatmul.f32.gmra.mxu3 %v3863_v13  ;;  %1822 = vmatmul.f32.gmra.mxu1 %v3863_v13 }
 0x20e   : > { %v3869_v8 = vadd.f32 %v1238_v60, %v1126_v58  ;;  %v1369_v58 = vld [vmem:[%s4903_s3 + $0x228] sm:$0xff] }
 0x20f   : > { %v902_v10 = vpop.f32.mrf.mxu2  ;;  %2018 = vmatpush.msrb.mxu3 %v1369_v58 }
 0x210   : > { %v903_v22 = vadd.f32 %v902_v10, %v3376_v23  ;;  %v1015_v17 = vpop.f32.mrf.mxu3 }
 0x211   : > { %v1131_v56 = vpop.f32.mrf.mxu0 }
 0x212   : > { %v1016_v0 = vadd.f32 %v1015_v17, %v903_v22  ;;  %v1244_v31 = vpop.f32.mrf.mxu1  ;;  %v3927_v22 = vmax.f32 %v3697_v48, 0.0  ;;  %v1370_v48 = vld [vmem:[%s4903_s3 + $0x230] sm:$0xff] }
 0x213   : > { %2131 = vmatpush.msrb.mxu0 %v1370_v48 }
 0x214   : > { %v1129_v34 = vadd.f32 %v1128_v51, %v1016_v0  ;;  %1486 = vmatmul.f32.gmra.mxu2 %v3879_v24  ;;  %1712 = vmatmul.f32.gmra.mxu0 %v3879_v24 }
 0x215   : > { %1599 = vmatmul.f32.gmra.mxu3 %v3879_v24  ;;  %1825 = vmatmul.f32.gmra.mxu1 %v3879_v24 }
 0x216   : > { %v3885_v23 = vadd.f32 %v1241_v54, %v1129_v34  ;;  %v1371_v34 = vld [vmem:[%s4903_s3 + $0x238] sm:$0xff] }
 0x217   : > { %v905_v30 = vpop.f32.mrf.mxu2  ;;  %2244 = vmatpush.msrb.mxu1 %v1371_v34  ;;  %v1428_v34 = vld [vmem:[#allocation7] sm:$0xff] }
 0x218   : > { %v906_v25 = vadd.f32 %v905_v30, %v3393_v42  ;;  %v1018_v6 = vpop.f32.mrf.mxu3 }
 0x219   : > { %v1134_v38 = vpop.f32.mrf.mxu0 }
 0x21a   : > { %v1019_v46 = vadd.f32 %v1018_v6, %v906_v25  ;;  %v1247_v32 = vpop.f32.mrf.mxu1  ;;  %v3943_v25 = vmax.f32 %v3712_v16, 0.0  ;;  %v1360_v16 = vld [vmem:[%s4903_s3 + $0x1e0] sm:$0xff] }
 0x21b   : > { %1906 = vmatpush.msrb.mxu2 %v1360_v16 }
 0x21c   : > { %v1132_v12 = vadd.f32 %v1131_v56, %v1019_v46  ;;  %1489 = vmatmul.f32.gmra.mxu2 %v3895_v37  ;;  %1715 = vmatmul.f32.gmra.mxu0 %v3895_v37 }
 0x21d   : > { %1602 = vmatmul.f32.gmra.mxu3 %v3895_v37  ;;  %1828 = vmatmul.f32.gmra.mxu1 %v3895_v37 }
 0x21e   : > { %v3901_v42 = vadd.f32 %v1244_v31, %v1132_v12  ;;  %v1361_v12 = vld [vmem:[%s4903_s3 + $0x1e8] sm:$0xff] }
 0x21f   : > { %v908_v43 = vpop.f32.mrf.mxu2  ;;  %2019 = vmatpush.msrb.mxu3 %v1361_v12  ;;  %v4018_v12 = vmax.f32 %v3773_v55, 0.0  ;;  %v4030_v55 = vperm.slane %v1428_v34, 1 }
 0x220   : > { %v909_v9 = vadd.f32 %v908_v43, %v3410_v62  ;;  %v1021_v60 = vpop.f32.mrf.mxu3 }
 0x221   : > { %v1137_v14 = vpop.f32.mrf.mxu0 }
 0x222   : > { %v1022_v61 = vadd.f32 %v1021_v60, %v909_v9  ;;  %v1250_v41 = vpop.f32.mrf.mxu1  ;;  %v3959_v9 = vmax.f32 %v3727_v59, 0.0  ;;  %v1363_v59 = vld [vmem:[%s4903_s3 + $0x1f8] sm:$0xff] }
 0x223   : > { %2245 = vmatpush.msrb.mxu1 %v1363_v59  ;;  %v1344_v59 = vld [vmem:[%s4903_s3 + $0x160] sm:$0xff] }
 0x224   : > { %v1135_v63 = vadd.f32 %v1134_v38, %v1022_v61  ;;  %1492 = vmatmul.f32.gmra.mxu2 %v3911_v1  ;;  %1718 = vmatmul.f32.gmra.mxu0 %v3911_v1 }
 0x225   : > { %1605 = vmatmul.f32.gmra.mxu3 %v3911_v1  ;;  %1831 = vmatmul.f32.gmra.mxu1 %v3911_v1 }
 0x226   : > { %v3917_v62 = vadd.f32 %v1247_v32, %v1135_v63 }
 0x227   : > { %v911_v51 = vpop.f32.mrf.mxu2 }
 0x228   : > { %v912_v29 = vadd.f32 %v911_v51, %v3427_v19  ;;  %v1024_v54 = vpop.f32.mrf.mxu3 }
 0x229   : > { %v1140_v10 = vpop.f32.mrf.mxu0 }
 0x22a   : > { %v1025_v17 = vadd.f32 %v1024_v54, %v912_v29  ;;  %v1253_v49 = vpop.f32.mrf.mxu1  ;;  %v3975_v29 = vmax.f32 %v3742_v18, 0.0  ;;  %v1353_v18 = vld [vmem:[%s4903_s3 + $0x1a8] sm:$0xff] }
 0x22b   : > { %2020 = vmatpush.msrb.mxu3 %v1353_v18 }
 0x22c   : > { %v1138_v20 = vadd.f32 %v1137_v14, %v1025_v17  ;;  %1495 = vmatmul.f32.gmra.mxu2 %v3927_v22  ;;  %1721 = vmatmul.f32.gmra.mxu0 %v3927_v22 }
 0x22d   : > { %1608 = vmatmul.f32.gmra.mxu3 %v3927_v22  ;;  %1834 = vmatmul.f32.gmra.mxu1 %v3927_v22 }
 0x22e   : > { %v3933_v19 = vadd.f32 %v1250_v41, %v1138_v20 }
 0x22f   : > { %v914_v56 = vpop.f32.mrf.mxu2 }
 0x230   : > { %v915_v0 = vadd.f32 %v914_v56, %v3444_v45  ;;  %v1027_v31 = vpop.f32.mrf.mxu3 }
 0x231   : > { %v1143_v30 = vpop.f32.mrf.mxu0 }
 0x232   : > { %v1028_v6 = vadd.f32 %v1027_v31, %v915_v0  ;;  %v1256_v28 = vpop.f32.mrf.mxu1  ;;  %v3993_v0 = vmax.f32 %v3757_v21, 0.0  ;;  %v1355_v21 = vld [vmem:[%s4903_s3 + $0x1b8] sm:$0xff] }
 0x233   : > { %2246 = vmatpush.msrb.mxu1 %v1355_v21 }
 0x234   : > { %v1141_v52 = vadd.f32 %v1140_v10, %v1028_v6  ;;  %1498 = vmatmul.f32.gmra.mxu2 %v3943_v25  ;;  %1724 = vmatmul.f32.gmra.mxu0 %v3943_v25 }
 0x235   : > { %1611 = vmatmul.f32.gmra.mxu3 %v3943_v25  ;;  %1837 = vmatmul.f32.gmra.mxu1 %v3943_v25 }
 0x236   : > { %v3949_v45 = vadd.f32 %v1253_v49, %v1141_v52 }
 0x237   : > { %v917_v38 = vpop.f32.mrf.mxu2 }
 0x238   : > { %v918_v46 = vadd.f32 %v917_v38, %v3461_v7  ;;  %v1030_v32 = vpop.f32.mrf.mxu3  ;;  %v1362_v7 = vld [vmem:[%s4903_s3 + $0x1f0] sm:$0xff]  ;;  %v4009_v38 = vperm.slane %v1428_v34, 3 }
 0x239   : > { %v1146_v43 = vpop.f32.mrf.mxu0  ;;  %2132 = vmatpush.msrb.mxu0 %v1362_v7 }
 0x23a   : > { %v1031_v60 = vadd.f32 %v1030_v32, %v918_v46  ;;  %v1259_v47 = vpop.f32.mrf.mxu1 }
 0x23c   : > { %v1144_v35 = vadd.f32 %v1143_v30, %v1031_v60  ;;  %1501 = vmatmul.f32.gmra.mxu2 %v3959_v9  ;;  %1727 = vmatmul.f32.gmra.mxu0 %v3959_v9 }
 0x23d   : > { %1614 = vmatmul.f32.gmra.mxu3 %v3959_v9  ;;  %1840 = vmatmul.f32.gmra.mxu1 %v3959_v9 }
 0x23e   : > { %v3971_v14 = vadd.f32 %v1256_v28, %v1144_v35  ;;  %v4007_v28 = vperm.slane %v1428_v34, 2 }
 0x23f   : > { %v920_v61 = vpop.f32.mrf.mxu2 }
 0x240   : > { %v921_v41 = vadd.f32 %v920_v61, %v3478_v33  ;;  %v1033_v63 = vpop.f32.mrf.mxu3  ;;  %v1352_v33 = vld [vmem:[%s4903_s3 + $0x1a0] sm:$0xff]  ;;  %v1345_v61 = vld [vmem:[%s4903_s3 + $0x168] sm:$0xff] }
 0x241   : > { %v1149_v51 = vpop.f32.mrf.mxu0  ;;  %1907 = vmatpush.msrb.mxu2 %v1352_v33  ;;  %2021 = vmatpush.msrb.mxu3 %v1345_v61  ;;  %v4043_v33 = vmax.f32 %v3789_v3, 0.0  ;;  %v1346_v3 = vld [vmem:[%s4903_s3 + $0x170] sm:$0xff] }
 0x242   : > { %v1034_v54 = vadd.f32 %v1033_v63, %v921_v41  ;;  %v1262_v2 = vpop.f32.mrf.mxu1 }
 0x243   : > { %1908 = vmatpush.msrb.mxu2 %v1344_v59 }
 0x244   : > { %v1147_v58 = vadd.f32 %v1146_v43, %v1034_v54  ;;  %1504 = vmatmul.f32.gmra.mxu2 %v3975_v29  ;;  %1730 = vmatmul.f32.gmra.mxu0 %v3975_v29 }
 0x245   : > { %1617 = vmatmul.f32.gmra.mxu3 %v3975_v29  ;;  %1843 = vmatmul.f32.gmra.mxu1 %v3975_v29 }
 0x246   : > { %v3989_v10 = vadd.f32 %v1259_v47, %v1147_v58 }
 0x247   : > { %v923_v17 = vpop.f32.mrf.mxu2 }
 0x248   : > { %v924_v49 = vadd.f32 %v923_v17, %v3495_v11  ;;  %v1036_v20 = vpop.f32.mrf.mxu3  ;;  %v1354_v11 = vld [vmem:[%s4903_s3 + $0x1b0] sm:$0xff] }
 0x249   : > { %v1152_v56 = vpop.f32.mrf.mxu0  ;;  %2133 = vmatpush.msrb.mxu0 %v1354_v11  ;;  %v4064_v11 = vmax.f32 %v3805_v15, 0.0  ;;  %v1336_v15 = vld [vmem:[%s4903_s3 + $0x120] sm:$0xff] }
 0x24a   : > { %v1037_v31 = vadd.f32 %v1036_v20, %v924_v49  ;;  %v1265_v48 = vpop.f32.mrf.mxu1  ;;  %v1347_v20 = vld [vmem:[%s4903_s3 + $0x178] sm:$0xff]  ;;  %1909 = vmatpush.msrb.mxu2 %v1336_v15 }
 0x24b   : > { %2134 = vmatpush.msrb.mxu0 %v1346_v3  ;;  %2247 = vmatpush.msrb.mxu1 %v1347_v20 }
 0x24c   : > { %v1150_v30 = vadd.f32 %v1149_v51, %v1037_v31  ;;  %1507 = vmatmul.f32.gmra.mxu2 %v3993_v0  ;;  %1733 = vmatmul.f32.gmra.mxu0 %v3993_v0 }
 0x24d   : > { %1620 = vmatmul.f32.gmra.mxu3 %v3993_v0  ;;  %1846 = vmatmul.f32.gmra.mxu1 %v3993_v0 }
 0x24e   : > { %v4005_v6 = vadd.f32 %v1262_v2, %v1150_v30 }
 0x24f   : > { %v926_v52 = vpop.f32.mrf.mxu2 }
 0x250   : > { %v927_v46 = vadd.f32 %v926_v52, %v3512_v53  ;;  %v1039_v32 = vpop.f32.mrf.mxu3  ;;  %v4025_v53 = vperm.slane %v1428_v34, 0 }
 0x251   : > { %v1689_v16 = vpop.f32.mrf.mxu0 }
 0x252   : > { %v1040_v43 = vadd.f32 %v1039_v32, %v927_v46  ;;  %v1690_v60 = vadd.f32 %v1689_v16, %v4007_v28  ;;  %v1802_v47 = vpop.f32.mrf.mxu1  ;;  %v1337_v32 = vld [vmem:[%s4903_s3 + $0x128] sm:$0xff] }
 0x253   : > { %v1803_v35 = vadd.f32 %v1802_v47, %v4009_v38  ;;  %2022 = vmatpush.msrb.mxu3 %v1337_v32 }
 0x254   : > { %v1153_v7 = vadd.f32 %v1152_v56, %v1040_v43  ;;  %2352 = vst [vmem:[%s4015_s17 + $0x10] sm:$0xff] %v1690_v60  ;;  %1510 = vmatmul.f32.gmra.mxu2 %v4018_v12  ;;  %1736 = vmatmul.f32.gmra.mxu0 %v4018_v12 }
 0x255   : > { %2353 = vst [vmem:[%s4015_s17 + $0x18] sm:$0xff] %v1803_v35  ;;  %1623 = vmatmul.f32.gmra.mxu3 %v4018_v12  ;;  %1849 = vmatmul.f32.gmra.mxu1 %v4018_v12 }
 0x256   : > { %v4038_v41 = vadd.f32 %v1265_v48, %v1153_v7  ;;  %v4085_v7 = vmax.f32 %v3821_v27, 0.0  ;;  %v1338_v27 = vld [vmem:[%s4903_s3 + $0x130] sm:$0xff] }
 0x257   : > { %v1463_v63 = vpop.f32.mrf.mxu2  ;;  %2135 = vmatpush.msrb.mxu0 %v1338_v27 }
 0x258   : > { %v1464_v51 = vadd.f32 %v1463_v63, %v4025_v53  ;;  %v1576_v54 = vpop.f32.mrf.mxu3 }
 0x259   : > { %v1577_v2 = vadd.f32 %v1576_v54, %v4030_v55  ;;  %v1692_v58 = vpop.f32.mrf.mxu0 }
 0x25a   : > { %2350 = vst [vmem:[%s4015_s17] sm:$0xff] %v1464_v51  ;;  %v1693_v18 = vadd.f32 %v1692_v58, %v4007_v28  ;;  %v1805_v17 = vpop.f32.mrf.mxu1  ;;  %v1339_v51 = vld [vmem:[%s4903_s3 + $0x138] sm:$0xff] }
 0x25b   : > { %2351 = vst [vmem:[%s4015_s17 + $0x8] sm:$0xff] %v1577_v2  ;;  %v1806_v49 = vadd.f32 %v1805_v17, %v4009_v38  ;;  %2248 = vmatpush.msrb.mxu1 %v1339_v51 }
 0x25c   : > { %2361 = vst [vmem:[%s4015_s17 + $0x50] sm:$0xff] %v1693_v18  ;;  %1513 = vmatmul.f32.gmra.mxu2 %v4043_v33  ;;  %1739 = vmatmul.f32.gmra.mxu0 %v4043_v33 }
 0x25d   : > { %2362 = vst [vmem:[%s4015_s17 + $0x58] sm:$0xff] %v1806_v49  ;;  %1626 = vmatmul.f32.gmra.mxu3 %v4043_v33  ;;  %1852 = vmatmul.f32.gmra.mxu1 %v4043_v33  ;;  %v4106_v49 = vmax.f32 %v3837_v39, 0.0  ;;  %v1328_v39 = vld [vmem:[%s4903_s3 + $0xe0] sm:$0xff] }
 0x25e   : > { %1910 = vmatpush.msrb.mxu2 %v1328_v39 }
 0x25f   : > { %v1466_v56 = vpop.f32.mrf.mxu2 }
 0x260   : > { %v1467_v31 = vadd.f32 %v1466_v56, %v4025_v53  ;;  %v1579_v48 = vpop.f32.mrf.mxu3 }
 0x261   : > { %v1580_v34 = vadd.f32 %v1579_v48, %v4030_v55  ;;  %v1695_v30 = vpop.f32.mrf.mxu0 }
 0x262   : > { %2359 = vst [vmem:[%s4015_s17 + $0x40] sm:$0xff] %v1467_v31  ;;  %v1696_v21 = vadd.f32 %v1695_v30, %v4007_v28  ;;  %v1808_v52 = vpop.f32.mrf.mxu1  ;;  %v1329_v31 = vld [vmem:[%s4903_s3 + $0xe8] sm:$0xff] }
 0x263   : > { %2360 = vst [vmem:[%s4015_s17 + $0x48] sm:$0xff] %v1580_v34  ;;  %v1809_v46 = vadd.f32 %v1808_v52, %v4009_v38  ;;  %2023 = vmatpush.msrb.mxu3 %v1329_v31 }
 0x264   : > { %2369 = vst [vmem:[%s4015_s17 + $0x90] sm:$0xff] %v1696_v21  ;;  %1516 = vmatmul.f32.gmra.mxu2 %v4064_v11  ;;  %1742 = vmatmul.f32.gmra.mxu0 %v4064_v11 }
 0x265   : > { %2370 = vst [vmem:[%s4015_s17 + $0x98] sm:$0xff] %v1809_v46  ;;  %1629 = vmatmul.f32.gmra.mxu3 %v4064_v11  ;;  %1855 = vmatmul.f32.gmra.mxu1 %v4064_v11  ;;  %v4127_v46 = vmax.f32 %v3853_v57, 0.0  ;;  %v1330_v57 = vld [vmem:[%s4903_s3 + $0xf0] sm:$0xff] }
 0x266   : > { %2136 = vmatpush.msrb.mxu0 %v1330_v57 }
 0x267   : > { %v1469_v16 = vpop.f32.mrf.mxu2 }
 0x268   : > { %v1470_v43 = vadd.f32 %v1469_v16, %v4025_v53  ;;  %v1582_v60 = vpop.f32.mrf.mxu3 }
 0x269   : > { %v1583_v47 = vadd.f32 %v1582_v60, %v4030_v55  ;;  %v1698_v35 = vpop.f32.mrf.mxu0 }
 0x26a   : > { %2367 = vst [vmem:[%s4015_s17 + $0x80] sm:$0xff] %v1470_v43  ;;  %v1699_v59 = vadd.f32 %v1698_v35, %v4007_v28  ;;  %v1811_v61 = vpop.f32.mrf.mxu1  ;;  %v1331_v43 = vld [vmem:[%s4903_s3 + $0xf8] sm:$0xff] }
 0x26b   : > { %2368 = vst [vmem:[%s4015_s17 + $0x88] sm:$0xff] %v1583_v47  ;;  %v1812_v63 = vadd.f32 %v1811_v61, %v4009_v38  ;;  %2249 = vmatpush.msrb.mxu1 %v1331_v43 }
 0x26c   : > { %2377 = vst [vmem:[%s4015_s17 + $0xd0] sm:$0xff] %v1699_v59  ;;  %1519 = vmatmul.f32.gmra.mxu2 %v4085_v7  ;;  %1745 = vmatmul.f32.gmra.mxu0 %v4085_v7 }
 0x26d   : > { %2378 = vst [vmem:[%s4015_s17 + $0xd8] sm:$0xff] %v1812_v63  ;;  %1632 = vmatmul.f32.gmra.mxu3 %v4085_v7  ;;  %1858 = vmatmul.f32.gmra.mxu1 %v4085_v7  ;;  %v4148_v63 = vmax.f32 %v3869_v8, 0.0  ;;  %v1320_v8 = vld [vmem:[%s4903_s3 + $0xa0] sm:$0xff] }
 0x26e   : > { %1911 = vmatpush.msrb.mxu2 %v1320_v8 }
 0x26f   : > { %v1472_v54 = vpop.f32.mrf.mxu2 }
 0x270   : > { %v1473_v2 = vadd.f32 %v1472_v54, %v4025_v53  ;;  %v1585_v58 = vpop.f32.mrf.mxu3 }
 0x271   : > { %v1586_v18 = vadd.f32 %v1585_v58, %v4030_v55  ;;  %v1701_v17 = vpop.f32.mrf.mxu0 }
 0x272   : > { %2375 = vst [vmem:[%s4015_s17 + $0xc0] sm:$0xff] %v1473_v2  ;;  %v1702_v3 = vadd.f32 %v1701_v17, %v4007_v28  ;;  %v1814_v20 = vpop.f32.mrf.mxu1  ;;  %v1321_v2 = vld [vmem:[%s4903_s3 + $0xa8] sm:$0xff] }
 0x273   : > { %2376 = vst [vmem:[%s4015_s17 + $0xc8] sm:$0xff] %v1586_v18  ;;  %v1815_v56 = vadd.f32 %v1814_v20, %v4009_v38  ;;  %2024 = vmatpush.msrb.mxu3 %v1321_v2 }
 0x274   : > { %2385 = vst [vmem:[%s4015_s17 + $0x110] sm:$0xff] %v1702_v3  ;;  %1522 = vmatmul.f32.gmra.mxu2 %v4106_v49  ;;  %1748 = vmatmul.f32.gmra.mxu0 %v4106_v49 }
 0x275   : > { %2386 = vst [vmem:[%s4015_s17 + $0x118] sm:$0xff] %v1815_v56  ;;  %1635 = vmatmul.f32.gmra.mxu3 %v4106_v49  ;;  %1861 = vmatmul.f32.gmra.mxu1 %v4106_v49  ;;  %v4169_v56 = vmax.f32 %v3885_v23, 0.0  ;;  %v1322_v23 = vld [vmem:[%s4903_s3 + $0xb0] sm:$0xff] }
 0x276   : > { %2137 = vmatpush.msrb.mxu0 %v1322_v23 }
 0x277   : > { %v1475_v48 = vpop.f32.mrf.mxu2 }
 0x278   : > { %v1476_v34 = vadd.f32 %v1475_v48, %v4025_v53  ;;  %v1588_v30 = vpop.f32.mrf.mxu3 }
 0x279   : > { %v1589_v21 = vadd.f32 %v1588_v30, %v4030_v55  ;;  %v1704_v52 = vpop.f32.mrf.mxu0 }
 0x27a   : > { %2383 = vst [vmem:[%s4015_s17 + $0x100] sm:$0xff] %v1476_v34  ;;  %v1705_v15 = vadd.f32 %v1704_v52, %v4007_v28  ;;  %v1817_v32 = vpop.f32.mrf.mxu1  ;;  %v1323_v34 = vld [vmem:[%s4903_s3 + $0xb8] sm:$0xff] }
 0x27b   : > { %2384 = vst [vmem:[%s4015_s17 + $0x108] sm:$0xff] %v1589_v21  ;;  %v1818_v16 = vadd.f32 %v1817_v32, %v4009_v38  ;;  %2250 = vmatpush.msrb.mxu1 %v1323_v34 }
 0x27c   : > { %2393 = vst [vmem:[%s4015_s17 + $0x150] sm:$0xff] %v1705_v15  ;;  %1525 = vmatmul.f32.gmra.mxu2 %v4127_v46  ;;  %1751 = vmatmul.f32.gmra.mxu0 %v4127_v46 }
 0x27d   : > { %2394 = vst [vmem:[%s4015_s17 + $0x158] sm:$0xff] %v1818_v16  ;;  %1638 = vmatmul.f32.gmra.mxu3 %v4127_v46  ;;  %1864 = vmatmul.f32.gmra.mxu1 %v4127_v46  ;;  %v4190_v16 = vmax.f32 %v3901_v42, 0.0  ;;  %v1312_v42 = vld [vmem:[%s4903_s3 + $0x60] sm:$0xff] }
 0x27e   : > { %1912 = vmatpush.msrb.mxu2 %v1312_v42 }
 0x27f   : > { %v1478_v60 = vpop.f32.mrf.mxu2 }
 0x280   : > { %v1479_v47 = vadd.f32 %v1478_v60, %v4025_v53  ;;  %v1591_v35 = vpop.f32.mrf.mxu3 }
 0x281   : > { %v1592_v59 = vadd.f32 %v1591_v35, %v4030_v55  ;;  %v1707_v61 = vpop.f32.mrf.mxu0 }
 0x282   : > { %2391 = vst [vmem:[%s4015_s17 + $0x140] sm:$0xff] %v1479_v47  ;;  %v1708_v27 = vadd.f32 %v1707_v61, %v4007_v28  ;;  %v1820_v51 = vpop.f32.mrf.mxu1  ;;  %v1313_v47 = vld [vmem:[%s4903_s3 + $0x68] sm:$0xff] }
 0x283   : > { %2392 = vst [vmem:[%s4015_s17 + $0x148] sm:$0xff] %v1592_v59  ;;  %v1821_v54 = vadd.f32 %v1820_v51, %v4009_v38  ;;  %2025 = vmatpush.msrb.mxu3 %v1313_v47 }
 0x284   : > { %2401 = vst [vmem:[%s4015_s17 + $0x190] sm:$0xff] %v1708_v27  ;;  %1528 = vmatmul.f32.gmra.mxu2 %v4148_v63  ;;  %1754 = vmatmul.f32.gmra.mxu0 %v4148_v63 }
 0x285   : > { %2402 = vst [vmem:[%s4015_s17 + $0x198] sm:$0xff] %v1821_v54  ;;  %1641 = vmatmul.f32.gmra.mxu3 %v4148_v63  ;;  %1867 = vmatmul.f32.gmra.mxu1 %v4148_v63  ;;  %v4211_v54 = vmax.f32 %v3917_v62, 0.0  ;;  %v1314_v62 = vld [vmem:[%s4903_s3 + $0x70] sm:$0xff] }
 0x286   : > { %2138 = vmatpush.msrb.mxu0 %v1314_v62 }
 0x287   : > { %v1481_v58 = vpop.f32.mrf.mxu2 }
 0x288   : > { %v1482_v18 = vadd.f32 %v1481_v58, %v4025_v53  ;;  %v1594_v17 = vpop.f32.mrf.mxu3 }
 0x289   : > { %v1595_v3 = vadd.f32 %v1594_v17, %v4030_v55  ;;  %v1710_v20 = vpop.f32.mrf.mxu0 }
 0x28a   : > { %2399 = vst [vmem:[%s4015_s17 + $0x180] sm:$0xff] %v1482_v18  ;;  %v1711_v39 = vadd.f32 %v1710_v20, %v4007_v28  ;;  %v1823_v31 = vpop.f32.mrf.mxu1  ;;  %v1315_v18 = vld [vmem:[%s4903_s3 + $0x78] sm:$0xff] }
 0x28b   : > { %2400 = vst [vmem:[%s4015_s17 + $0x188] sm:$0xff] %v1595_v3  ;;  %v1824_v48 = vadd.f32 %v1823_v31, %v4009_v38  ;;  %2251 = vmatpush.msrb.mxu1 %v1315_v18 }
 0x28c   : > { %2409 = vst [vmem:[%s4015_s17 + $0x1d0] sm:$0xff] %v1711_v39  ;;  %1531 = vmatmul.f32.gmra.mxu2 %v4169_v56  ;;  %1757 = vmatmul.f32.gmra.mxu0 %v4169_v56 }
 0x28d   : > { %2410 = vst [vmem:[%s4015_s17 + $0x1d8] sm:$0xff] %v1824_v48  ;;  %1644 = vmatmul.f32.gmra.mxu3 %v4169_v56  ;;  %1870 = vmatmul.f32.gmra.mxu1 %v4169_v56  ;;  %v4232_v48 = vmax.f32 %v3933_v19, 0.0  ;;  %v1304_v19 = vld [vmem:[%s4903_s3 + $0x20] sm:$0xff] }
 0x28e   : > { %1913 = vmatpush.msrb.mxu2 %v1304_v19 }
 0x28f   : > { %v1484_v30 = vpop.f32.mrf.mxu2 }
 0x290   : > { %v1485_v21 = vadd.f32 %v1484_v30, %v4025_v53  ;;  %v1597_v52 = vpop.f32.mrf.mxu3 }
 0x291   : > { %v1598_v15 = vadd.f32 %v1597_v52, %v4030_v55  ;;  %v1713_v32 = vpop.f32.mrf.mxu0 }
 0x292   : > { %2407 = vst [vmem:[%s4015_s17 + $0x1c0] sm:$0xff] %v1485_v21  ;;  %v1714_v57 = vadd.f32 %v1713_v32, %v4007_v28  ;;  %v1826_v43 = vpop.f32.mrf.mxu1  ;;  %v1305_v21 = vld [vmem:[%s4903_s3 + $0x28] sm:$0xff] }
 0x293   : > { %2408 = vst [vmem:[%s4015_s17 + $0x1c8] sm:$0xff] %v1598_v15  ;;  %v1827_v60 = vadd.f32 %v1826_v43, %v4009_v38  ;;  %2026 = vmatpush.msrb.mxu3 %v1305_v21 }
 0x294   : > { %2417 = vst [vmem:[%s4015_s17 + $0x210] sm:$0xff] %v1714_v57  ;;  %1534 = vmatmul.f32.gmra.mxu2 %v4190_v16  ;;  %1760 = vmatmul.f32.gmra.mxu0 %v4190_v16 }
 0x295   : > { %2418 = vst [vmem:[%s4015_s17 + $0x218] sm:$0xff] %v1827_v60  ;;  %1647 = vmatmul.f32.gmra.mxu3 %v4190_v16  ;;  %1873 = vmatmul.f32.gmra.mxu1 %v4190_v16  ;;  %v4253_v60 = vmax.f32 %v3949_v45, 0.0  ;;  %v1306_v45 = vld [vmem:[%s4903_s3 + $0x30] sm:$0xff] }
 0x296   : > { %2139 = vmatpush.msrb.mxu0 %v1306_v45 }
 0x297   : > { %v1487_v35 = vpop.f32.mrf.mxu2 }
 0x298   : > { %v1488_v59 = vadd.f32 %v1487_v35, %v4025_v53  ;;  %v1600_v61 = vpop.f32.mrf.mxu3 }
 0x299   : > { %v1601_v27 = vadd.f32 %v1600_v61, %v4030_v55  ;;  %v1716_v51 = vpop.f32.mrf.mxu0 }
 0x29a   : > { %2415 = vst [vmem:[%s4015_s17 + $0x200] sm:$0xff] %v1488_v59  ;;  %v1717_v8 = vadd.f32 %v1716_v51, %v4007_v28  ;;  %v1829_v2 = vpop.f32.mrf.mxu1  ;;  %v1307_v59 = vld [vmem:[%s4903_s3 + $0x38] sm:$0xff] }
 0x29b   : > { %2416 = vst [vmem:[%s4015_s17 + $0x208] sm:$0xff] %v1601_v27  ;;  %v1830_v58 = vadd.f32 %v1829_v2, %v4009_v38  ;;  %2252 = vmatpush.msrb.mxu1 %v1307_v59 }
 0x29c   : > { %2425 = vst [vmem:[%s4015_s17 + $0x250] sm:$0xff] %v1717_v8  ;;  %1537 = vmatmul.f32.gmra.mxu2 %v4211_v54  ;;  %1763 = vmatmul.f32.gmra.mxu0 %v4211_v54 }
 0x29d   : > { %2426 = vst [vmem:[%s4015_s17 + $0x258] sm:$0xff] %v1830_v58  ;;  %1650 = vmatmul.f32.gmra.mxu3 %v4211_v54  ;;  %1876 = vmatmul.f32.gmra.mxu1 %v4211_v54  ;;  %v4274_v58 = vmax.f32 %v3971_v14, 0.0 }
 0x29f   : > { %v1490_v17 = vpop.f32.mrf.mxu2 }
 0x2a0   : > { %v1491_v3 = vadd.f32 %v1490_v17, %v4025_v53  ;;  %v1603_v20 = vpop.f32.mrf.mxu3 }
 0x2a1   : > { %v1604_v39 = vadd.f32 %v1603_v20, %v4030_v55  ;;  %v1719_v31 = vpop.f32.mrf.mxu0 }
 0x2a2   : > { %2423 = vst [vmem:[%s4015_s17 + $0x240] sm:$0xff] %v1491_v3  ;;  %v1720_v23 = vadd.f32 %v1719_v31, %v4007_v28  ;;  %v1832_v34 = vpop.f32.mrf.mxu1 }
 0x2a3   : > { %2424 = vst [vmem:[%s4015_s17 + $0x248] sm:$0xff] %v1604_v39  ;;  %v1833_v30 = vadd.f32 %v1832_v34, %v4009_v38 }
 0x2a4   : > { %2433 = vst [vmem:[%s4015_s17 + $0x290] sm:$0xff] %v1720_v23  ;;  %1540 = vmatmul.f32.gmra.mxu2 %v4232_v48  ;;  %1766 = vmatmul.f32.gmra.mxu0 %v4232_v48  ;;  %v4289_v23 = vmax.f32 %v3989_v10, 0.0 }
 0x2a5   : > { %2434 = vst [vmem:[%s4015_s17 + $0x298] sm:$0xff] %v1833_v30  ;;  %1653 = vmatmul.f32.gmra.mxu3 %v4232_v48  ;;  %1879 = vmatmul.f32.gmra.mxu1 %v4232_v48 }
 0x2a7   : > { %v1493_v52 = vpop.f32.mrf.mxu2 }
 0x2a8   : > { %v1494_v15 = vadd.f32 %v1493_v52, %v4025_v53  ;;  %v1606_v32 = vpop.f32.mrf.mxu3 }
 0x2a9   : > { %v1607_v57 = vadd.f32 %v1606_v32, %v4030_v55  ;;  %v1722_v43 = vpop.f32.mrf.mxu0 }
 0x2aa   : > { %2431 = vst [vmem:[%s4015_s17 + $0x280] sm:$0xff] %v1494_v15  ;;  %v1723_v42 = vadd.f32 %v1722_v43, %v4007_v28  ;;  %v1835_v47 = vpop.f32.mrf.mxu1 }
 0x2ab   : > { %2432 = vst [vmem:[%s4015_s17 + $0x288] sm:$0xff] %v1607_v57  ;;  %v1836_v35 = vadd.f32 %v1835_v47, %v4009_v38  ;;  %v4304_v57 = vmax.f32 %v4005_v6, 0.0 }
 0x2ac   : > { %2441 = vst [vmem:[%s4015_s17 + $0x2d0] sm:$0xff] %v1723_v42  ;;  %1543 = vmatmul.f32.gmra.mxu2 %v4253_v60  ;;  %1769 = vmatmul.f32.gmra.mxu0 %v4253_v60 }
 0x2ad   : > { %2442 = vst [vmem:[%s4015_s17 + $0x2d8] sm:$0xff] %v1836_v35  ;;  %1656 = vmatmul.f32.gmra.mxu3 %v4253_v60  ;;  %1882 = vmatmul.f32.gmra.mxu1 %v4253_v60 }
 0x2af   : > { %v1496_v61 = vpop.f32.mrf.mxu2 }
 0x2b0   : > { %v1497_v27 = vadd.f32 %v1496_v61, %v4025_v53  ;;  %v1609_v51 = vpop.f32.mrf.mxu3 }
 0x2b1   : > { %v1610_v8 = vadd.f32 %v1609_v51, %v4030_v55  ;;  %v1725_v2 = vpop.f32.mrf.mxu0 }
 0x2b2   : > { %2439 = vst [vmem:[%s4015_s17 + $0x2c0] sm:$0xff] %v1497_v27  ;;  %v1726_v62 = vadd.f32 %v1725_v2, %v4007_v28  ;;  %v1838_v18 = vpop.f32.mrf.mxu1  ;;  %v4319_v27 = vmax.f32 %v4038_v41, 0.0 }
 0x2b3   : > { %2440 = vst [vmem:[%s4015_s17 + $0x2c8] sm:$0xff] %v1610_v8  ;;  %v1839_v17 = vadd.f32 %v1838_v18, %v4009_v38 }
 0x2b4   : > { %2449 = vst [vmem:[%s4015_s17 + $0x310] sm:$0xff] %v1726_v62  ;;  %1546 = vmatmul.f32.gmra.mxu2 %v4274_v58  ;;  %1772 = vmatmul.f32.gmra.mxu0 %v4274_v58 }
 0x2b5   : > { %2450 = vst [vmem:[%s4015_s17 + $0x318] sm:$0xff] %v1839_v17  ;;  %1659 = vmatmul.f32.gmra.mxu3 %v4274_v58  ;;  %1885 = vmatmul.f32.gmra.mxu1 %v4274_v58 }
 0x2b7   : > { %v1499_v14 = vpop.f32.mrf.mxu2 }
 0x2b8   : > { %v1500_v3 = vadd.f32 %v1499_v14, %v4025_v53  ;;  %v1612_v20 = vpop.f32.mrf.mxu3 }
 0x2b9   : > { %v1613_v39 = vadd.f32 %v1612_v20, %v4030_v55  ;;  %v1728_v31 = vpop.f32.mrf.mxu0 }
 0x2ba   : > { %2447 = vst [vmem:[%s4015_s17 + $0x300] sm:$0xff] %v1500_v3  ;;  %v1729_v34 = vadd.f32 %v1728_v31, %v4007_v28  ;;  %v1841_v30 = vpop.f32.mrf.mxu1 }
 0x2bb   : > { %2448 = vst [vmem:[%s4015_s17 + $0x308] sm:$0xff] %v1613_v39  ;;  %v1842_v19 = vadd.f32 %v1841_v30, %v4009_v38 }
 0x2bc   : > { %2457 = vst [vmem:[%s4015_s17 + $0x350] sm:$0xff] %v1729_v34  ;;  %1549 = vmatmul.f32.gmra.mxu2 %v4289_v23  ;;  %1775 = vmatmul.f32.gmra.mxu0 %v4289_v23 }
 0x2bd   : > { %2458 = vst [vmem:[%s4015_s17 + $0x358] sm:$0xff] %v1842_v19  ;;  %1662 = vmatmul.f32.gmra.mxu3 %v4289_v23  ;;  %1888 = vmatmul.f32.gmra.mxu1 %v4289_v23 }
 0x2bf   : > { %v1502_v10 = vpop.f32.mrf.mxu2 }
 0x2c0   : > { %v1503_v21 = vadd.f32 %v1502_v10, %v4025_v53  ;;  %v1615_v52 = vpop.f32.mrf.mxu3 }
 0x2c1   : > { %v1616_v15 = vadd.f32 %v1615_v52, %v4030_v55  ;;  %v1731_v32 = vpop.f32.mrf.mxu0 }
 0x2c2   : > { %2455 = vst [vmem:[%s4015_s17 + $0x340] sm:$0xff] %v1503_v21  ;;  %v1732_v43 = vadd.f32 %v1731_v32, %v4007_v28  ;;  %v1844_v42 = vpop.f32.mrf.mxu1 }
 0x2c3   : > { %2456 = vst [vmem:[%s4015_s17 + $0x348] sm:$0xff] %v1616_v15  ;;  %v1845_v47 = vadd.f32 %v1844_v42, %v4009_v38 }
 0x2c4   : > { %2465 = vst [vmem:[%s4015_s17 + $0x390] sm:$0xff] %v1732_v43  ;;  %1552 = vmatmul.f32.gmra.mxu2 %v4304_v57  ;;  %1778 = vmatmul.f32.gmra.mxu0 %v4304_v57 }
 0x2c5   : > { %2466 = vst [vmem:[%s4015_s17 + $0x398] sm:$0xff] %v1845_v47  ;;  %1665 = vmatmul.f32.gmra.mxu3 %v4304_v57  ;;  %1891 = vmatmul.f32.gmra.mxu1 %v4304_v57 }
 0x2c7   : > { %v1505_v6 = vpop.f32.mrf.mxu2 }
 0x2c8   : > { %v1506_v35 = vadd.f32 %v1505_v6, %v4025_v53  ;;  %v1618_v45 = vpop.f32.mrf.mxu3 }
 0x2c9   : > { %v1619_v59 = vadd.f32 %v1618_v45, %v4030_v55  ;;  %v1734_v61 = vpop.f32.mrf.mxu0 }
 0x2ca   : > { %2463 = vst [vmem:[%s4015_s17 + $0x380] sm:$0xff] %v1506_v35  ;;  %v1735_v51 = vadd.f32 %v1734_v61, %v4007_v28  ;;  %v1847_v8 = vpop.f32.mrf.mxu1 }
 0x2cb   : > { %2464 = vst [vmem:[%s4015_s17 + $0x388] sm:$0xff] %v1619_v59  ;;  %v1848_v2 = vadd.f32 %v1847_v8, %v4009_v38 }
 0x2cc   : > { %2473 = vst [vmem:[%s4015_s17 + $0x3d0] sm:$0xff] %v1735_v51  ;;  %1555 = vmatmul.f32.gmra.mxu2 %v4319_v27  ;;  %1781 = vmatmul.f32.gmra.mxu0 %v4319_v27 }
 0x2cd   : > { %2474 = vst [vmem:[%s4015_s17 + $0x3d8] sm:$0xff] %v1848_v2  ;;  %1668 = vmatmul.f32.gmra.mxu3 %v4319_v27  ;;  %1894 = vmatmul.f32.gmra.mxu1 %v4319_v27 }
 0x2cf   : > { %v1508_v41 = vpop.f32.mrf.mxu2 }
 0x2d0   : > { %v1509_v62 = vadd.f32 %v1508_v41, %v4025_v53  ;;  %v1621_v18 = vpop.f32.mrf.mxu3 }
 0x2d1   : > { %v1622_v17 = vadd.f32 %v1621_v18, %v4030_v55  ;;  %v1737_v14 = vpop.f32.mrf.mxu0 }
 0x2d2   : > { %2471 = vst [vmem:[%s4015_s17 + $0x3c0] sm:$0xff] %v1509_v62  ;;  %v1738_v3 = vadd.f32 %v1737_v14, %v4007_v28  ;;  %v1850_v20 = vpop.f32.mrf.mxu1 }
 0x2d3   : > { %2472 = vst [vmem:[%s4015_s17 + $0x3c8] sm:$0xff] %v1622_v17  ;;  %v1851_v39 = vadd.f32 %v1850_v20, %v4009_v38 }
 0x2d4   : > { %2481 = vst [vmem:[%s4015_s17 + $0x410] sm:$0xff] %v1738_v3  ;;  %1914 = vmatmul.f32.vlgmr.msrb.gmra.mxu2 %v3751_v44  ;;  %2140 = vmatmul.f32.vlgmr.msrb.gmra.mxu0 %v3751_v44 }
 0x2d5   : > { %2482 = vst [vmem:[%s4015_s17 + $0x418] sm:$0xff] %v1851_v39  ;;  %2027 = vmatmul.f32.vlgmr.msrb.gmra.mxu3 %v3751_v44  ;;  %2253 = vmatmul.f32.vlgmr.msrb.gmra.mxu1 %v3751_v44 }
 0x2d7   : > { %v1511_v31 = vpop.f32.mrf.mxu2 }
 0x2d8   : > { %v1512_v34 = vadd.f32 %v1511_v31, %v4025_v53  ;;  %v1624_v30 = vpop.f32.mrf.mxu3 }
 0x2d9   : > { %v1625_v19 = vadd.f32 %v1624_v30, %v4030_v55  ;;  %v1740_v10 = vpop.f32.mrf.mxu0 }
 0x2da   : > { %2479 = vst [vmem:[%s4015_s17 + $0x400] sm:$0xff] %v1512_v34  ;;  %v1741_v21 = vadd.f32 %v1740_v10, %v4007_v28  ;;  %v1853_v52 = vpop.f32.mrf.mxu1 }
 0x2db   : > { %2480 = vst [vmem:[%s4015_s17 + $0x408] sm:$0xff] %v1625_v19  ;;  %v1854_v15 = vadd.f32 %v1853_v52, %v4009_v38 }
 0x2dc   : > { %2489 = vst [vmem:[%s4015_s17 + $0x450] sm:$0xff] %v1741_v21  ;;  %1917 = vmatmul.f32.gmra.mxu2 %v3767_v50  ;;  %2143 = vmatmul.f32.gmra.mxu0 %v3767_v50 }
 0x2dd   : > { %2490 = vst [vmem:[%s4015_s17 + $0x458] sm:$0xff] %v1854_v15  ;;  %2030 = vmatmul.f32.gmra.mxu3 %v3767_v50  ;;  %2256 = vmatmul.f32.gmra.mxu1 %v3767_v50 }
 0x2df   : > { %v1514_v44 = vpop.f32.mrf.mxu2 }
 0x2e0   : > { %v1515_v32 = vadd.f32 %v1514_v44, %v4025_v53  ;;  %v1627_v43 = vpop.f32.mrf.mxu3 }
 0x2e1   : > { %v1628_v42 = vadd.f32 %v1627_v43, %v4030_v55  ;;  %v1743_v47 = vpop.f32.mrf.mxu0 }
 0x2e2   : > { %2487 = vst [vmem:[%s4015_s17 + $0x440] sm:$0xff] %v1515_v32  ;;  %v1744_v6 = vadd.f32 %v1743_v47, %v4007_v28  ;;  %v1856_v35 = vpop.f32.mrf.mxu1 }
 0x2e3   : > { %2488 = vst [vmem:[%s4015_s17 + $0x448] sm:$0xff] %v1628_v42  ;;  %v1857_v45 = vadd.f32 %v1856_v35, %v4009_v38 }
 0x2e4   : > { %2497 = vst [vmem:[%s4015_s17 + $0x490] sm:$0xff] %v1744_v6  ;;  %1920 = vmatmul.f32.gmra.mxu2 %v3783_v5  ;;  %2146 = vmatmul.f32.gmra.mxu0 %v3783_v5 }
 0x2e5   : > { %2498 = vst [vmem:[%s4015_s17 + $0x498] sm:$0xff] %v1857_v45  ;;  %2033 = vmatmul.f32.gmra.mxu3 %v3783_v5  ;;  %2259 = vmatmul.f32.gmra.mxu1 %v3783_v5 }
 0x2e7   : > { %v1517_v50 = vpop.f32.mrf.mxu2 }
 0x2e8   : > { %v1518_v59 = vadd.f32 %v1517_v50, %v4025_v53  ;;  %v1630_v61 = vpop.f32.mrf.mxu3 }
 0x2e9   : > { %v1631_v51 = vadd.f32 %v1630_v61, %v4030_v55  ;;  %v1746_v8 = vpop.f32.mrf.mxu0 }
 0x2ea   : > { %2495 = vst [vmem:[%s4015_s17 + $0x480] sm:$0xff] %v1518_v59  ;;  %v1747_v2 = vadd.f32 %v1746_v8, %v4007_v28  ;;  %v1859_v41 = vpop.f32.mrf.mxu1 }
 0x2eb   : > { %2496 = vst [vmem:[%s4015_s17 + $0x488] sm:$0xff] %v1631_v51  ;;  %v1860_v62 = vadd.f32 %v1859_v41, %v4009_v38 }
 0x2ec   : > { %2505 = vst [vmem:[%s4015_s17 + $0x4d0] sm:$0xff] %v1747_v2  ;;  %1923 = vmatmul.f32.gmra.mxu2 %v3799_v40  ;;  %2149 = vmatmul.f32.gmra.mxu0 %v3799_v40 }
 0x2ed   : > { %2506 = vst [vmem:[%s4015_s17 + $0x4d8] sm:$0xff] %v1860_v62  ;;  %2036 = vmatmul.f32.gmra.mxu3 %v3799_v40  ;;  %2262 = vmatmul.f32.gmra.mxu1 %v3799_v40 }
 0x2ef   : > { %v1520_v5 = vpop.f32.mrf.mxu2 }
 0x2f0   : > { %v1521_v18 = vadd.f32 %v1520_v5, %v4025_v53  ;;  %v1633_v17 = vpop.f32.mrf.mxu3 }
 0x2f1   : > { %v1634_v14 = vadd.f32 %v1633_v17, %v4030_v55  ;;  %v1749_v3 = vpop.f32.mrf.mxu0 }
 0x2f2   : > { %2503 = vst [vmem:[%s4015_s17 + $0x4c0] sm:$0xff] %v1521_v18  ;;  %v1750_v20 = vadd.f32 %v1749_v3, %v4007_v28  ;;  %v1862_v39 = vpop.f32.mrf.mxu1 }
 0x2f3   : > { %2504 = vst [vmem:[%s4015_s17 + $0x4c8] sm:$0xff] %v1634_v14  ;;  %v1863_v31 = vadd.f32 %v1862_v39, %v4009_v38 }
 0x2f4   : > { %2513 = vst [vmem:[%s4015_s17 + $0x510] sm:$0xff] %v1750_v20  ;;  %1926 = vmatmul.f32.gmra.mxu2 %v3815_v4  ;;  %2152 = vmatmul.f32.gmra.mxu0 %v3815_v4 }
 0x2f5   : > { %2514 = vst [vmem:[%s4015_s17 + $0x518] sm:$0xff] %v1863_v31  ;;  %2039 = vmatmul.f32.gmra.mxu3 %v3815_v4  ;;  %2265 = vmatmul.f32.gmra.mxu1 %v3815_v4 }
 0x2f7   : > { %v1523_v40 = vpop.f32.mrf.mxu2 }
 0x2f8   : > { %v1524_v34 = vadd.f32 %v1523_v40, %v4025_v53  ;;  %v1636_v30 = vpop.f32.mrf.mxu3 }
 0x2f9   : > { %v1637_v19 = vadd.f32 %v1636_v30, %v4030_v55  ;;  %v1752_v10 = vpop.f32.mrf.mxu0 }
 0x2fa   : > { %2511 = vst [vmem:[%s4015_s17 + $0x500] sm:$0xff] %v1524_v34  ;;  %v1753_v21 = vadd.f32 %v1752_v10, %v4007_v28  ;;  %v1865_v52 = vpop.f32.mrf.mxu1 }
 0x2fb   : > { %2512 = vst [vmem:[%s4015_s17 + $0x508] sm:$0xff] %v1637_v19  ;;  %v1866_v15 = vadd.f32 %v1865_v52, %v4009_v38 }
 0x2fc   : > { %2521 = vst [vmem:[%s4015_s17 + $0x550] sm:$0xff] %v1753_v21  ;;  %1929 = vmatmul.f32.gmra.mxu2 %v3831_v36  ;;  %2155 = vmatmul.f32.gmra.mxu0 %v3831_v36 }
 0x2fd   : > { %2522 = vst [vmem:[%s4015_s17 + $0x558] sm:$0xff] %v1866_v15  ;;  %2042 = vmatmul.f32.gmra.mxu3 %v3831_v36  ;;  %2268 = vmatmul.f32.gmra.mxu1 %v3831_v36 }
 0x2ff   : > { %v1526_v4 = vpop.f32.mrf.mxu2 }
 0x300   : > { %v1527_v44 = vadd.f32 %v1526_v4, %v4025_v53  ;;  %v1639_v32 = vpop.f32.mrf.mxu3 }
 0x301   : > { %v1640_v43 = vadd.f32 %v1639_v32, %v4030_v55  ;;  %v1755_v42 = vpop.f32.mrf.mxu0 }
 0x302   : > { %2519 = vst [vmem:[%s4015_s17 + $0x540] sm:$0xff] %v1527_v44  ;;  %v1756_v47 = vadd.f32 %v1755_v42, %v4007_v28  ;;  %v1868_v6 = vpop.f32.mrf.mxu1 }
 0x303   : > { %2520 = vst [vmem:[%s4015_s17 + $0x548] sm:$0xff] %v1640_v43  ;;  %v1869_v35 = vadd.f32 %v1868_v6, %v4009_v38 }
 0x304   : > { %2529 = vst [vmem:[%s4015_s17 + $0x590] sm:$0xff] %v1756_v47  ;;  %1932 = vmatmul.f32.gmra.mxu2 %v3847_v26  ;;  %2158 = vmatmul.f32.gmra.mxu0 %v3847_v26 }
 0x305   : > { %2530 = vst [vmem:[%s4015_s17 + $0x598] sm:$0xff] %v1869_v35  ;;  %2045 = vmatmul.f32.gmra.mxu3 %v3847_v26  ;;  %2271 = vmatmul.f32.gmra.mxu1 %v3847_v26 }
 0x307   : > { %v1529_v36 = vpop.f32.mrf.mxu2 }
 0x308   : > { %v1530_v45 = vadd.f32 %v1529_v36, %v4025_v53  ;;  %v1642_v50 = vpop.f32.mrf.mxu3 }
 0x309   : > { %v1643_v59 = vadd.f32 %v1642_v50, %v4030_v55  ;;  %v1758_v61 = vpop.f32.mrf.mxu0 }
 0x30a   : > { %2527 = vst [vmem:[%s4015_s17 + $0x580] sm:$0xff] %v1530_v45  ;;  %v1759_v51 = vadd.f32 %v1758_v61, %v4007_v28  ;;  %v1871_v8 = vpop.f32.mrf.mxu1 }
 0x30b   : > { %2528 = vst [vmem:[%s4015_s17 + $0x588] sm:$0xff] %v1643_v59  ;;  %v1872_v2 = vadd.f32 %v1871_v8, %v4009_v38 }
 0x30c   : > { %2537 = vst [vmem:[%s4015_s17 + $0x5d0] sm:$0xff] %v1759_v51  ;;  %1935 = vmatmul.f32.gmra.mxu2 %v3863_v13  ;;  %2161 = vmatmul.f32.gmra.mxu0 %v3863_v13 }
 0x30d   : > { %2538 = vst [vmem:[%s4015_s17 + $0x5d8] sm:$0xff] %v1872_v2  ;;  %2048 = vmatmul.f32.gmra.mxu3 %v3863_v13  ;;  %2274 = vmatmul.f32.gmra.mxu1 %v3863_v13 }
 0x30f   : > { %v1532_v26 = vpop.f32.mrf.mxu2 }
 0x310   : > { %v1533_v41 = vadd.f32 %v1532_v26, %v4025_v53  ;;  %v1645_v62 = vpop.f32.mrf.mxu3 }
 0x311   : > { %v1646_v5 = vadd.f32 %v1645_v62, %v4030_v55  ;;  %v1761_v18 = vpop.f32.mrf.mxu0 }
 0x312   : > { %2535 = vst [vmem:[%s4015_s17 + $0x5c0] sm:$0xff] %v1533_v41  ;;  %v1762_v17 = vadd.f32 %v1761_v18, %v4007_v28  ;;  %v1874_v14 = vpop.f32.mrf.mxu1 }
 0x313   : > { %2536 = vst [vmem:[%s4015_s17 + $0x5c8] sm:$0xff] %v1646_v5  ;;  %v1875_v3 = vadd.f32 %v1874_v14, %v4009_v38 }
 0x314   : > { %2545 = vst [vmem:[%s4015_s17 + $0x610] sm:$0xff] %v1762_v17  ;;  %1938 = vmatmul.f32.gmra.mxu2 %v3879_v24  ;;  %2164 = vmatmul.f32.gmra.mxu0 %v3879_v24 }
 0x315   : > { %2546 = vst [vmem:[%s4015_s17 + $0x618] sm:$0xff] %v1875_v3  ;;  %2051 = vmatmul.f32.gmra.mxu3 %v3879_v24  ;;  %2277 = vmatmul.f32.gmra.mxu1 %v3879_v24 }
 0x317   : > { %v1535_v13 = vpop.f32.mrf.mxu2 }
 0x318   : > { %v1536_v20 = vadd.f32 %v1535_v13, %v4025_v53  ;;  %v1648_v39 = vpop.f32.mrf.mxu3 }
 0x319   : > { %v1649_v31 = vadd.f32 %v1648_v39, %v4030_v55  ;;  %v1764_v40 = vpop.f32.mrf.mxu0 }
 0x31a   : > { %2543 = vst [vmem:[%s4015_s17 + $0x600] sm:$0xff] %v1536_v20  ;;  %v1765_v34 = vadd.f32 %v1764_v40, %v4007_v28  ;;  %v1877_v30 = vpop.f32.mrf.mxu1 }
 0x31b   : > { %2544 = vst [vmem:[%s4015_s17 + $0x608] sm:$0xff] %v1649_v31  ;;  %v1878_v19 = vadd.f32 %v1877_v30, %v4009_v38 }
 0x31c   : > { %2553 = vst [vmem:[%s4015_s17 + $0x650] sm:$0xff] %v1765_v34  ;;  %1941 = vmatmul.f32.gmra.mxu2 %v3895_v37  ;;  %2167 = vmatmul.f32.gmra.mxu0 %v3895_v37 }
 0x31d   : > { %2554 = vst [vmem:[%s4015_s17 + $0x658] sm:$0xff] %v1878_v19  ;;  %2054 = vmatmul.f32.gmra.mxu3 %v3895_v37  ;;  %2280 = vmatmul.f32.gmra.mxu1 %v3895_v37 }
 0x31f   : > { %v1538_v24 = vpop.f32.mrf.mxu2 }
 0x320   : > { %v1539_v10 = vadd.f32 %v1538_v24, %v4025_v53  ;;  %v1651_v21 = vpop.f32.mrf.mxu3 }
 0x321   : > { %v1652_v52 = vadd.f32 %v1651_v21, %v4030_v55  ;;  %v1767_v15 = vpop.f32.mrf.mxu0 }
 0x322   : > { %2551 = vst [vmem:[%s4015_s17 + $0x640] sm:$0xff] %v1539_v10  ;;  %v1768_v4 = vadd.f32 %v1767_v15, %v4007_v28  ;;  %v1880_v44 = vpop.f32.mrf.mxu1 }
 0x323   : > { %2552 = vst [vmem:[%s4015_s17 + $0x648] sm:$0xff] %v1652_v52  ;;  %v1881_v32 = vadd.f32 %v1880_v44, %v4009_v38 }
 0x324   : > { %2561 = vst [vmem:[%s4015_s17 + $0x690] sm:$0xff] %v1768_v4  ;;  %1944 = vmatmul.f32.gmra.mxu2 %v3911_v1  ;;  %2170 = vmatmul.f32.gmra.mxu0 %v3911_v1 }
 0x325   : > { %2562 = vst [vmem:[%s4015_s17 + $0x698] sm:$0xff] %v1881_v32  ;;  %2057 = vmatmul.f32.gmra.mxu3 %v3911_v1  ;;  %2283 = vmatmul.f32.gmra.mxu1 %v3911_v1 }
 0x327   : > { %v1541_v37 = vpop.f32.mrf.mxu2 }
 0x328   : > { %v1542_v43 = vadd.f32 %v1541_v37, %v4025_v53  ;;  %v1654_v42 = vpop.f32.mrf.mxu3 }
 0x329   : > { %v1655_v47 = vadd.f32 %v1654_v42, %v4030_v55  ;;  %v1770_v6 = vpop.f32.mrf.mxu0 }
 0x32a   : > { %2559 = vst [vmem:[%s4015_s17 + $0x680] sm:$0xff] %v1542_v43  ;;  %v1771_v35 = vadd.f32 %v1770_v6, %v4007_v28  ;;  %v1883_v36 = vpop.f32.mrf.mxu1 }
 0x32b   : > { %2560 = vst [vmem:[%s4015_s17 + $0x688] sm:$0xff] %v1655_v47  ;;  %v1884_v45 = vadd.f32 %v1883_v36, %v4009_v38 }
 0x32c   : > { %2569 = vst [vmem:[%s4015_s17 + $0x6d0] sm:$0xff] %v1771_v35  ;;  %1947 = vmatmul.f32.gmra.mxu2 %v3927_v22  ;;  %2173 = vmatmul.f32.gmra.mxu0 %v3927_v22 }
 0x32d   : > { %2570 = vst [vmem:[%s4015_s17 + $0x6d8] sm:$0xff] %v1884_v45  ;;  %2060 = vmatmul.f32.gmra.mxu3 %v3927_v22  ;;  %2286 = vmatmul.f32.gmra.mxu1 %v3927_v22 }
 0x32f   : > { %v1544_v1 = vpop.f32.mrf.mxu2 }
 0x330   : > { %v1545_v50 = vadd.f32 %v1544_v1, %v4025_v53  ;;  %v1657_v59 = vpop.f32.mrf.mxu3 }
 0x331   : > { %v1658_v61 = vadd.f32 %v1657_v59, %v4030_v55  ;;  %v1773_v51 = vpop.f32.mrf.mxu0 }
 0x332   : > { %2567 = vst [vmem:[%s4015_s17 + $0x6c0] sm:$0xff] %v1545_v50  ;;  %v1774_v8 = vadd.f32 %v1773_v51, %v4007_v28  ;;  %v1886_v2 = vpop.f32.mrf.mxu1 }
 0x333   : > { %2568 = vst [vmem:[%s4015_s17 + $0x6c8] sm:$0xff] %v1658_v61  ;;  %v1887_v26 = vadd.f32 %v1886_v2, %v4009_v38 }
 0x334   : > { %2577 = vst [vmem:[%s4015_s17 + $0x710] sm:$0xff] %v1774_v8  ;;  %1950 = vmatmul.f32.gmra.mxu2 %v3943_v25  ;;  %2176 = vmatmul.f32.gmra.mxu0 %v3943_v25 }
 0x335   : > { %2578 = vst [vmem:[%s4015_s17 + $0x718] sm:$0xff] %v1887_v26  ;;  %2063 = vmatmul.f32.gmra.mxu3 %v3943_v25  ;;  %2289 = vmatmul.f32.gmra.mxu1 %v3943_v25 }
 0x337   : > { %v1547_v22 = vpop.f32.mrf.mxu2 }
 0x338   : > { %v1548_v41 = vadd.f32 %v1547_v22, %v4025_v53  ;;  %v1660_v62 = vpop.f32.mrf.mxu3 }
 0x339   : > { %v1661_v5 = vadd.f32 %v1660_v62, %v4030_v55  ;;  %v1776_v18 = vpop.f32.mrf.mxu0 }
 0x33a   : > { %2575 = vst [vmem:[%s4015_s17 + $0x700] sm:$0xff] %v1548_v41  ;;  %v1777_v17 = vadd.f32 %v1776_v18, %v4007_v28  ;;  %v1889_v14 = vpop.f32.mrf.mxu1 }
 0x33b   : > { %2576 = vst [vmem:[%s4015_s17 + $0x708] sm:$0xff] %v1661_v5  ;;  %v1890_v3 = vadd.f32 %v1889_v14, %v4009_v38 }
 0x33c   : > { %2585 = vst [vmem:[%s4015_s17 + $0x750] sm:$0xff] %v1777_v17  ;;  %1953 = vmatmul.f32.gmra.mxu2 %v3959_v9  ;;  %2179 = vmatmul.f32.gmra.mxu0 %v3959_v9 }
 0x33d   : > { %2586 = vst [vmem:[%s4015_s17 + $0x758] sm:$0xff] %v1890_v3  ;;  %2066 = vmatmul.f32.gmra.mxu3 %v3959_v9  ;;  %2292 = vmatmul.f32.gmra.mxu1 %v3959_v9 }
 0x33f   : > { %v1550_v25 = vpop.f32.mrf.mxu2 }
 0x340   : > { %v1551_v13 = vadd.f32 %v1550_v25, %v4025_v53  ;;  %v1663_v20 = vpop.f32.mrf.mxu3 }
 0x341   : > { %v1664_v39 = vadd.f32 %v1663_v20, %v4030_v55  ;;  %v1779_v31 = vpop.f32.mrf.mxu0 }
 0x342   : > { %2583 = vst [vmem:[%s4015_s17 + $0x740] sm:$0xff] %v1551_v13  ;;  %v1780_v40 = vadd.f32 %v1779_v31, %v4007_v28  ;;  %v1892_v34 = vpop.f32.mrf.mxu1 }
 0x343   : > { %2584 = vst [vmem:[%s4015_s17 + $0x748] sm:$0xff] %v1664_v39  ;;  %v1893_v30 = vadd.f32 %v1892_v34, %v4009_v38 }
 0x344   : > { %2593 = vst [vmem:[%s4015_s17 + $0x790] sm:$0xff] %v1780_v40  ;;  %1956 = vmatmul.f32.gmra.mxu2 %v3975_v29  ;;  %2182 = vmatmul.f32.gmra.mxu0 %v3975_v29 }
 0x345   : > { %2594 = vst [vmem:[%s4015_s17 + $0x798] sm:$0xff] %v1893_v30  ;;  %2069 = vmatmul.f32.gmra.mxu3 %v3975_v29  ;;  %2295 = vmatmul.f32.gmra.mxu1 %v3975_v29  ;;  %v2836_v29 = vld [vmem:[#allocation7] sm:$0xff] }
 0x346   : > { %v4523_v44 = vperm.slane %v2836_v29, 6  ;;  %v4525_v32 = vperm.slane %v2836_v29, 7 }
 0x347   : > { %v1553_v9 = vpop.f32.mrf.mxu2 }
 0x348   : > { %v1554_v19 = vadd.f32 %v1553_v9, %v4025_v53  ;;  %v1666_v24 = vpop.f32.mrf.mxu3 }
 0x349   : > { %v1667_v10 = vadd.f32 %v1666_v24, %v4030_v55  ;;  %v1782_v21 = vpop.f32.mrf.mxu0 }
 0x34a   : > { %2591 = vst [vmem:[%s4015_s17 + $0x780] sm:$0xff] %v1554_v19  ;;  %v1783_v52 = vadd.f32 %v1782_v21, %v4007_v28  ;;  %v1895_v15 = vpop.f32.mrf.mxu1 }
 0x34b   : > { %2592 = vst [vmem:[%s4015_s17 + $0x788] sm:$0xff] %v1667_v10  ;;  %v1896_v4 = vadd.f32 %v1895_v15, %v4009_v38 }
 0x34c   : > { %2601 = vst [vmem:[%s4015_s17 + $0x7d0] sm:$0xff] %v1783_v52  ;;  %1959 = vmatmul.f32.gmra.mxu2 %v3993_v0  ;;  %2185 = vmatmul.f32.gmra.mxu0 %v3993_v0 }
 0x34d   : > { %2602 = vst [vmem:[%s4015_s17 + $0x7d8] sm:$0xff] %v1896_v4  ;;  %2072 = vmatmul.f32.gmra.mxu3 %v3993_v0  ;;  %2298 = vmatmul.f32.gmra.mxu1 %v3993_v0 }
 0x34f   : > { %v1556_v28 = vpop.f32.mrf.mxu2 }
 0x350   : > { %v1557_v38 = vadd.f32 %v1556_v28, %v4025_v53  ;;  %v1669_v37 = vpop.f32.mrf.mxu3  ;;  %v4536_v53 = vperm.slane %v2836_v29, 4 }
 0x351   : > { %v1670_v43 = vadd.f32 %v1669_v37, %v4030_v55  ;;  %v2141_v42 = vpop.f32.mrf.mxu0  ;;  %v4542_v55 = vperm.slane %v2836_v29, 5 }
 0x352   : > { %2599 = vst [vmem:[%s4015_s17 + $0x7c0] sm:$0xff] %v1557_v38  ;;  %v2142_v47 = vadd.f32 %v2141_v42, %v4523_v44  ;;  %v2254_v6 = vpop.f32.mrf.mxu1 }
 0x353   : > { %2600 = vst [vmem:[%s4015_s17 + $0x7c8] sm:$0xff] %v1670_v43  ;;  %v2255_v0 = vadd.f32 %v2254_v6, %v4525_v32 }
 0x354   : > { %2356 = vst [vmem:[%s4015_s17 + $0x30] sm:$0xff] %v2142_v47  ;;  %1962 = vmatmul.f32.gmra.mxu2 %v4018_v12  ;;  %2188 = vmatmul.f32.gmra.mxu0 %v4018_v12 }
 0x355   : > { %2358 = vst.msk [vmem:[%s4015_s17 + $0x38] sm:$0xff] %vm2357_vm0, %v2255_v0  ;;  %2075 = vmatmul.f32.gmra.mxu3 %v4018_v12  ;;  %2301 = vmatmul.f32.gmra.mxu1 %v4018_v12 }
 0x357   : > { %v1915_v35 = vpop.f32.mrf.mxu2 }
 0x358   : > { %v1916_v36 = vadd.f32 %v1915_v35, %v4536_v53  ;;  %v2028_v45 = vpop.f32.mrf.mxu3 }
 0x359   : > { %v2029_v1 = vadd.f32 %v2028_v45, %v4542_v55  ;;  %v2144_v50 = vpop.f32.mrf.mxu0 }
 0x35a   : > { %2354 = vst [vmem:[%s4015_s17 + $0x20] sm:$0xff] %v1916_v36  ;;  %v2145_v59 = vadd.f32 %v2144_v50, %v4523_v44  ;;  %v2257_v61 = vpop.f32.mrf.mxu1 }
 0x35b   : > { %2355 = vst [vmem:[%s4015_s17 + $0x28] sm:$0xff] %v2029_v1  ;;  %v2258_v51 = vadd.f32 %v2257_v61, %v4525_v32 }
 0x35c   : > { %2365 = vst [vmem:[%s4015_s17 + $0x70] sm:$0xff] %v2145_v59  ;;  %1965 = vmatmul.f32.gmra.mxu2 %v4043_v33  ;;  %2191 = vmatmul.f32.gmra.mxu0 %v4043_v33 }
 0x35d   : > { %2366 = vst.msk [vmem:[%s4015_s17 + $0x78] sm:$0xff] %vm2357_vm0, %v2258_v51  ;;  %2078 = vmatmul.f32.gmra.mxu3 %v4043_v33  ;;  %2304 = vmatmul.f32.gmra.mxu1 %v4043_v33 }
 0x35f   : > { %v1918_v12 = vpop.f32.mrf.mxu2 }
 0x360   : > { %v1919_v8 = vadd.f32 %v1918_v12, %v4536_v53  ;;  %v2031_v2 = vpop.f32.mrf.mxu3 }
 0x361   : > { %v2032_v26 = vadd.f32 %v2031_v2, %v4542_v55  ;;  %v2147_v22 = vpop.f32.mrf.mxu0 }
 0x362   : > { %2363 = vst [vmem:[%s4015_s17 + $0x60] sm:$0xff] %v1919_v8  ;;  %v2148_v41 = vadd.f32 %v2147_v22, %v4523_v44  ;;  %v2260_v62 = vpop.f32.mrf.mxu1 }
 0x363   : > { %2364 = vst [vmem:[%s4015_s17 + $0x68] sm:$0xff] %v2032_v26  ;;  %v2261_v5 = vadd.f32 %v2260_v62, %v4525_v32 }
 0x364   : > { %2373 = vst [vmem:[%s4015_s17 + $0xb0] sm:$0xff] %v2148_v41  ;;  %1968 = vmatmul.f32.gmra.mxu2 %v4064_v11  ;;  %2194 = vmatmul.f32.gmra.mxu0 %v4064_v11 }
 0x365   : > { %2374 = vst.msk [vmem:[%s4015_s17 + $0xb8] sm:$0xff] %vm2357_vm0, %v2261_v5  ;;  %2081 = vmatmul.f32.gmra.mxu3 %v4064_v11  ;;  %2307 = vmatmul.f32.gmra.mxu1 %v4064_v11 }
 0x367   : > { %v1921_v33 = vpop.f32.mrf.mxu2 }
 0x368   : > { %v1922_v18 = vadd.f32 %v1921_v33, %v4536_v53  ;;  %v2034_v17 = vpop.f32.mrf.mxu3 }
 0x369   : > { %v2035_v14 = vadd.f32 %v2034_v17, %v4542_v55  ;;  %v2150_v3 = vpop.f32.mrf.mxu0 }
 0x36a   : > { %2371 = vst [vmem:[%s4015_s17 + $0xa0] sm:$0xff] %v1922_v18  ;;  %v2151_v25 = vadd.f32 %v2150_v3, %v4523_v44  ;;  %v2263_v13 = vpop.f32.mrf.mxu1 }
 0x36b   : > { %2372 = vst [vmem:[%s4015_s17 + $0xa8] sm:$0xff] %v2035_v14  ;;  %v2264_v20 = vadd.f32 %v2263_v13, %v4525_v32 }
 0x36c   : > { %2381 = vst [vmem:[%s4015_s17 + $0xf0] sm:$0xff] %v2151_v25  ;;  %1971 = vmatmul.f32.gmra.mxu2 %v4085_v7  ;;  %2197 = vmatmul.f32.gmra.mxu0 %v4085_v7 }
 0x36d   : > { %2382 = vst.msk [vmem:[%s4015_s17 + $0xf8] sm:$0xff] %vm2357_vm0, %v2264_v20  ;;  %2084 = vmatmul.f32.gmra.mxu3 %v4085_v7  ;;  %2310 = vmatmul.f32.gmra.mxu1 %v4085_v7 }
 0x36f   : > { %v1924_v11 = vpop.f32.mrf.mxu2 }
 0x370   : > { %v1925_v39 = vadd.f32 %v1924_v11, %v4536_v53  ;;  %v2037_v31 = vpop.f32.mrf.mxu3 }
 0x371   : > { %v2038_v40 = vadd.f32 %v2037_v31, %v4542_v55  ;;  %v2153_v34 = vpop.f32.mrf.mxu0 }
 0x372   : > { %2379 = vst [vmem:[%s4015_s17 + $0xe0] sm:$0xff] %v1925_v39  ;;  %v2154_v30 = vadd.f32 %v2153_v34, %v4523_v44  ;;  %v2266_v9 = vpop.f32.mrf.mxu1 }
 0x373   : > { %2380 = vst [vmem:[%s4015_s17 + $0xe8] sm:$0xff] %v2038_v40  ;;  %v2267_v19 = vadd.f32 %v2266_v9, %v4525_v32 }
 0x374   : > { %2389 = vst [vmem:[%s4015_s17 + $0x130] sm:$0xff] %v2154_v30  ;;  %1974 = vmatmul.f32.gmra.mxu2 %v4106_v49  ;;  %2200 = vmatmul.f32.gmra.mxu0 %v4106_v49 }
 0x375   : > { %2390 = vst.msk [vmem:[%s4015_s17 + $0x138] sm:$0xff] %vm2357_vm0, %v2267_v19  ;;  %2087 = vmatmul.f32.gmra.mxu3 %v4106_v49  ;;  %2313 = vmatmul.f32.gmra.mxu1 %v4106_v49 }
 0x377   : > { %v1927_v7 = vpop.f32.mrf.mxu2 }
 0x378   : > { %v1928_v24 = vadd.f32 %v1927_v7, %v4536_v53  ;;  %v2040_v10 = vpop.f32.mrf.mxu3 }
 0x379   : > { %v2041_v21 = vadd.f32 %v2040_v10, %v4542_v55  ;;  %v2156_v52 = vpop.f32.mrf.mxu0 }
 0x37a   : > { %2387 = vst [vmem:[%s4015_s17 + $0x120] sm:$0xff] %v1928_v24  ;;  %v2157_v15 = vadd.f32 %v2156_v52, %v4523_v44  ;;  %v2269_v4 = vpop.f32.mrf.mxu1 }
 0x37b   : > { %2388 = vst [vmem:[%s4015_s17 + $0x128] sm:$0xff] %v2041_v21  ;;  %v2270_v29 = vadd.f32 %v2269_v4, %v4525_v32 }
 0x37c   : > { %2397 = vst [vmem:[%s4015_s17 + $0x170] sm:$0xff] %v2157_v15  ;;  %1977 = vmatmul.f32.gmra.mxu2 %v4127_v46  ;;  %2203 = vmatmul.f32.gmra.mxu0 %v4127_v46 }
 0x37d   : > { %2398 = vst.msk [vmem:[%s4015_s17 + $0x178] sm:$0xff] %vm2357_vm0, %v2270_v29  ;;  %2090 = vmatmul.f32.gmra.mxu3 %v4127_v46  ;;  %2316 = vmatmul.f32.gmra.mxu1 %v4127_v46 }
 0x37f   : > { %v1930_v49 = vpop.f32.mrf.mxu2 }
 0x380   : > { %v1931_v28 = vadd.f32 %v1930_v49, %v4536_v53  ;;  %v2043_v38 = vpop.f32.mrf.mxu3 }
 0x381   : > { %v2044_v37 = vadd.f32 %v2043_v38, %v4542_v55  ;;  %v2159_v43 = vpop.f32.mrf.mxu0 }
 0x382   : > { %2395 = vst [vmem:[%s4015_s17 + $0x160] sm:$0xff] %v1931_v28  ;;  %v2160_v42 = vadd.f32 %v2159_v43, %v4523_v44  ;;  %v2272_v47 = vpop.f32.mrf.mxu1 }
 0x383   : > { %2396 = vst [vmem:[%s4015_s17 + $0x168] sm:$0xff] %v2044_v37  ;;  %v2273_v6 = vadd.f32 %v2272_v47, %v4525_v32 }
 0x384   : > { %2405 = vst [vmem:[%s4015_s17 + $0x1b0] sm:$0xff] %v2160_v42  ;;  %1980 = vmatmul.f32.gmra.mxu2 %v4148_v63  ;;  %2206 = vmatmul.f32.gmra.mxu0 %v4148_v63 }
 0x385   : > { %2406 = vst.msk [vmem:[%s4015_s17 + $0x1b8] sm:$0xff] %vm2357_vm0, %v2273_v6  ;;  %2093 = vmatmul.f32.gmra.mxu3 %v4148_v63  ;;  %2319 = vmatmul.f32.gmra.mxu1 %v4148_v63 }
 0x387   : > { %v1933_v46 = vpop.f32.mrf.mxu2 }
 0x388   : > { %v1934_v0 = vadd.f32 %v1933_v46, %v4536_v53  ;;  %v2046_v35 = vpop.f32.mrf.mxu3 }
 0x389   : > { %v2047_v36 = vadd.f32 %v2046_v35, %v4542_v55  ;;  %v2162_v45 = vpop.f32.mrf.mxu0 }
 0x38a   : > { %2403 = vst [vmem:[%s4015_s17 + $0x1a0] sm:$0xff] %v1934_v0  ;;  %v2163_v1 = vadd.f32 %v2162_v45, %v4523_v44  ;;  %v2275_v50 = vpop.f32.mrf.mxu1 }
 0x38b   : > { %2404 = vst [vmem:[%s4015_s17 + $0x1a8] sm:$0xff] %v2047_v36  ;;  %v2276_v59 = vadd.f32 %v2275_v50, %v4525_v32 }
 0x38c   : > { %2413 = vst [vmem:[%s4015_s17 + $0x1f0] sm:$0xff] %v2163_v1  ;;  %1983 = vmatmul.f32.gmra.mxu2 %v4169_v56  ;;  %2209 = vmatmul.f32.gmra.mxu0 %v4169_v56 }
 0x38d   : > { %2414 = vst.msk [vmem:[%s4015_s17 + $0x1f8] sm:$0xff] %vm2357_vm0, %v2276_v59  ;;  %2096 = vmatmul.f32.gmra.mxu3 %v4169_v56  ;;  %2322 = vmatmul.f32.gmra.mxu1 %v4169_v56 }
 0x38f   : > { %v1936_v63 = vpop.f32.mrf.mxu2 }
 0x390   : > { %v1937_v61 = vadd.f32 %v1936_v63, %v4536_v53  ;;  %v2049_v51 = vpop.f32.mrf.mxu3 }
 0x391   : > { %v2050_v12 = vadd.f32 %v2049_v51, %v4542_v55  ;;  %v2165_v8 = vpop.f32.mrf.mxu0 }
 0x392   : > { %2411 = vst [vmem:[%s4015_s17 + $0x1e0] sm:$0xff] %v1937_v61  ;;  %v2166_v2 = vadd.f32 %v2165_v8, %v4523_v44  ;;  %v2278_v26 = vpop.f32.mrf.mxu1 }
 0x393   : > { %2412 = vst [vmem:[%s4015_s17 + $0x1e8] sm:$0xff] %v2050_v12  ;;  %v2279_v22 = vadd.f32 %v2278_v26, %v4525_v32 }
 0x394   : > { %2421 = vst [vmem:[%s4015_s17 + $0x230] sm:$0xff] %v2166_v2  ;;  %1986 = vmatmul.f32.gmra.mxu2 %v4190_v16  ;;  %2212 = vmatmul.f32.gmra.mxu0 %v4190_v16 }
 0x395   : > { %2422 = vst.msk [vmem:[%s4015_s17 + $0x238] sm:$0xff] %vm2357_vm0, %v2279_v22  ;;  %2099 = vmatmul.f32.gmra.mxu3 %v4190_v16  ;;  %2325 = vmatmul.f32.gmra.mxu1 %v4190_v16 }
 0x397   : > { %v1939_v56 = vpop.f32.mrf.mxu2 }
 0x398   : > { %v1940_v41 = vadd.f32 %v1939_v56, %v4536_v53  ;;  %v2052_v62 = vpop.f32.mrf.mxu3 }
 0x399   : > { %v2053_v5 = vadd.f32 %v2052_v62, %v4542_v55  ;;  %v2168_v33 = vpop.f32.mrf.mxu0 }
 0x39a   : > { %2419 = vst [vmem:[%s4015_s17 + $0x220] sm:$0xff] %v1940_v41  ;;  %v2169_v18 = vadd.f32 %v2168_v33, %v4523_v44  ;;  %v2281_v17 = vpop.f32.mrf.mxu1 }
 0x39b   : > { %2420 = vst [vmem:[%s4015_s17 + $0x228] sm:$0xff] %v2053_v5  ;;  %v2282_v14 = vadd.f32 %v2281_v17, %v4525_v32 }
 0x39c   : > { %2429 = vst [vmem:[%s4015_s17 + $0x270] sm:$0xff] %v2169_v18  ;;  %1989 = vmatmul.f32.gmra.mxu2 %v4211_v54  ;;  %2215 = vmatmul.f32.gmra.mxu0 %v4211_v54 }
 0x39d   : > { %2430 = vst.msk [vmem:[%s4015_s17 + $0x278] sm:$0xff] %vm2357_vm0, %v2282_v14  ;;  %2102 = vmatmul.f32.gmra.mxu3 %v4211_v54  ;;  %2328 = vmatmul.f32.gmra.mxu1 %v4211_v54 }
 0x39f   : > { %v1942_v16 = vpop.f32.mrf.mxu2 }
 0x3a0   : > { %v1943_v3 = vadd.f32 %v1942_v16, %v4536_v53  ;;  %v2055_v25 = vpop.f32.mrf.mxu3 }
 0x3a1   : > { %v2056_v13 = vadd.f32 %v2055_v25, %v4542_v55  ;;  %v2171_v20 = vpop.f32.mrf.mxu0 }
 0x3a2   : > { %2427 = vst [vmem:[%s4015_s17 + $0x260] sm:$0xff] %v1943_v3  ;;  %v2172_v11 = vadd.f32 %v2171_v20, %v4523_v44  ;;  %v2284_v39 = vpop.f32.mrf.mxu1 }
 0x3a3   : > { %2428 = vst [vmem:[%s4015_s17 + $0x268] sm:$0xff] %v2056_v13  ;;  %v2285_v31 = vadd.f32 %v2284_v39, %v4525_v32 }
 0x3a4   : > { %2437 = vst [vmem:[%s4015_s17 + $0x2b0] sm:$0xff] %v2172_v11  ;;  %1992 = vmatmul.f32.gmra.mxu2 %v4232_v48  ;;  %2218 = vmatmul.f32.gmra.mxu0 %v4232_v48 }
 0x3a5   : > { %2438 = vst.msk [vmem:[%s4015_s17 + $0x2b8] sm:$0xff] %vm2357_vm0, %v2285_v31  ;;  %2105 = vmatmul.f32.gmra.mxu3 %v4232_v48  ;;  %2331 = vmatmul.f32.gmra.mxu1 %v4232_v48 }
 0x3a7   : > { %v1945_v54 = vpop.f32.mrf.mxu2 }
 0x3a8   : > { %v1946_v40 = vadd.f32 %v1945_v54, %v4536_v53  ;;  %v2058_v34 = vpop.f32.mrf.mxu3 }
 0x3a9   : > { %v2059_v30 = vadd.f32 %v2058_v34, %v4542_v55  ;;  %v2174_v9 = vpop.f32.mrf.mxu0 }
 0x3aa   : > { %2435 = vst [vmem:[%s4015_s17 + $0x2a0] sm:$0xff] %v1946_v40  ;;  %v2175_v19 = vadd.f32 %v2174_v9, %v4523_v44  ;;  %v2287_v7 = vpop.f32.mrf.mxu1 }
 0x3ab   : > { %2436 = vst [vmem:[%s4015_s17 + $0x2a8] sm:$0xff] %v2059_v30  ;;  %v2288_v24 = vadd.f32 %v2287_v7, %v4525_v32 }
 0x3ac   : > { %2445 = vst [vmem:[%s4015_s17 + $0x2f0] sm:$0xff] %v2175_v19  ;;  %1995 = vmatmul.f32.gmra.mxu2 %v4253_v60  ;;  %2221 = vmatmul.f32.gmra.mxu0 %v4253_v60 }
 0x3ad   : > { %2446 = vst.msk [vmem:[%s4015_s17 + $0x2f8] sm:$0xff] %vm2357_vm0, %v2288_v24  ;;  %2108 = vmatmul.f32.gmra.mxu3 %v4253_v60  ;;  %2334 = vmatmul.f32.gmra.mxu1 %v4253_v60 }
 0x3af   : > { %v1948_v48 = vpop.f32.mrf.mxu2 }
 0x3b0   : > { %v1949_v10 = vadd.f32 %v1948_v48, %v4536_v53  ;;  %v2061_v21 = vpop.f32.mrf.mxu3 }
 0x3b1   : > { %v2062_v52 = vadd.f32 %v2061_v21, %v4542_v55  ;;  %v2177_v15 = vpop.f32.mrf.mxu0 }
 0x3b2   : > { %2443 = vst [vmem:[%s4015_s17 + $0x2e0] sm:$0xff] %v1949_v10  ;;  %v2178_v4 = vadd.f32 %v2177_v15, %v4523_v44  ;;  %v2290_v29 = vpop.f32.mrf.mxu1 }
 0x3b3   : > { %2444 = vst [vmem:[%s4015_s17 + $0x2e8] sm:$0xff] %v2062_v52  ;;  %v2291_v49 = vadd.f32 %v2290_v29, %v4525_v32 }
 0x3b4   : > { %2453 = vst [vmem:[%s4015_s17 + $0x330] sm:$0xff] %v2178_v4  ;;  %1998 = vmatmul.f32.gmra.mxu2 %v4274_v58  ;;  %2224 = vmatmul.f32.gmra.mxu0 %v4274_v58 }
 0x3b5   : > { %2454 = vst.msk [vmem:[%s4015_s17 + $0x338] sm:$0xff] %vm2357_vm0, %v2291_v49  ;;  %2111 = vmatmul.f32.gmra.mxu3 %v4274_v58  ;;  %2337 = vmatmul.f32.gmra.mxu1 %v4274_v58 }
 0x3b7   : > { %v1951_v60 = vpop.f32.mrf.mxu2 }
 0x3b8   : > { %v1952_v28 = vadd.f32 %v1951_v60, %v4536_v53  ;;  %v2064_v38 = vpop.f32.mrf.mxu3 }
 0x3b9   : > { %v2065_v37 = vadd.f32 %v2064_v38, %v4542_v55  ;;  %v2180_v43 = vpop.f32.mrf.mxu0 }
 0x3ba   : > { %2451 = vst [vmem:[%s4015_s17 + $0x320] sm:$0xff] %v1952_v28  ;;  %v2181_v42 = vadd.f32 %v2180_v43, %v4523_v44  ;;  %v2293_v47 = vpop.f32.mrf.mxu1 }
 0x3bb   : > { %2452 = vst [vmem:[%s4015_s17 + $0x328] sm:$0xff] %v2065_v37  ;;  %v2294_v6 = vadd.f32 %v2293_v47, %v4525_v32 }
 0x3bc   : > { %2461 = vst [vmem:[%s4015_s17 + $0x370] sm:$0xff] %v2181_v42  ;;  %2001 = vmatmul.f32.gmra.mxu2 %v4289_v23  ;;  %2227 = vmatmul.f32.gmra.mxu0 %v4289_v23 }
 0x3bd   : > { %2462 = vst.msk [vmem:[%s4015_s17 + $0x378] sm:$0xff] %vm2357_vm0, %v2294_v6  ;;  %2114 = vmatmul.f32.gmra.mxu3 %v4289_v23  ;;  %2340 = vmatmul.f32.gmra.mxu1 %v4289_v23 }
 0x3bf   : > { %v1954_v58 = vpop.f32.mrf.mxu2 }
 0x3c0   : > { %v1955_v46 = vadd.f32 %v1954_v58, %v4536_v53  ;;  %v2067_v0 = vpop.f32.mrf.mxu3 }
 0x3c1   : > { %v2068_v35 = vadd.f32 %v2067_v0, %v4542_v55  ;;  %v2183_v36 = vpop.f32.mrf.mxu0 }
 0x3c2   : > { %2459 = vst [vmem:[%s4015_s17 + $0x360] sm:$0xff] %v1955_v46  ;;  %v2184_v45 = vadd.f32 %v2183_v36, %v4523_v44  ;;  %v2296_v1 = vpop.f32.mrf.mxu1 }
 0x3c3   : > { %2460 = vst [vmem:[%s4015_s17 + $0x368] sm:$0xff] %v2068_v35  ;;  %v2297_v50 = vadd.f32 %v2296_v1, %v4525_v32 }
 0x3c4   : > { %2469 = vst [vmem:[%s4015_s17 + $0x3b0] sm:$0xff] %v2184_v45  ;;  %2004 = vmatmul.f32.gmra.mxu2 %v4304_v57  ;;  %2230 = vmatmul.f32.gmra.mxu0 %v4304_v57 }
 0x3c5   : > { %2470 = vst.msk [vmem:[%s4015_s17 + $0x3b8] sm:$0xff] %vm2357_vm0, %v2297_v50  ;;  %2117 = vmatmul.f32.gmra.mxu3 %v4304_v57  ;;  %2343 = vmatmul.f32.gmra.mxu1 %v4304_v57 }
 0x3c7   : > { %v1957_v23 = vpop.f32.mrf.mxu2 }
 0x3c8   : > { %v1958_v59 = vadd.f32 %v1957_v23, %v4536_v53  ;;  %v2070_v63 = vpop.f32.mrf.mxu3 }
 0x3c9   : > { %v2071_v61 = vadd.f32 %v2070_v63, %v4542_v55  ;;  %v2186_v51 = vpop.f32.mrf.mxu0 }
 0x3ca   : > { %2467 = vst [vmem:[%s4015_s17 + $0x3a0] sm:$0xff] %v1958_v59  ;;  %v2187_v12 = vadd.f32 %v2186_v51, %v4523_v44  ;;  %v2299_v8 = vpop.f32.mrf.mxu1 }
 0x3cb   : > { %2468 = vst [vmem:[%s4015_s17 + $0x3a8] sm:$0xff] %v2071_v61  ;;  %v2300_v2 = vadd.f32 %v2299_v8, %v4525_v32 }
 0x3cc   : > { %2477 = vst [vmem:[%s4015_s17 + $0x3f0] sm:$0xff] %v2187_v12  ;;  %2007 = vmatmul.f32.gmra.mxu2 %v4319_v27  ;;  %2233 = vmatmul.f32.gmra.mxu0 %v4319_v27 }
 0x3cd   : > { %2478 = vst.msk [vmem:[%s4015_s17 + $0x3f8] sm:$0xff] %vm2357_vm0, %v2300_v2  ;;  %2120 = vmatmul.f32.gmra.mxu3 %v4319_v27  ;;  %2346 = vmatmul.f32.gmra.mxu1 %v4319_v27 }
 0x3cf   : > { %v1960_v57 = vpop.f32.mrf.mxu2 }
 0x3d0   : > { %v1961_v26 = vadd.f32 %v1960_v57, %v4536_v53  ;;  %v2073_v22 = vpop.f32.mrf.mxu3 }
 0x3d1   : > { %v2074_v56 = vadd.f32 %v2073_v22, %v4542_v55  ;;  %v2189_v41 = vpop.f32.mrf.mxu0 }
 0x3d2   : > { %2475 = vst [vmem:[%s4015_s17 + $0x3e0] sm:$0xff] %v1961_v26  ;;  %v2190_v62 = vadd.f32 %v2189_v41, %v4523_v44  ;;  %v2302_v5 = vpop.f32.mrf.mxu1 }
 0x3d3   : > { %2476 = vst [vmem:[%s4015_s17 + $0x3e8] sm:$0xff] %v2074_v56  ;;  %v2303_v33 = vadd.f32 %v2302_v5, %v4525_v32 }
 0x3d4   : > { %2485 = vst [vmem:[%s4015_s17 + $0x430] sm:$0xff] %v2190_v62 }
 0x3d5   : > { %2486 = vst.msk [vmem:[%s4015_s17 + $0x438] sm:$0xff] %vm2357_vm0, %v2303_v33 }
 0x3d7   : > { %v1963_v27 = vpop.f32.mrf.mxu2 }
 0x3d8   : > { %v1964_v18 = vadd.f32 %v1963_v27, %v4536_v53  ;;  %v2076_v17 = vpop.f32.mrf.mxu3 }
 0x3d9   : > { %v2077_v14 = vadd.f32 %v2076_v17, %v4542_v55  ;;  %v2192_v16 = vpop.f32.mrf.mxu0 }
 0x3da   : > { %2483 = vst [vmem:[%s4015_s17 + $0x420] sm:$0xff] %v1964_v18  ;;  %v2193_v3 = vadd.f32 %v2192_v16, %v4523_v44  ;;  %v2305_v25 = vpop.f32.mrf.mxu1 }
 0x3db   : > { %2484 = vst [vmem:[%s4015_s17 + $0x428] sm:$0xff] %v2077_v14  ;;  %v2306_v13 = vadd.f32 %v2305_v25, %v4525_v32 }
 0x3dc   : > { %2493 = vst [vmem:[%s4015_s17 + $0x470] sm:$0xff] %v2193_v3 }
 0x3dd   : > { %2494 = vst.msk [vmem:[%s4015_s17 + $0x478] sm:$0xff] %vm2357_vm0, %v2306_v13 }
 0x3df   : > { %v1966_v20 = vpop.f32.mrf.mxu2 }
 0x3e0   : > { %v1967_v11 = vadd.f32 %v1966_v20, %v4536_v53  ;;  %v2079_v39 = vpop.f32.mrf.mxu3 }
 0x3e1   : > { %v2080_v31 = vadd.f32 %v2079_v39, %v4542_v55  ;;  %v2195_v54 = vpop.f32.mrf.mxu0 }
 0x3e2   : > { %2491 = vst [vmem:[%s4015_s17 + $0x460] sm:$0xff] %v1967_v11  ;;  %v2196_v40 = vadd.f32 %v2195_v54, %v4523_v44  ;;  %v2308_v34 = vpop.f32.mrf.mxu1 }
 0x3e3   : > { %2492 = vst [vmem:[%s4015_s17 + $0x468] sm:$0xff] %v2080_v31  ;;  %v2309_v30 = vadd.f32 %v2308_v34, %v4525_v32 }
 0x3e4   : > { %2501 = vst [vmem:[%s4015_s17 + $0x4b0] sm:$0xff] %v2196_v40 }
 0x3e5   : > { %2502 = vst.msk [vmem:[%s4015_s17 + $0x4b8] sm:$0xff] %vm2357_vm0, %v2309_v30 }
 0x3e7   : > { %v1969_v9 = vpop.f32.mrf.mxu2 }
 0x3e8   : > { %v1970_v19 = vadd.f32 %v1969_v9, %v4536_v53  ;;  %v2082_v7 = vpop.f32.mrf.mxu3 }
 0x3e9   : > { %v2083_v24 = vadd.f32 %v2082_v7, %v4542_v55  ;;  %v2198_v48 = vpop.f32.mrf.mxu0 }
 0x3ea   : > { %2499 = vst [vmem:[%s4015_s17 + $0x4a0] sm:$0xff] %v1970_v19  ;;  %v2199_v10 = vadd.f32 %v2198_v48, %v4523_v44  ;;  %v2311_v21 = vpop.f32.mrf.mxu1 }
 0x3eb   : > { %2500 = vst [vmem:[%s4015_s17 + $0x4a8] sm:$0xff] %v2083_v24  ;;  %v2312_v52 = vadd.f32 %v2311_v21, %v4525_v32 }
 0x3ec   : > { %2509 = vst [vmem:[%s4015_s17 + $0x4f0] sm:$0xff] %v2199_v10 }
 0x3ed   : > { %2510 = vst.msk [vmem:[%s4015_s17 + $0x4f8] sm:$0xff] %vm2357_vm0, %v2312_v52 }
 0x3ef   : > { %v1972_v15 = vpop.f32.mrf.mxu2 }
 0x3f0   : > { %v1973_v4 = vadd.f32 %v1972_v15, %v4536_v53  ;;  %v2085_v29 = vpop.f32.mrf.mxu3 }
 0x3f1   : > { %v2086_v49 = vadd.f32 %v2085_v29, %v4542_v55  ;;  %v2201_v60 = vpop.f32.mrf.mxu0 }
 0x3f2   : > { %2507 = vst [vmem:[%s4015_s17 + $0x4e0] sm:$0xff] %v1973_v4  ;;  %v2202_v28 = vadd.f32 %v2201_v60, %v4523_v44  ;;  %v2314_v38 = vpop.f32.mrf.mxu1 }
 0x3f3   : > { %2508 = vst [vmem:[%s4015_s17 + $0x4e8] sm:$0xff] %v2086_v49  ;;  %v2315_v37 = vadd.f32 %v2314_v38, %v4525_v32 }
 0x3f4   : > { %2517 = vst [vmem:[%s4015_s17 + $0x530] sm:$0xff] %v2202_v28 }
 0x3f5   : > { %2518 = vst.msk [vmem:[%s4015_s17 + $0x538] sm:$0xff] %vm2357_vm0, %v2315_v37 }
 0x3f7   : > { %v1975_v43 = vpop.f32.mrf.mxu2 }
 0x3f8   : > { %v1976_v42 = vadd.f32 %v1975_v43, %v4536_v53  ;;  %v2088_v47 = vpop.f32.mrf.mxu3 }
 0x3f9   : > { %v2089_v6 = vadd.f32 %v2088_v47, %v4542_v55  ;;  %v2204_v58 = vpop.f32.mrf.mxu0 }
 0x3fa   : > { %2515 = vst [vmem:[%s4015_s17 + $0x520] sm:$0xff] %v1976_v42  ;;  %v2205_v46 = vadd.f32 %v2204_v58, %v4523_v44  ;;  %v2317_v0 = vpop.f32.mrf.mxu1 }
 0x3fb   : > { %2516 = vst [vmem:[%s4015_s17 + $0x528] sm:$0xff] %v2089_v6  ;;  %v2318_v35 = vadd.f32 %v2317_v0, %v4525_v32 }
 0x3fc   : > { %2525 = vst [vmem:[%s4015_s17 + $0x570] sm:$0xff] %v2205_v46 }
 0x3fd   : > { %2526 = vst.msk [vmem:[%s4015_s17 + $0x578] sm:$0xff] %vm2357_vm0, %v2318_v35 }
 0x3ff   : > { %v1978_v36 = vpop.f32.mrf.mxu2 }
 0x400   : > { %v1979_v45 = vadd.f32 %v1978_v36, %v4536_v53  ;;  %v2091_v1 = vpop.f32.mrf.mxu3 }
 0x401   : > { %v2092_v50 = vadd.f32 %v2091_v1, %v4542_v55  ;;  %v2207_v23 = vpop.f32.mrf.mxu0 }
 0x402   : > { %2523 = vst [vmem:[%s4015_s17 + $0x560] sm:$0xff] %v1979_v45  ;;  %v2208_v59 = vadd.f32 %v2207_v23, %v4523_v44  ;;  %v2320_v63 = vpop.f32.mrf.mxu1 }
 0x403   : > { %2524 = vst [vmem:[%s4015_s17 + $0x568] sm:$0xff] %v2092_v50  ;;  %v2321_v61 = vadd.f32 %v2320_v63, %v4525_v32 }
 0x404   : > { %2533 = vst [vmem:[%s4015_s17 + $0x5b0] sm:$0xff] %v2208_v59 }
 0x405   : > { %2534 = vst.msk [vmem:[%s4015_s17 + $0x5b8] sm:$0xff] %vm2357_vm0, %v2321_v61 }
 0x407   : > { %v1981_v51 = vpop.f32.mrf.mxu2 }
 0x408   : > { %v1982_v12 = vadd.f32 %v1981_v51, %v4536_v53  ;;  %v2094_v8 = vpop.f32.mrf.mxu3 }
 0x409   : > { %v2095_v2 = vadd.f32 %v2094_v8, %v4542_v55  ;;  %v2210_v57 = vpop.f32.mrf.mxu0 }
 0x40a   : > { %2531 = vst [vmem:[%s4015_s17 + $0x5a0] sm:$0xff] %v1982_v12  ;;  %v2211_v26 = vadd.f32 %v2210_v57, %v4523_v44  ;;  %v2323_v22 = vpop.f32.mrf.mxu1 }
 0x40b   : > { %2532 = vst [vmem:[%s4015_s17 + $0x5a8] sm:$0xff] %v2095_v2  ;;  %v2324_v56 = vadd.f32 %v2323_v22, %v4525_v32 }
 0x40c   : > { %2541 = vst [vmem:[%s4015_s17 + $0x5f0] sm:$0xff] %v2211_v26 }
 0x40d   : > { %2542 = vst.msk [vmem:[%s4015_s17 + $0x5f8] sm:$0xff] %vm2357_vm0, %v2324_v56 }
 0x40f   : > { %v1984_v41 = vpop.f32.mrf.mxu2 }
 0x410   : > { %v1985_v62 = vadd.f32 %v1984_v41, %v4536_v53  ;;  %v2097_v5 = vpop.f32.mrf.mxu3 }
 0x411   : > { %v2098_v33 = vadd.f32 %v2097_v5, %v4542_v55  ;;  %v2213_v27 = vpop.f32.mrf.mxu0 }
 0x412   : > { %2539 = vst [vmem:[%s4015_s17 + $0x5e0] sm:$0xff] %v1985_v62  ;;  %v2214_v18 = vadd.f32 %v2213_v27, %v4523_v44  ;;  %v2326_v17 = vpop.f32.mrf.mxu1 }
 0x413   : > { %2540 = vst [vmem:[%s4015_s17 + $0x5e8] sm:$0xff] %v2098_v33  ;;  %v2327_v14 = vadd.f32 %v2326_v17, %v4525_v32 }
 0x414   : > { %2549 = vst [vmem:[%s4015_s17 + $0x630] sm:$0xff] %v2214_v18 }
 0x415   : > { %2550 = vst.msk [vmem:[%s4015_s17 + $0x638] sm:$0xff] %vm2357_vm0, %v2327_v14 }
 0x417   : > { %v1987_v16 = vpop.f32.mrf.mxu2 }
 0x418   : > { %v1988_v3 = vadd.f32 %v1987_v16, %v4536_v53  ;;  %v2100_v25 = vpop.f32.mrf.mxu3 }
 0x419   : > { %v2101_v13 = vadd.f32 %v2100_v25, %v4542_v55  ;;  %v2216_v20 = vpop.f32.mrf.mxu0 }
 0x41a   : > { %2547 = vst [vmem:[%s4015_s17 + $0x620] sm:$0xff] %v1988_v3  ;;  %v2217_v11 = vadd.f32 %v2216_v20, %v4523_v44  ;;  %v2329_v39 = vpop.f32.mrf.mxu1 }
 0x41b   : > { %2548 = vst [vmem:[%s4015_s17 + $0x628] sm:$0xff] %v2101_v13  ;;  %v2330_v31 = vadd.f32 %v2329_v39, %v4525_v32 }
 0x41c   : > { %2557 = vst [vmem:[%s4015_s17 + $0x670] sm:$0xff] %v2217_v11 }
 0x41d   : > { %2558 = vst.msk [vmem:[%s4015_s17 + $0x678] sm:$0xff] %vm2357_vm0, %v2330_v31 }
 0x41f   : > { %v1990_v54 = vpop.f32.mrf.mxu2 }
 0x420   : > { %v1991_v40 = vadd.f32 %v1990_v54, %v4536_v53  ;;  %v2103_v34 = vpop.f32.mrf.mxu3 }
 0x421   : > { %v2104_v30 = vadd.f32 %v2103_v34, %v4542_v55  ;;  %v2219_v9 = vpop.f32.mrf.mxu0 }
 0x422   : > { %2555 = vst [vmem:[%s4015_s17 + $0x660] sm:$0xff] %v1991_v40  ;;  %v2220_v19 = vadd.f32 %v2219_v9, %v4523_v44  ;;  %v2332_v7 = vpop.f32.mrf.mxu1 }
 0x423   : > { %2556 = vst [vmem:[%s4015_s17 + $0x668] sm:$0xff] %v2104_v30  ;;  %v2333_v24 = vadd.f32 %v2332_v7, %v4525_v32 }
 0x424   : > { %2565 = vst [vmem:[%s4015_s17 + $0x6b0] sm:$0xff] %v2220_v19 }
 0x425   : > { %2566 = vst.msk [vmem:[%s4015_s17 + $0x6b8] sm:$0xff] %vm2357_vm0, %v2333_v24 }
 0x427   : > { %v1993_v48 = vpop.f32.mrf.mxu2 }
 0x428   : > { %v1994_v10 = vadd.f32 %v1993_v48, %v4536_v53  ;;  %v2106_v21 = vpop.f32.mrf.mxu3 }
 0x429   : > { %v2107_v52 = vadd.f32 %v2106_v21, %v4542_v55  ;;  %v2222_v15 = vpop.f32.mrf.mxu0 }
 0x42a   : > { %2563 = vst [vmem:[%s4015_s17 + $0x6a0] sm:$0xff] %v1994_v10  ;;  %v2223_v4 = vadd.f32 %v2222_v15, %v4523_v44  ;;  %v2335_v29 = vpop.f32.mrf.mxu1 }
 0x42b   : > { %2564 = vst [vmem:[%s4015_s17 + $0x6a8] sm:$0xff] %v2107_v52  ;;  %v2336_v49 = vadd.f32 %v2335_v29, %v4525_v32 }
 0x42c   : > { %2573 = vst [vmem:[%s4015_s17 + $0x6f0] sm:$0xff] %v2223_v4 }
 0x42d   : > { %2574 = vst.msk [vmem:[%s4015_s17 + $0x6f8] sm:$0xff] %vm2357_vm0, %v2336_v49 }
 0x42f   : > { %v1996_v60 = vpop.f32.mrf.mxu2 }
 0x430   : > { %v1997_v28 = vadd.f32 %v1996_v60, %v4536_v53  ;;  %v2109_v38 = vpop.f32.mrf.mxu3 }
 0x431   : > { %v2110_v37 = vadd.f32 %v2109_v38, %v4542_v55  ;;  %v2225_v43 = vpop.f32.mrf.mxu0 }
 0x432   : > { %2571 = vst [vmem:[%s4015_s17 + $0x6e0] sm:$0xff] %v1997_v28  ;;  %v2226_v42 = vadd.f32 %v2225_v43, %v4523_v44  ;;  %v2338_v47 = vpop.f32.mrf.mxu1 }
 0x433   : > { %2572 = vst [vmem:[%s4015_s17 + $0x6e8] sm:$0xff] %v2110_v37  ;;  %v2339_v6 = vadd.f32 %v2338_v47, %v4525_v32 }
 0x434   : > { %2581 = vst [vmem:[%s4015_s17 + $0x730] sm:$0xff] %v2226_v42 }
 0x435   : > { %2582 = vst.msk [vmem:[%s4015_s17 + $0x738] sm:$0xff] %vm2357_vm0, %v2339_v6 }
 0x437   : > { %v1999_v58 = vpop.f32.mrf.mxu2 }
 0x438   : > { %v2000_v46 = vadd.f32 %v1999_v58, %v4536_v53  ;;  %v2112_v0 = vpop.f32.mrf.mxu3 }
 0x439   : > { %v2113_v35 = vadd.f32 %v2112_v0, %v4542_v55  ;;  %v2228_v36 = vpop.f32.mrf.mxu0 }
 0x43a   : > { %2579 = vst [vmem:[%s4015_s17 + $0x720] sm:$0xff] %v2000_v46  ;;  %v2229_v45 = vadd.f32 %v2228_v36, %v4523_v44  ;;  %v2341_v1 = vpop.f32.mrf.mxu1 }
 0x43b   : > { %2580 = vst [vmem:[%s4015_s17 + $0x728] sm:$0xff] %v2113_v35  ;;  %v2342_v50 = vadd.f32 %v2341_v1, %v4525_v32 }
 0x43c   : > { %2589 = vst [vmem:[%s4015_s17 + $0x770] sm:$0xff] %v2229_v45 }
 0x43d   : > { %2590 = vst.msk [vmem:[%s4015_s17 + $0x778] sm:$0xff] %vm2357_vm0, %v2342_v50 }
 0x43f   : > { %v2002_v23 = vpop.f32.mrf.mxu2 }
 0x440   : > { %v2003_v59 = vadd.f32 %v2002_v23, %v4536_v53  ;;  %v2115_v63 = vpop.f32.mrf.mxu3 }
 0x441   : > { %v2116_v61 = vadd.f32 %v2115_v63, %v4542_v55  ;;  %v2231_v51 = vpop.f32.mrf.mxu0 }
 0x442   : > { %2587 = vst [vmem:[%s4015_s17 + $0x760] sm:$0xff] %v2003_v59  ;;  %v2232_v12 = vadd.f32 %v2231_v51, %v4523_v44  ;;  %v2344_v8 = vpop.f32.mrf.mxu1 }
 0x443   : > { %2588 = vst [vmem:[%s4015_s17 + $0x768] sm:$0xff] %v2116_v61  ;;  %v2345_v2 = vadd.f32 %v2344_v8, %v4525_v32 }
 0x444   : > { %2597 = vst [vmem:[%s4015_s17 + $0x7b0] sm:$0xff] %v2232_v12 }
 0x445   : > { %2598 = vst.msk [vmem:[%s4015_s17 + $0x7b8] sm:$0xff] %vm2357_vm0, %v2345_v2 }
 0x447   : > { %v2005_v57 = vpop.f32.mrf.mxu2 }
 0x448   : > { %v2006_v26 = vadd.f32 %v2005_v57, %v4536_v53  ;;  %v2118_v22 = vpop.f32.mrf.mxu3 }
 0x449   : > { %v2119_v56 = vadd.f32 %v2118_v22, %v4542_v55  ;;  %v2234_v41 = vpop.f32.mrf.mxu0 }
 0x44a   : > { %2595 = vst [vmem:[%s4015_s17 + $0x7a0] sm:$0xff] %v2006_v26  ;;  %v2235_v62 = vadd.f32 %v2234_v41, %v4523_v44  ;;  %v2347_v5 = vpop.f32.mrf.mxu1 }
 0x44b   : > { %2596 = vst [vmem:[%s4015_s17 + $0x7a8] sm:$0xff] %v2119_v56  ;;  %v2348_v33 = vadd.f32 %v2347_v5, %v4525_v32 }
 0x44c   : > { %2605 = vst [vmem:[%s4015_s17 + $0x7f0] sm:$0xff] %v2235_v62 }
 0x44d   : > { %2606 = vst.msk [vmem:[%s4015_s17 + $0x7f8] sm:$0xff] %vm2357_vm0, %v2348_v33 }
 0x44f   : > { %v2008_v27 = vpop.f32.mrf.mxu2 }
 0x450   : > { %v2009_v18 = vadd.f32 %v2008_v27, %v4536_v53  ;;  %v2121_v17 = vpop.f32.mrf.mxu3 }
 0x451   : > { %v2122_v14 = vadd.f32 %v2121_v17, %v4542_v55 }
 0x452   : > { %2603 = vst [vmem:[%s4015_s17 + $0x7e0] sm:$0xff] %v2009_v18 }
 0x453   : > { %2604 = vst [vmem:[%s4015_s17 + $0x7e8] sm:$0xff] %v2122_v14 }
 0x454 PF: > { %p17_p4 = scmp.ge.s32.totalorder %s3098_s25, 4   ;;  %s4911_s18 = smov %s2991_s19 }
 0x455   : > { %s4912_s19 = smov %s2995_s20  ;;  %s4913_s20 = smov %s3110_s29 }
 0x456   : > { %s4914_s21 = smov %s3098_s25  ;;  %19 = sbr.rel (!%p17_p4) target bundleno = 5 (0x5), region = 92 }
 0x45b   :  { %2631 = vsyncpa [#allocation3], 1 }
 0x45c   :  { %2633 = vsyncpa [#allocation3 + $0x1], 1 }
 0x45d   :  { %2634 = vsyncpa [#allocation5], 1 }
 0x45e   :  { %2635 = vsyncpa [#allocation8], 1 }

</bundles_post_ra>
